<compile_context>
chip_gen: v7x
topology: tpu7x:2x2x1
jax: 0.10.0
libtpu: 0.0.40
codegen_flags: <defaults>
</compile_context>

<pallas_src>
import numpy as np
import jax
import jax.numpy as jnp
from jax import lax
from jax.experimental import pallas as pl
from jax.experimental.pallas import tpu as pltpu


# ----------------------------- DCfg (synthetic) ------------------------------
class DCfg:
    sinoSh = (16, 16)          # (H, W) of the sinogram
    gapRngX = slice(6, 10)     # column range of the gap


BASE_CHANNELS = 64
LRELU_SLOPE = 0.2

_TILE = 256                    # batch rows per grid step (VMEM-safe on v5e/v6e/v7x)
_LANE = 128                    # pad folded matmul widths to multiples of this


def _round_up(x, m):
    return ((x + m - 1) // m) * m


# --------------------------- fused forward kernel ----------------------------
def _make_fused_kernel(omit_edges):
    """Build the fused kernel; omit_edges is a trace-time Python int."""
    H, W = DCfg.sinoSh
    g0, g1 = DCfg.gapRngX.start, DCfg.gapRngX.stop

    def kernel(x_ref, m1_ref, b1_ref, m2_ref, b2_ref,
               w3_ref, b3_ref, w4_ref, b4_ref, o_ref):
        def lrelu(y):
            return jnp.maximum(y, LRELU_SLOPE * y)      # 2 VALU ops

        x = x_ref[...]                                   # (bm, H*W) f32
        if omit_edges:                                   # fused mask: free VPU filler
            flat = lax.broadcasted_iota(jnp.int32, x.shape, 1)
            row = flat // W
            col = flat - row * W
            mask = (((row < omit_edges) | (row >= H - omit_edges))
                    & (col >= g0) & (col < g1))
            x = jnp.where(mask, 0.0, x)

        # conv1 folded dense: (bm, 256) @ (256, 1664)
        a1 = jnp.dot(x.astype(jnp.bfloat16), m1_ref[...],
                     preferred_element_type=jnp.float32) + b1_ref[...]
        a1 = lrelu(a1)

        # conv2 folded dense: (bm, 1664) @ (1664, 640)
        a2 = jnp.dot(a1.astype(jnp.bfloat16), m2_ref[...],
                     preferred_element_type=jnp.float32) + b2_ref[...]
        a2 = lrelu(a2)

        # fc1: (bm, 640) @ (640, 256)
        h = jnp.dot(a2.astype(jnp.bfloat16), w3_ref[...],
                    preferred_element_type=jnp.float32) + b3_ref[...]
        h = lrelu(h)

        # fc2 (256 -> 1) as a transposed-RHS dot: (1,256) x (bm,256)^T -> (1, bm).
        # The result is lane-dense, so the final store is unmasked.
        logit = lax.dot_general(
            w4_ref[...], h.astype(jnp.bfloat16),
            (((1,), (1,)), ((), ())),
            preferred_element_type=jnp.float32) + b4_ref[...]

        o_ref[...] = 1.0 / (1.0 + jnp.exp(-logit))       # exact sigmoid (f32)

    return kernel


def _fused_forward_call(x_flat, p, omit_edges):
    """x_flat: (N, H*W) f32.  Returns (N, 1) f32 via a single pallas_call."""
    n, d_in = x_flat.shape
    bm = min(_TILE, _round_up(n, 8))      # always tiled; never bm = n for big batches
    n_pad = _round_up(n, bm)
    if n_pad != n:
        x_flat = jnp.pad(x_flat, ((0, n_pad - n), (0, 0)))
    grid_m = n_pad // bm

    def const_spec(arr):
        # Weight / bias: constant index map -> single resident VMEM block.
        return pl.BlockSpec(arr.shape, lambda i: (0, 0))

    weights = (p["m1"], p["b1"], p["m2"], p["b2"],
               p["w3"], p["b3"], p["w4"], p["b4"])

    out_row = pl.pallas_call(
        _make_fused_kernel(omit_edges),
        out_shape=jax.ShapeDtypeStruct((1, n_pad), jnp.float32),
        grid=(grid_m,),
        in_specs=[pl.BlockSpec((bm, d_in), lambda i: (i, 0))]
                 + [const_spec(w) for w in weights],
        out_specs=pl.BlockSpec((1, bm), lambda i: (0, i)),     # lane-dense output
        compiler_params=pltpu.CompilerParams(
            dimension_semantics=("parallel",),
            vmem_limit_bytes=32 << 20),
    )(x_flat, *weights)

    return out_row[0, :n].reshape(n, 1)


# -------------------- init: fold convs / pre-pack weights --------------------
def _conv_to_dense(w, b, in_h, in_w, in_c, stride):
    """Fold a no-padding strided Conv2d (torch weight layout (Cout,Cin,kH,kW)) into a
    dense matrix acting on an HWC-flattened input and producing an HWC-flattened output.
    Exact; done once at init.  Only sensible because DCfg.sinoSh is tiny."""
    cout, cin, kh, kw = w.shape
    oh = (in_h - kh) // stride + 1
    ow = (in_w - kw) // stride + 1
    m = np.zeros((in_h * in_w * in_c, oh * ow * cout), dtype=np.float32)
    for i in range(oh):
        for j in range(ow):
            col0 = (i * ow + j) * cout
            for di in range(kh):
                for dj in range(kw):
                    for ci in range(cin):
                        row = ((i * stride + di) * in_w
                               + (j * stride + dj)) * in_c + ci
                        m[row, col0:col0 + cout] = w[:, ci, di, dj]
    b_full = np.tile(np.asarray(b, np.float32), oh * ow)
    return m, b_full, (oh, ow, cout)


def _pad2d(a, rows, cols):
    out = np.zeros((rows, cols), np.float32)
    out[:a.shape[0], :a.shape[1]] = a
    return out


def init_params(key):
    """Random weights ~ N(0, 0.01) in torch layout (fillWheights), folded, permuted,
    zero-padded to 128-lane multiples, transposed and bf16-cast ONCE at init."""
    ks = list(jax.random.split(key, 8))

    def nrm(k, shape):
        return np.asarray(0.01 * jax.random.normal(k, shape, dtype=jnp.float32))

    bc = BASE_CHANNELS
    H, W = DCfg.sinoSh
    torch_params = {
        # body: encblock(1/64 -> 0.5, k=3, s=2), encblock(0.5 -> 1, k=3, s=2)
        "conv1_w": nrm(ks[0], (bc // 2, 1, 3, 3)),      # (Cout, Cin, kH, kW)
        "conv1_b": nrm(ks[1], (bc // 2,)),
        "conv2_w": nrm(ks[2], (bc, bc // 2, 3, 3)),
        "conv2_b": nrm(ks[3], (bc,)),
    }

    m1, b1, (oh1, ow1, c1) = _conv_to_dense(torch_params["conv1_w"],
                                            torch_params["conv1_b"], H, W, 1, 2)
    m2, b2, (oh2, ow2, c2) = _conv_to_dense(torch_params["conv2_w"],
                                            torch_params["conv2_b"], oh1, ow1, c1, 2)
    lin_channels = oh2 * ow2 * c2        # 64*3*3 = 576 (== math.prod(encSh))
    hidden = bc * 4                      # 256

    torch_params["fc1_w"] = nrm(ks[4], (hidden, lin_channels))  # torch (out,in), NCHW-flat in
    torch_params["fc1_b"] = nrm(ks[5], (hidden,))
    torch_params["fc2_w"] = nrm(ks[6], (1, hidden))
    torch_params["fc2_b"] = nrm(ks[7], (1,))

    # torch flattens NCHW (index c*9 + i*3 + j); the kernel produces HWC
    # (index (i*3 + j)*64 + c).  Permute fc1's columns once to absorb that.
    f_hwc = np.arange(lin_channels)
    pos, c = f_hwc // c2, f_hwc % c2
    f_chw = c * (oh2 * ow2) + pos
    w3 = torch_params["fc1_w"][:, f_chw].T                      # (576, 256)

    d1 = m1.shape[1]                     # 1568
    d2 = m2.shape[1]                     # 576
    d1p = _round_up(d1, _LANE)           # 1664
    d2p = _round_up(d2, _LANE)           # 640

    params = {
        "m1": jnp.asarray(_pad2d(m1, m1.shape[0], d1p), jnp.bfloat16),        # (256, 1664)
        "b1": jnp.asarray(_pad2d(b1.reshape(1, -1), 1, d1p), jnp.float32),    # (1, 1664)
        "m2": jnp.asarray(_pad2d(m2, d1p, d2p), jnp.bfloat16),                # (1664, 640)
        "b2": jnp.asarray(_pad2d(b2.reshape(1, -1), 1, d2p), jnp.float32),    # (1, 640)
        "w3": jnp.asarray(_pad2d(w3, d2p, hidden), jnp.bfloat16),             # (640, 256)
        "b3": jnp.asarray(torch_params["fc1_b"].reshape(1, -1), jnp.float32), # (1, 256)
        "w4": jnp.asarray(torch_params["fc2_w"], jnp.bfloat16),               # (1, 256)
        "b4": jnp.asarray(torch_params["fc2_b"].reshape(1, 1), jnp.float32),  # (1, 1)
    }
    return params, torch_params


# ------------------------------ forward wrapper -------------------------------
def discriminator_forward(images, params, omit_edges=0):
    # images: (N, 1, H, W) or (N, H, W) float32, like PyTorch.
    if images.ndim == 3:
        images = images[:, None, :, :]
    images = images.astype(jnp.float32)
    n = images.shape[0]
    H, W = DCfg.sinoSh
    x_flat = images.reshape(n, H * W)        # C == 1 so NCHW-flat == HWC-flat
    return _fused_forward_call(x_flat, params, int(omit_edges))   # (N, 1)


# --------------------- plain-JAX f32 reference (torch semantics) --------------
def _apply_omit_edges(images_nchw, omit_edges):
    H, W = images_nchw.shape[-2], images_nchw.shape[-1]
    rows = jnp.arange(H)
    row_mask = (rows < omit_edges) | (rows >= H - omit_edges)
    cols = jnp.arange(W)
    g = DCfg.gapRngX
    col_mask = (cols >= g.start) & (cols < g.stop)
    mask = row_mask[:, None] & col_mask[None, :]
    return jnp.where(mask[None, None, :, :], 0.0, images_nchw)


def _im2col(x_nchw, kh, kw, stride):
    N, C, H, W = x_nchw.shape
    OH = (H - kh) // stride + 1
    OW = (W - kw) // stride + 1
    cols = []
    for i in range(kh):
        for j in range(kw):
            cols.append(x_nchw[:, :, i:i + stride * OH:stride, j:j + stride * OW:stride])
    patches = jnp.stack(cols, axis=2)                        # (N, C, kh*kw, OH, OW)
    patches = patches.transpose(0, 3, 4, 1, 2).reshape(N * OH * OW, C * kh * kw)
    return patches, (N, OH, OW)


def reference_forward(images, tp, omit_edges=0):
    if images.ndim == 3:
        images = images[:, None, :, :]
    x = images.astype(jnp.float32)
    if omit_edges:
        x = _apply_omit_edges(x, omit_edges)
    for wn, bn in (("conv1_w", "conv1_b"), ("conv2_w", "conv2_b")):
        w, b = jnp.asarray(tp[wn]), jnp.asarray(tp[bn])
        cout = w.shape[0]
        patches, (N, OH, OW) = _im2col(x, w.shape[2], w.shape[3], 2)
        y = patches @ w.reshape(cout, -1).T + b
        y = jnp.where(y > 0, y, LRELU_SLOPE * y)
        x = y.reshape(N, OH, OW, cout).transpose(0, 3, 1, 2)
    flat = x.reshape(x.shape[0], -1)                          # NCHW flatten
    h = flat @ jnp.asarray(tp["fc1_w"]).T + jnp.asarray(tp["fc1_b"])
    h = jnp.where(h > 0, h, LRELU_SLOPE * h)
    o = h @ jnp.asarray(tp["fc2_w"]).T + jnp.asarray(tp["fc2_b"])
    return 1.0 / (1.0 + jnp.exp(-o))


# ---------------------------------- main --------------------------------------
if __name__ == "__main__":
    key = jax.random.PRNGKey(0)
    pkey, xkey = jax.random.split(key)
    xkey_a, xkey_b = jax.random.split(xkey)
    params, torch_params = init_params(pkey)

    H, W = DCfg.sinoSh

    # 3-D input path (exercises the unsqueeze branch), omit_edges = 0
    batch = 2
    images3d = jax.random.normal(xkey_a, (batch, H, W), dtype=jnp.float32)
    fwd = jax.jit(lambda im: discriminator_forward(im, params, omit_edges=0))
    out = jax.block_until_ready(fwd(images3d))
    assert out.shape == (batch, 1)
    assert bool(jnp.all((out > 0.0) & (out < 1.0)))
    ref = reference_forward(images3d, torch_params, omit_edges=0)
    assert bool(jnp.all(jnp.abs(out - ref) < 1e-2))

    # 4-D input path, fused omit_edges mask, off-tile batch (forces pad + slice)
    batch2 = 5
    images4d = jax.random.normal(xkey_b, (batch2, 1, H, W), dtype=jnp.float32)
    fwd2 = jax.jit(lambda im: discriminator_forward(im, params, omit_edges=2))
    out2 = jax.block_until_ready(fwd2(images4d))
    assert out2.shape == (batch2, 1)
    ref2 = reference_forward(images4d, torch_params, omit_edges=2)
    assert bool(jnp.all(jnp.abs(out2 - ref2) < 1e-2))

    print("KERNEL_OK")
</pallas_src>

<mosaic_0001>
module attributes {stable_mosaic.version = 11 : i64} {
  func.func @kernel(%arg0: i32, %arg1: memref<8x256xf32, #tpu.memory_space<vmem>>, %arg2: memref<256x1664xbf16, #tpu.memory_space<vmem>>, %arg3: memref<1x1664xf32, #tpu.memory_space<vmem>>, %arg4: memref<1664x640xbf16, #tpu.memory_space<vmem>>, %arg5: memref<1x640xf32, #tpu.memory_space<vmem>>, %arg6: memref<640x256xbf16, #tpu.memory_space<vmem>>, %arg7: memref<1x256xf32, #tpu.memory_space<vmem>>, %arg8: memref<1x256xbf16, #tpu.memory_space<vmem>>, %arg9: memref<1x1xf32, #tpu.memory_space<vmem>>, %arg10: memref<1x8xf32, #tpu.memory_space<vmem>>) attributes {dimension_semantics = [#tpu.dimension_semantics<parallel>], iteration_bounds = array<i64: 1>, scalar_prefetch = 0 : i64, scratch_operands = 0 : i64, tpu.core_type = #tpu.core_type<tc>, window_params = [{transform_indices = @transform_0, window_bounds = array<i64: 8, 256>}, {pipeline_mode = #tpu.pipeline_mode<synchronous>, transform_indices = @transform_1, window_bounds = array<i64: 256, 1664>}, {pipeline_mode = #tpu.pipeline_mode<synchronous>, transform_indices = @transform_2, window_bounds = array<i64: 1, 1664>}, {pipeline_mode = #tpu.pipeline_mode<synchronous>, transform_indices = @transform_3, window_bounds = array<i64: 1664, 640>}, {pipeline_mode = #tpu.pipeline_mode<synchronous>, transform_indices = @transform_4, window_bounds = array<i64: 1, 640>}, {pipeline_mode = #tpu.pipeline_mode<synchronous>, transform_indices = @transform_5, window_bounds = array<i64: 640, 256>}, {pipeline_mode = #tpu.pipeline_mode<synchronous>, transform_indices = @transform_6, window_bounds = array<i64: 1, 256>}, {pipeline_mode = #tpu.pipeline_mode<synchronous>, transform_indices = @transform_7, window_bounds = array<i64: 1, 256>}, {pipeline_mode = #tpu.pipeline_mode<synchronous>, transform_indices = @transform_8, window_bounds = array<i64: 1, 1>}, {transform_indices = @transform_9, window_bounds = array<i64: 1, 8>}]} {
    %c0 = arith.constant 0 : index
    %c0_0 = arith.constant 0 : index
    %0 = vector.load %arg1[%c0, %c0_0] : memref<8x256xf32, #tpu.memory_space<vmem>>, vector<8x256xf32>
    %1 = arith.truncf %0 : vector<8x256xf32> to vector<8x256xbf16>
    %c0_1 = arith.constant 0 : index
    %c0_2 = arith.constant 0 : index
    %2 = vector.load %arg2[%c0_1, %c0_2] : memref<256x1664xbf16, #tpu.memory_space<vmem>>, vector<256x1664xbf16>
    %cst = arith.constant dense<0.000000e+00> : vector<8x1664xf32>
    %3 = tpu.matmul %1, %2, %cst {dimension_numbers = #tpu.dot_dimension_numbers<[1], [0], [0], [1], [0, 0, 1, 1], [], []>} : vector<8x256xbf16>, vector<256x1664xbf16>, vector<8x1664xf32> -> vector<8x1664xf32>
    %c0_3 = arith.constant 0 : index
    %c0_4 = arith.constant 0 : index
    %4 = vector.load %arg3[%c0_3, %c0_4] : memref<1x1664xf32, #tpu.memory_space<vmem>>, vector<1x1664xf32>
    %5 = vector.broadcast %4 : vector<1x1664xf32> to vector<8x1664xf32>
    %6 = arith.addf %3, %5 : vector<8x1664xf32>
    %cst_5 = arith.constant 2.000000e-01 : f32
    %7 = vector.broadcast %cst_5 : f32 to vector<8x1664xf32>
    %8 = arith.mulf %7, %6 : vector<8x1664xf32>
    %9 = arith.maximumf %6, %8 : vector<8x1664xf32>
    %10 = arith.truncf %9 : vector<8x1664xf32> to vector<8x1664xbf16>
    %c0_6 = arith.constant 0 : index
    %c0_7 = arith.constant 0 : index
    %11 = vector.load %arg4[%c0_6, %c0_7] : memref<1664x640xbf16, #tpu.memory_space<vmem>>, vector<1664x640xbf16>
    %cst_8 = arith.constant dense<0.000000e+00> : vector<8x640xf32>
    %12 = tpu.matmul %10, %11, %cst_8 {dimension_numbers = #tpu.dot_dimension_numbers<[1], [0], [0], [1], [0, 0, 1, 1], [], []>} : vector<8x1664xbf16>, vector<1664x640xbf16>, vector<8x640xf32> -> vector<8x640xf32>
    %c0_9 = arith.constant 0 : index
    %c0_10 = arith.constant 0 : index
    %13 = vector.load %arg5[%c0_9, %c0_10] : memref<1x640xf32, #tpu.memory_space<vmem>>, vector<1x640xf32>
    %14 = vector.broadcast %13 : vector<1x640xf32> to vector<8x640xf32>
    %15 = arith.addf %12, %14 : vector<8x640xf32>
    %cst_11 = arith.constant 2.000000e-01 : f32
    %16 = vector.broadcast %cst_11 : f32 to vector<8x640xf32>
    %17 = arith.mulf %16, %15 : vector<8x640xf32>
    %18 = arith.maximumf %15, %17 : vector<8x640xf32>
    %19 = arith.truncf %18 : vector<8x640xf32> to vector<8x640xbf16>
    %c0_12 = arith.constant 0 : index
    %c0_13 = arith.constant 0 : index
    %20 = vector.load %arg6[%c0_12, %c0_13] : memref<640x256xbf16, #tpu.memory_space<vmem>>, vector<640x256xbf16>
    %cst_14 = arith.constant dense<0.000000e+00> : vector<8x256xf32>
    %21 = tpu.matmul %19, %20, %cst_14 {dimension_numbers = #tpu.dot_dimension_numbers<[1], [0], [0], [1], [0, 0, 1, 1], [], []>} : vector<8x640xbf16>, vector<640x256xbf16>, vector<8x256xf32> -> vector<8x256xf32>
    %c0_15 = arith.constant 0 : index
    %c0_16 = arith.constant 0 : index
    %22 = vector.load %arg7[%c0_15, %c0_16] : memref<1x256xf32, #tpu.memory_space<vmem>>, vector<1x256xf32>
    %23 = vector.broadcast %22 : vector<1x256xf32> to vector<8x256xf32>
    %24 = arith.addf %21, %23 : vector<8x256xf32>
    %cst_17 = arith.constant 2.000000e-01 : f32
    %25 = vector.broadcast %cst_17 : f32 to vector<8x256xf32>
    %26 = arith.mulf %25, %24 : vector<8x256xf32>
    %27 = arith.maximumf %24, %26 : vector<8x256xf32>
    %c0_18 = arith.constant 0 : index
    %c0_19 = arith.constant 0 : index
    %28 = vector.load %arg8[%c0_18, %c0_19] : memref<1x256xbf16, #tpu.memory_space<vmem>>, vector<1x256xbf16>
    %29 = arith.truncf %27 : vector<8x256xf32> to vector<8x256xbf16>
    %cst_20 = arith.constant dense<0.000000e+00> : vector<1x8xf32>
    %30 = tpu.matmul %28, %29, %cst_20 {dimension_numbers = #tpu.dot_dimension_numbers<[1], [1], [0], [0], [0, 0, 1, 0], [], []>} : vector<1x256xbf16>, vector<8x256xbf16>, vector<1x8xf32> -> vector<1x8xf32>
    %c0_21 = arith.constant 0 : index
    %c0_22 = arith.constant 0 : index
    %31 = vector.load %arg9[%c0_21, %c0_22] : memref<1x1xf32, #tpu.memory_space<vmem>>, vector<1x1xf32>
    %32 = vector.broadcast %31 : vector<1x1xf32> to vector<1x8xf32>
    %33 = arith.addf %30, %32 : vector<1x8xf32>
    %cst_23 = arith.constant 0.000000e+00 : f32
    %34 = vector.broadcast %cst_23 : f32 to vector<1x8xf32>
    %35 = arith.subf %34, %33 : vector<1x8xf32>
    %36 = math.exp %35 : vector<1x8xf32>
    %cst_24 = arith.constant 1.000000e+00 : f32
    %37 = vector.broadcast %cst_24 : f32 to vector<1x8xf32>
    %38 = arith.addf %37, %36 : vector<1x8xf32>
    %cst_25 = arith.constant 1.000000e+00 : f32
    %39 = vector.broadcast %cst_25 : f32 to vector<1x8xf32>
    %40 = arith.divf %39, %38 : vector<1x8xf32>
    %c0_26 = arith.constant 0 : index
    %c0_27 = arith.constant 0 : index
    %41 = vector.load %arg10[%c0_26, %c0_27] : memref<1x8xf32, #tpu.memory_space<vmem>>, vector<1x8xf32>
    tpu.vector_store %arg10[%c0_26, %c0_27], %40 {strides = array<i32>} : memref<1x8xf32, #tpu.memory_space<vmem>>, vector<1x8xf32>,
    return
  }
  func.func @transform_0(%arg0: i32) -> (i32, i32) {
    %c0_i32 = arith.constant 0 : i32
    %c0_i32_0 = arith.constant 0 : i32
    return %arg0, %c0_i32 : i32, i32
  }
  func.func @transform_1(%arg0: i32) -> (i32, i32) {
    %c0_i32 = arith.constant 0 : i32
    %c0_i32_0 = arith.constant 0 : i32
    %c0_i32_1 = arith.constant 0 : i32
    return %c0_i32, %c0_i32_0 : i32, i32
  }
  func.func @transform_2(%arg0: i32) -> (i32, i32) {
    %c0_i32 = arith.constant 0 : i32
    %c0_i32_0 = arith.constant 0 : i32
    %c0_i32_1 = arith.constant 0 : i32
    return %c0_i32, %c0_i32_0 : i32, i32
  }
  func.func @transform_3(%arg0: i32) -> (i32, i32) {
    %c0_i32 = arith.constant 0 : i32
    %c0_i32_0 = arith.constant 0 : i32
    %c0_i32_1 = arith.constant 0 : i32
    return %c0_i32, %c0_i32_0 : i32, i32
  }
  func.func @transform_4(%arg0: i32) -> (i32, i32) {
    %c0_i32 = arith.constant 0 : i32
    %c0_i32_0 = arith.constant 0 : i32
    %c0_i32_1 = arith.constant 0 : i32
    return %c0_i32, %c0_i32_0 : i32, i32
  }
  func.func @transform_5(%arg0: i32) -> (i32, i32) {
    %c0_i32 = arith.constant 0 : i32
    %c0_i32_0 = arith.constant 0 : i32
    %c0_i32_1 = arith.constant 0 : i32
    return %c0_i32, %c0_i32_0 : i32, i32
  }
  func.func @transform_6(%arg0: i32) -> (i32, i32) {
    %c0_i32 = arith.constant 0 : i32
    %c0_i32_0 = arith.constant 0 : i32
    %c0_i32_1 = arith.constant 0 : i32
    return %c0_i32, %c0_i32_0 : i32, i32
  }
  func.func @transform_7(%arg0: i32) -> (i32, i32) {
    %c0_i32 = arith.constant 0 : i32
    %c0_i32_0 = arith.constant 0 : i32
    %c0_i32_1 = arith.constant 0 : i32
    return %c0_i32, %c0_i32_0 : i32, i32
  }
  func.func @transform_8(%arg0: i32) -> (i32, i32) {
    %c0_i32 = arith.constant 0 : i32
    %c0_i32_0 = arith.constant 0 : i32
    %c0_i32_1 = arith.constant 0 : i32
    return %c0_i32, %c0_i32_0 : i32, i32
  }
  func.func @transform_9(%arg0: i32) -> (i32, i32) {
    %c0_i32 = arith.constant 0 : i32
    %c0_i32_0 = arith.constant 0 : i32
    return %c0_i32, %arg0 : i32, i32
  }
}

</mosaic_0001>

<bundles_post_ra>
// kernel: _lambda_.1
= control target key start
LH: loop header
LB: loop body
LE: loop exit
PB: predicated region body
PF: predicated region fallthrough
CT: control target
= control target key end

     0   :  { %vm8864_vm0 = vmmov 0   ;;  %vm6640_vm1 = vcmask 57344   ;;  %s11560_s1 = inlined_call_operand.vmem [shape: bf16[256,1664], index: 1, kind: input, shape index: {}]   ;;  %s11561_s0 = inlined_call_operand.vmem [shape: f32[8,256], index: 0, kind: input, shape index: {}]   ;;  %s11562_s3 = inlined_call_operand.vmem [shape: bf16[1664,640], index: 3, kind: input, shape index: {}]   ;;  %s11563_s2 = inlined_call_operand.vmem [shape: f32[1,1664], index: 2, kind: input, shape index: {}]   ;;  %s11564_s5 = inlined_call_operand.vmem [shape: bf16[640,256], index: 5, kind: input, shape index: {}]   ;;  %s11565_s4 = inlined_call_operand.vmem [shape: f32[1,640], index: 4, kind: input, shape index: {}]   ;;  %s11566_s7 = inlined_call_operand.vmem [shape: bf16[1,256], index: 7, kind: input, shape index: {}]   ;;  %s11567_s8 = inlined_call_operand.<no memory space> [shape: f32[1,1], index: 8, kind: input, shape index: {}]   ;;  %s11568_s6 = inlined_call_operand.vmem [shape: f32[1,256], index: 6, kind: input, shape index: {}]   ;;  %s11569_s9 = inlined_call_operand.vmem [shape: f32[1,8], index: 9, kind: output, shape index: {}]  }
   0x1   :  { %v7705_v0 = vld [vmem:[%s11560_s1 + $0x4] ss:$52 sps:$4 sm:$0xff]   ;;  %v7707_v1 = vld [vmem:[%s11560_s1] ss:$52 sps:$4 sm:$0xff]   ;;  %v7710_v3 = vld [vmem:[%s11560_s1 + $0x68] ss:$52 sps:$4 sm:$0xff]  }
   0x2   :  { %1388 = vmatprep.subr.bf16.mxu1 %v7705_v0  ;;  %v7708_v2 = vld [vmem:[%s11560_s1 + $0x6c] ss:$52 sps:$4 sm:$0xff]   ;;  %v7711_v4 = vld [vmem:[%s11560_s1 + $0xd4] ss:$52 sps:$4 sm:$0xff]   ;;  %v7713_v5 = vld [vmem:[%s11560_s1 + $0xd0] ss:$52 sps:$4 sm:$0xff]  }
   0x3   :  { %1389 = vmatpush1.bf16.msra.mxu1 %v7707_v1  ;;  %v7714_v6 = vld [vmem:[%s11560_s1 + $0x13c] ss:$52 sps:$4 sm:$0xff]   ;;  %v7716_v7 = vld [vmem:[%s11560_s1 + $0x138] ss:$52 sps:$4 sm:$0xff]   ;;  %v7719_v9 = vld [vmem:[%s11560_s1 + $0x1a0] ss:$52 sps:$4 sm:$0xff]  }
   0x4   :  { %1390 = vmatprep.subr.bf16.mxu1 %v7708_v2  ;;  %v7717_v8 = vld [vmem:[%s11560_s1 + $0x1a4] ss:$52 sps:$4 sm:$0xff]   ;;  %v7720_v10 = vld [vmem:[%s11560_s1 + $0x20c] ss:$52 sps:$4 sm:$0xff]   ;;  %v7722_v11 = vld [vmem:[%s11560_s1 + $0x208] ss:$52 sps:$4 sm:$0xff]  }
   0x5   :  { %v7723_v12 = vld [vmem:[%s11560_s1 + $0x274] ss:$52 sps:$4 sm:$0xff]   ;;  %v7755_v14 = vld [vmem:[%s11560_s1 + $0x10] ss:$52 sps:$4 sm:$0xff]   ;;  %v7761_v20 = vld [vmem:[%s11560_s1 + $0x78] ss:$52 sps:$4 sm:$0xff]  }
   0x6   :  { %v7753_v13 = vld [vmem:[%s11560_s1 + $0x14] ss:$52 sps:$4 sm:$0xff]   ;;  %v7725_v16 = vld [vmem:[%s11560_s1 + $0x270] ss:$52 sps:$4 sm:$0xff]   ;;  %v7728_v21 = vld [vmem:[%s11560_s1 + $0x2d8] ss:$52 sps:$4 sm:$0xff]  }
   0x7   :  { %1391 = vmatpush1.bf16.msra.mxu1 %v7710_v3  ;;  %v36_v15 = vld [vmem:[%s11561_s0 + $0x8] sm:$0xff]  ;;  %v7726_v18 = vld [vmem:[%s11560_s1 + $0x2dc] ss:$52 sps:$4 sm:$0xff]   ;;  %1470 = vmatprep.subr.bf16.mxu0 %v7753_v13  ;;  %v7729_v22 = vld [vmem:[%s11560_s1 + $0x344] ss:$52 sps:$4 sm:$0xff]  }
   0x8   :  { %1392 = vmatprep.subr.bf16.mxu1 %v7711_v4  ;;  %v8967_v17 = vpack.c.bf16 %v36_v15, %v36_v15  ;;  %1471 = vmatpush1.bf16.msra.mxu0 %v7755_v14  ;;  %v7759_v19 = vld [vmem:[%s11560_s1 + $0x7c] ss:$52 sps:$4 sm:$0xff]   ;;  %v7765_v23 = vld [vmem:[%s11560_s1 + $0xe4] ss:$52 sps:$4 sm:$0xff]   ;;  %v7767_v24 = vld [vmem:[%s11560_s1 + $0xe0] ss:$52 sps:$4 sm:$0xff]  }
   0x9   :  { %1472 = vmatprep.subr.bf16.mxu0 %v7759_v19  ;;  %v7771_v25 = vld [vmem:[%s11560_s1 + $0x14c] ss:$52 sps:$4 sm:$0xff]   ;;  %v7773_v28 = vld [vmem:[%s11560_s1 + $0x148] ss:$52 sps:$4 sm:$0xff]   ;;  %v7779_v32 = vld [vmem:[%s11560_s1 + $0x1b0] ss:$52 sps:$4 sm:$0xff]  }
   0xa   :  { %1420 = vmatprep.mubr.bf16.mxu1 %v8967_v17  ;;  %1502 = vmatprep.mubr.bf16.mxu0 %v8967_v17  ;;  %v7731_v26 = vld [vmem:[%s11560_s1 + $0x340] ss:$52 sps:$4 sm:$0xff]   ;;  %v7734_v30 = vld [vmem:[%s11560_s1 + $0x3a8] ss:$52 sps:$4 sm:$0xff]   ;;  %v7737_v34 = vld [vmem:[%s11560_s1 + $0x410] ss:$52 sps:$4 sm:$0xff]  }
   0xb   :  { %1393 = vmatpush1.bf16.msra.mxu1 %v7713_v5  ;;  %v7732_v27 = vld [vmem:[%s11560_s1 + $0x3ac] ss:$52 sps:$4 sm:$0xff]   ;;  %v7777_v29 = vld [vmem:[%s11560_s1 + $0x1b4] ss:$52 sps:$4 sm:$0xff]   ;;  %v7783_v33 = vld [vmem:[%s11560_s1 + $0x21c] ss:$52 sps:$4 sm:$0xff]  }
   0xc   :  { %1394 = vmatprep.subr.bf16.mxu1 %v7714_v6  ;;  %1473 = vmatpush1.bf16.msra.mxu0 %v7761_v20  ;;  %v7735_v31 = vld [vmem:[%s11560_s1 + $0x414] ss:$52 sps:$4 sm:$0xff]   ;;  %v7738_v35 = vld [vmem:[%s11560_s1 + $0x47c] ss:$52 sps:$4 sm:$0xff]   ;;  %v7785_v36 = vld [vmem:[%s11560_s1 + $0x218] ss:$52 sps:$4 sm:$0xff]  }
   0xd   :  { %1474 = vmatprep.subr.bf16.mxu0 %v7765_v23  ;;  %v7789_v37 = vld [vmem:[%s11560_s1 + $0x284] ss:$52 sps:$4 sm:$0xff]   ;;  %v7791_v40 = vld [vmem:[%s11560_s1 + $0x280] ss:$52 sps:$4 sm:$0xff]   ;;  %v7797_v44 = vld [vmem:[%s11560_s1 + $0x2e8] ss:$52 sps:$4 sm:$0xff]  }
   0xe   :  { %v7740_v38 = vld [vmem:[%s11560_s1 + $0x478] ss:$52 sps:$4 sm:$0xff]   ;;  %v7743_v42 = vld [vmem:[%s11560_s1 + $0x4e0] ss:$52 sps:$4 sm:$0xff]   ;;  %v7746_v46 = vld [vmem:[%s11560_s1 + $0x548] ss:$52 sps:$4 sm:$0xff]  }
   0xf   :  { %1395 = vmatpush1.bf16.msra.mxu1 %v7716_v7  ;;  %v7741_v39 = vld [vmem:[%s11560_s1 + $0x4e4] ss:$52 sps:$4 sm:$0xff]   ;;  %v7795_v41 = vld [vmem:[%s11560_s1 + $0x2ec] ss:$52 sps:$4 sm:$0xff]   ;;  %v7801_v45 = vld [vmem:[%s11560_s1 + $0x354] ss:$52 sps:$4 sm:$0xff]  }
  0x10   :  { %1396 = vmatprep.subr.bf16.mxu1 %v7717_v8  ;;  %1475 = vmatpush1.bf16.msra.mxu0 %v7767_v24  ;;  %v7744_v43 = vld [vmem:[%s11560_s1 + $0x54c] ss:$52 sps:$4 sm:$0xff]   ;;  %v7747_v47 = vld [vmem:[%s11560_s1 + $0x5b4] ss:$52 sps:$4 sm:$0xff]   ;;  %v7803_v48 = vld [vmem:[%s11560_s1 + $0x350] ss:$52 sps:$4 sm:$0xff]  }
  0x11   :  { %1476 = vmatprep.subr.bf16.mxu0 %v7771_v25  ;;  %v7807_v49 = vld [vmem:[%s11560_s1 + $0x3bc] ss:$52 sps:$4 sm:$0xff]   ;;  %v7752_v52 = vld [vmem:[%s11560_s1 + $0x618] ss:$52 sps:$4 sm:$0xff]   ;;  %v35_v55 = vld [vmem:[%s11561_s0] sm:$0xff] }
  0x12   :  { %v7749_v50 = vld [vmem:[%s11560_s1 + $0x5b0] ss:$52 sps:$4 sm:$0xff]   ;;  %v7809_v53 = vld [vmem:[%s11560_s1 + $0x3b8] ss:$52 sps:$4 sm:$0xff]   ;;  %v7815_v57 = vld [vmem:[%s11560_s1 + $0x420] ss:$52 sps:$4 sm:$0xff]   ;;  %v9091_v58 = vpack.c.bf16 %v35_v55, %v35_v55 }
  0x13   :  { %1397 = vmatpush1.bf16.msra.mxu1 %v7719_v9  ;;  %v7750_v51 = vld [vmem:[%s11560_s1 + $0x61c] ss:$52 sps:$4 sm:$0xff]   ;;  %v7813_v54 = vld [vmem:[%s11560_s1 + $0x424] ss:$52 sps:$4 sm:$0xff]   ;;  %v7758_v56 = vld [vmem:[%s11560_s1 + $0xc] ss:$52 sps:$4 sm:$0xff]  }
  0x14   :  { %1398 = vmatprep.subr.bf16.mxu1 %v7720_v10  ;;  %1477 = vmatpush1.bf16.msra.mxu0 %v7773_v28  ;;  %v7819_v59 = vld [vmem:[%s11560_s1 + $0x48c] ss:$52 sps:$4 sm:$0xff]   ;;  %v7756_v60 = vld [vmem:[%s11560_s1 + $0x8] ss:$52 sps:$4 sm:$0xff]   ;;  %v7762_v0 = vld [vmem:[%s11560_s1 + $0x70] ss:$52 sps:$4 sm:$0xff]  }
  0x15   :  { %1478 = vmatprep.subr.bf16.mxu0 %v7777_v29  ;;  %v7764_v61 = vld [vmem:[%s11560_s1 + $0x74] ss:$52 sps:$4 sm:$0xff]   ;;  %v7770_v1 = vld [vmem:[%s11560_s1 + $0xdc] ss:$52 sps:$4 sm:$0xff]   ;;  %v7768_v4 = vld [vmem:[%s11560_s1 + $0xd8] ss:$52 sps:$4 sm:$0xff]  }
  0x16   :  { %v7821_v62 = vld [vmem:[%s11560_s1 + $0x488] ss:$52 sps:$4 sm:$0xff]   ;;  %v7827_v2 = vld [vmem:[%s11560_s1 + $0x4f0] ss:$52 sps:$4 sm:$0xff]   ;;  %v7833_v6 = vld [vmem:[%s11560_s1 + $0x558] ss:$52 sps:$4 sm:$0xff]  }
  0x17   :  { %1399 = vmatpush1.bf16.msra.mxu1 %v7722_v11  ;;  %v7825_v63 = vld [vmem:[%s11560_s1 + $0x4f4] ss:$52 sps:$4 sm:$0xff]   ;;  %v7831_v3 = vld [vmem:[%s11560_s1 + $0x55c] ss:$52 sps:$4 sm:$0xff]   ;;  %v7776_v5 = vld [vmem:[%s11560_s1 + $0x144] ss:$52 sps:$4 sm:$0xff]  }
  0x18   :  { %1400 = vmatprep.subr.bf16.mxu1 %v7723_v12  ;;  %1479 = vmatpush1.bf16.msra.mxu0 %v7779_v32  ;;  %v7837_v7 = vld [vmem:[%s11560_s1 + $0x5c4] ss:$52 sps:$4 sm:$0xff]   ;;  %v7774_v8 = vld [vmem:[%s11560_s1 + $0x140] ss:$52 sps:$4 sm:$0xff]   ;;  %v7780_v12 = vld [vmem:[%s11560_s1 + $0x1a8] ss:$52 sps:$4 sm:$0xff]  }
  0x19   :  { %1480 = vmatprep.subr.bf16.mxu0 %v7783_v33  ;;  %v7782_v9 = vld [vmem:[%s11560_s1 + $0x1ac] ss:$52 sps:$4 sm:$0xff]   ;;  %v7788_v13 = vld [vmem:[%s11560_s1 + $0x214] ss:$52 sps:$4 sm:$0xff]   ;;  %v7851_v15 = vld [vmem:[%s11560_s1 + $0x24] ss:$52 sps:$4 sm:$0xff]  }
  0x1a   :  { %v7839_v10 = vld [vmem:[%s11560_s1 + $0x5c0] ss:$52 sps:$4 sm:$0xff]   ;;  %v7845_v14 = vld [vmem:[%s11560_s1 + $0x628] ss:$52 sps:$4 sm:$0xff]   ;;  %v7875_v32 = vld [vmem:[%s11560_s1 + $0x1c4] ss:$52 sps:$4 sm:$0xff]  }
  0x1b   :  { %1401 = vmatpush1.bf16.msra.mxu1 %v7725_v16  ;;  %v7843_v11 = vld [vmem:[%s11560_s1 + $0x62c] ss:$52 sps:$4 sm:$0xff]   ;;  %v7786_v16 = vld [vmem:[%s11560_s1 + $0x210] ss:$52 sps:$4 sm:$0xff]   ;;  %v7855_v23 = vld [vmem:[%s11560_s1 + $0x88] ss:$52 sps:$4 sm:$0xff]  }
  0x1c   :  { %1402 = vmatprep.subr.bf16.mxu1 %v7726_v18  ;;  %1481 = vmatpush1.bf16.msra.mxu0 %v7785_v36  ;;  %v7794_v18 = vld [vmem:[%s11560_s1 + $0x27c] ss:$52 sps:$4 sm:$0xff]   ;;  %v7849_v19 = vld [vmem:[%s11560_s1 + $0x20] ss:$52 sps:$4 sm:$0xff]  }
  0x1d   :  { %1482 = vmatprep.subr.bf16.mxu0 %v7789_v37  ;;  %v7857_v20 = vld [vmem:[%s11560_s1 + $0x8c] ss:$52 sps:$4 sm:$0xff]   ;;  %v7863_v24 = vld [vmem:[%s11560_s1 + $0xf4] ss:$52 sps:$4 sm:$0xff]   ;;  %v7869_v28 = vld [vmem:[%s11560_s1 + $0x15c] ss:$52 sps:$4 sm:$0xff]  }
  0x1e   :  { %v7798_v25 = vld [vmem:[%s11560_s1 + $0x2e0] ss:$52 sps:$4 sm:$0xff]   ;;  %v7804_v29 = vld [vmem:[%s11560_s1 + $0x348] ss:$52 sps:$4 sm:$0xff]   ;;  %v7810_v33 = vld [vmem:[%s11560_s1 + $0x3b0] ss:$52 sps:$4 sm:$0xff]  }
  0x1f   :  { %1403 = vmatpush1.bf16.msra.mxu1 %v7728_v21  ;;  %v7792_v21 = vld [vmem:[%s11560_s1 + $0x278] ss:$52 sps:$4 sm:$0xff]   ;;  %v7903_v55 = vld [vmem:[%s11560_s1 + $0x3c8] ss:$52 sps:$4 sm:$0xff]  }
  0x20   :  { %1404 = vmatprep.subr.bf16.mxu1 %v7729_v22  ;;  %1483 = vmatpush1.bf16.msra.mxu0 %v7791_v40  ;;  %v7800_v22 = vld [vmem:[%s11560_s1 + $0x2e4] ss:$52 sps:$4 sm:$0xff]   ;;  %v7881_v36 = vld [vmem:[%s11560_s1 + $0x22c] ss:$52 sps:$4 sm:$0xff]   ;;  %v7887_v40 = vld [vmem:[%s11560_s1 + $0x294] ss:$52 sps:$4 sm:$0xff]  }
  0x21   :  { %1484 = vmatprep.subr.bf16.mxu0 %v7795_v41  ;;  %v7816_v37 = vld [vmem:[%s11560_s1 + $0x418] ss:$52 sps:$4 sm:$0xff]   ;;  %v7822_v41 = vld [vmem:[%s11560_s1 + $0x480] ss:$52 sps:$4 sm:$0xff]  }
  0x23   :  { %1405 = vmatpush1.bf16.msra.mxu1 %v7731_v26  ;;  %v7806_v26 = vld [vmem:[%s11560_s1 + $0x34c] ss:$52 sps:$4 sm:$0xff]  }
  0x24   :  { %1406 = vmatprep.subr.bf16.mxu1 %v7732_v27  ;;  %1485 = vmatpush1.bf16.msra.mxu0 %v7797_v44  ;;  %v7861_v27 = vld [vmem:[%s11560_s1 + $0xf0] ss:$52 sps:$4 sm:$0xff]  }
  0x25   :  { %1486 = vmatprep.subr.bf16.mxu0 %v7801_v45  ;;  %v7893_v44 = vld [vmem:[%s11560_s1 + $0x2fc] ss:$52 sps:$4 sm:$0xff]  }
  0x26   :  { %v7828_v45 = vld [vmem:[%s11560_s1 + $0x4e8] ss:$52 sps:$4 sm:$0xff]  }
  0x27   :  { %1407 = vmatpush1.bf16.msra.mxu1 %v7734_v30  ;;  %v7812_v30 = vld [vmem:[%s11560_s1 + $0x3b4] ss:$52 sps:$4 sm:$0xff]  }
  0x28   :  { %1408 = vmatprep.subr.bf16.mxu1 %v7735_v31  ;;  %1487 = vmatpush1.bf16.msra.mxu0 %v7803_v48  ;;  %v7867_v31 = vld [vmem:[%s11560_s1 + $0x158] ss:$52 sps:$4 sm:$0xff]  }
  0x29   :  { %1488 = vmatprep.subr.bf16.mxu0 %v7807_v49  ;;  %v7899_v48 = vld [vmem:[%s11560_s1 + $0x364] ss:$52 sps:$4 sm:$0xff]  }
  0x2a   :  { %v7834_v49 = vld [vmem:[%s11560_s1 + $0x550] ss:$52 sps:$4 sm:$0xff]  }
  0x2b   :  { %1409 = vmatpush1.bf16.msra.mxu1 %v7737_v34  ;;  %v7818_v34 = vld [vmem:[%s11560_s1 + $0x41c] ss:$52 sps:$4 sm:$0xff]  }
  0x2c   :  { %1410 = vmatprep.subr.bf16.mxu1 %v7738_v35  ;;  %1489 = vmatpush1.bf16.msra.mxu0 %v7809_v53  ;;  %v7873_v35 = vld [vmem:[%s11560_s1 + $0x1c0] ss:$52 sps:$4 sm:$0xff]   ;;  %v7840_v53 = vld [vmem:[%s11560_s1 + $0x5b8] ss:$52 sps:$4 sm:$0xff]  }
  0x2d   :  { %1490 = vmatprep.subr.bf16.mxu0 %v7813_v54  ;;  %v7848_v54 = vld [vmem:[%s11560_s1 + $0x624] ss:$52 sps:$4 sm:$0xff]  }
  0x2f   :  { %1411 = vmatpush1.bf16.msra.mxu1 %v7740_v38  ;;  %v7824_v38 = vld [vmem:[%s11560_s1 + $0x484] ss:$52 sps:$4 sm:$0xff]  }
  0x30   :  { %1412 = vmatprep.subr.bf16.mxu1 %v7741_v39  ;;  %1491 = vmatpush1.bf16.msra.mxu0 %v7815_v57  ;;  %v7879_v39 = vld [vmem:[%s11560_s1 + $0x228] ss:$52 sps:$4 sm:$0xff]   ;;  %v7846_v57 = vld [vmem:[%s11560_s1 + $0x620] ss:$52 sps:$4 sm:$0xff]  }
  0x31   :  { %1492 = vmatprep.subr.bf16.mxu0 %v7819_v59  ;;  %v7854_v59 = vld [vmem:[%s11560_s1 + $0x1c] ss:$52 sps:$4 sm:$0xff]  }
  0x33   :  { %1413 = vmatpush1.bf16.msra.mxu1 %v7743_v42  ;;  %v7830_v42 = vld [vmem:[%s11560_s1 + $0x4ec] ss:$52 sps:$4 sm:$0xff]  }
  0x34   :  { %1414 = vmatprep.subr.bf16.mxu1 %v7744_v43  ;;  %1493 = vmatpush1.bf16.msra.mxu0 %v7821_v62  ;;  %v7885_v43 = vld [vmem:[%s11560_s1 + $0x290] ss:$52 sps:$4 sm:$0xff]   ;;  %v7852_v62 = vld [vmem:[%s11560_s1 + $0x18] ss:$52 sps:$4 sm:$0xff]  }
  0x35   :  { %1494 = vmatprep.subr.bf16.mxu0 %v7825_v63  ;;  %v7860_v63 = vld [vmem:[%s11560_s1 + $0x84] ss:$52 sps:$4 sm:$0xff]  }
  0x37   :  { %1415 = vmatpush1.bf16.msra.mxu1 %v7746_v46  ;;  %v7836_v46 = vld [vmem:[%s11560_s1 + $0x554] ss:$52 sps:$4 sm:$0xff]  }
  0x38   :  { %1416 = vmatprep.subr.bf16.mxu1 %v7747_v47  ;;  %1495 = vmatpush1.bf16.msra.mxu0 %v7827_v2  ;;  %v7891_v47 = vld [vmem:[%s11560_s1 + $0x2f8] ss:$52 sps:$4 sm:$0xff]   ;;  %v7858_v2 = vld [vmem:[%s11560_s1 + $0x80] ss:$52 sps:$4 sm:$0xff]  }
  0x39   :  { %1496 = vmatprep.subr.bf16.mxu0 %v7831_v3  ;;  %v7866_v3 = vld [vmem:[%s11560_s1 + $0xec] ss:$52 sps:$4 sm:$0xff]  }
  0x3b   :  { %1417 = vmatpush1.bf16.msra.mxu1 %v7749_v50  ;;  %v7842_v50 = vld [vmem:[%s11560_s1 + $0x5bc] ss:$52 sps:$4 sm:$0xff]  }
  0x3c   :  { %1418 = vmatprep.subr.bf16.mxu1 %v7750_v51  ;;  %1497 = vmatpush1.bf16.msra.mxu0 %v7833_v6  ;;  %v7897_v51 = vld [vmem:[%s11560_s1 + $0x360] ss:$52 sps:$4 sm:$0xff]   ;;  %v7864_v6 = vld [vmem:[%s11560_s1 + $0xe8] ss:$52 sps:$4 sm:$0xff]  }
  0x3d   :  { %1498 = vmatprep.subr.bf16.mxu0 %v7837_v7  ;;  %v7872_v7 = vld [vmem:[%s11560_s1 + $0x154] ss:$52 sps:$4 sm:$0xff]  }
  0x3f   :  { %1419 = vmatpush1.bf16.msra.mxu1 %v7752_v52  ;;  %v7905_v52 = vld [vmem:[%s11560_s1 + $0x3cc] ss:$52 sps:$4 sm:$0xff]  }
  0x40   :  { %1429 = vmatprep.subr.bf16.mxu1 %v7758_v56  ;;  %1499 = vmatpush1.bf16.msra.mxu0 %v7839_v10  ;;  %v7911_v56 = vld [vmem:[%s11560_s1 + $0x434] ss:$52 sps:$4 sm:$0xff]   ;;  %v7870_v10 = vld [vmem:[%s11560_s1 + $0x150] ss:$52 sps:$4 sm:$0xff]  }
  0x41   :  { %1500 = vmatprep.subr.bf16.mxu0 %v7843_v11  ;;  %v7878_v11 = vld [vmem:[%s11560_s1 + $0x1bc] ss:$52 sps:$4 sm:$0xff]  }
  0x42   :  { %1421 = vmatmul.mubr.bf16.vlgmr.msra.gmra.mrb[0].mxu1 %v9091_v58 }
  0x43   :  { %1430 = vmatpush1.bf16.msra.mxu1 %v7756_v60  ;;  %1461 = vmatprep.mubr.bf16.mxu1 %v8967_v17  ;;  %v7909_v60 = vld [vmem:[%s11560_s1 + $0x430] ss:$52 sps:$4 sm:$0xff]  }
  0x44   :  { %1431 = vmatprep.subr.bf16.mxu1 %v7764_v61  ;;  %1501 = vmatpush1.bf16.msra.mxu0 %v7845_v14  ;;  %v7917_v61 = vld [vmem:[%s11560_s1 + $0x49c] ss:$52 sps:$4 sm:$0xff]   ;;  %v7876_v14 = vld [vmem:[%s11560_s1 + $0x1b8] ss:$52 sps:$4 sm:$0xff]  }
  0x45   :  { %1552 = vmatprep.subr.bf16.mxu0 %v7851_v15  ;;  %v7884_v15 = vld [vmem:[%s11560_s1 + $0x224] ss:$52 sps:$4 sm:$0xff]  }
  0x47   :  { %1432 = vmatpush1.bf16.msra.mxu1 %v7762_v0  ;;  %1503 = vmatmul.mubr.bf16.vlgmr.msra.gmra.mrb[0].mxu0 %v9091_v58  ;;  %v7915_v0 = vld [vmem:[%s11560_s1 + $0x498] ss:$52 sps:$4 sm:$0xff]  }
  0x48   :  { %1433 = vmatprep.subr.bf16.mxu1 %v7770_v1  ;;  %1553 = vmatpush1.bf16.msra.mxu0 %v7849_v19  ;;  %v7923_v1 = vld [vmem:[%s11560_s1 + $0x504] ss:$52 sps:$4 sm:$0xff]   ;;  %v7882_v19 = vld [vmem:[%s11560_s1 + $0x220] ss:$52 sps:$4 sm:$0xff]  }
  0x49   :  { %1584 = vmatprep.mubr.bf16.mxu0 %v8967_v17  ;;  %1554 = vmatprep.subr.bf16.mxu0 %v7857_v20  ;;  %v7890_v20 = vld [vmem:[%s11560_s1 + $0x28c] ss:$52 sps:$4 sm:$0xff]  }
  0x4b   :  { %1434 = vmatpush1.bf16.msra.mxu1 %v7768_v4  ;;  %v7921_v4 = vld [vmem:[%s11560_s1 + $0x500] ss:$52 sps:$4 sm:$0xff]  }
  0x4c   :  { %1435 = vmatprep.subr.bf16.mxu1 %v7776_v5  ;;  %1555 = vmatpush1.bf16.msra.mxu0 %v7855_v23  ;;  %v7929_v5 = vld [vmem:[%s11560_s1 + $0x56c] ss:$52 sps:$4 sm:$0xff]   ;;  %v7888_v23 = vld [vmem:[%s11560_s1 + $0x288] ss:$52 sps:$4 sm:$0xff]  }
  0x4d   :  { %1556 = vmatprep.subr.bf16.mxu0 %v7863_v24  ;;  %v7896_v24 = vld [vmem:[%s11560_s1 + $0x2f4] ss:$52 sps:$4 sm:$0xff]  }
  0x4f   :  { %1436 = vmatpush1.bf16.msra.mxu1 %v7774_v8  ;;  %v7927_v8 = vld [vmem:[%s11560_s1 + $0x568] ss:$52 sps:$4 sm:$0xff]  }
  0x50   :  { %1437 = vmatprep.subr.bf16.mxu1 %v7782_v9  ;;  %1557 = vmatpush1.bf16.msra.mxu0 %v7861_v27  ;;  %v7935_v9 = vld [vmem:[%s11560_s1 + $0x5d4] ss:$52 sps:$4 sm:$0xff]   ;;  %v7894_v27 = vld [vmem:[%s11560_s1 + $0x2f0] ss:$52 sps:$4 sm:$0xff]  }
  0x51   :  { %1558 = vmatprep.subr.bf16.mxu0 %v7869_v28  ;;  %v7902_v28 = vld [vmem:[%s11560_s1 + $0x35c] ss:$52 sps:$4 sm:$0xff]  }
  0x53   :  { %1438 = vmatpush1.bf16.msra.mxu1 %v7780_v12  ;;  %v7933_v12 = vld [vmem:[%s11560_s1 + $0x5d0] ss:$52 sps:$4 sm:$0xff]  }
  0x54   :  { %1439 = vmatprep.subr.bf16.mxu1 %v7788_v13  ;;  %1559 = vmatpush1.bf16.msra.mxu0 %v7867_v31  ;;  %v7941_v13 = vld [vmem:[%s11560_s1 + $0x63c] ss:$52 sps:$4 sm:$0xff]   ;;  %v7900_v31 = vld [vmem:[%s11560_s1 + $0x358] ss:$52 sps:$4 sm:$0xff]  }
  0x55   :  { %1560 = vmatprep.subr.bf16.mxu0 %v7875_v32  ;;  %v7908_v32 = vld [vmem:[%s11560_s1 + $0x3c4] ss:$52 sps:$4 sm:$0xff]  }
  0x57   :  { %1440 = vmatpush1.bf16.msra.mxu1 %v7786_v16  ;;  %v7939_v16 = vld [vmem:[%s11560_s1 + $0x638] ss:$52 sps:$4 sm:$0xff]  }
  0x58   :  { %1441 = vmatprep.subr.bf16.mxu1 %v7794_v18  ;;  %1561 = vmatpush1.bf16.msra.mxu0 %v7873_v35  ;;  %v7945_v18 = vld [vmem:[%s11560_s1 + $0x370] ss:$52 sps:$4 sm:$0xff]   ;;  %v7906_v35 = vld [vmem:[%s11560_s1 + $0x3c0] ss:$52 sps:$4 sm:$0xff]  }
  0x59   :  { %1562 = vmatprep.subr.bf16.mxu0 %v7881_v36  ;;  %v7914_v36 = vld [vmem:[%s11560_s1 + $0x42c] ss:$52 sps:$4 sm:$0xff]  }
  0x5b   :  { %1442 = vmatpush1.bf16.msra.mxu1 %v7792_v21  ;;  %v7946_v21 = vld [vmem:[%s11560_s1 + $0x30] ss:$52 sps:$4 sm:$0xff]  }
  0x5c   :  { %1443 = vmatprep.subr.bf16.mxu1 %v7800_v22  ;;  %1563 = vmatpush1.bf16.msra.mxu0 %v7879_v39  ;;  %v7950_v22 = vld [vmem:[%s11560_s1 + $0x3d8] ss:$52 sps:$4 sm:$0xff]   ;;  %v7912_v39 = vld [vmem:[%s11560_s1 + $0x428] ss:$52 sps:$4 sm:$0xff]  }
  0x5d   :  { %1564 = vmatprep.subr.bf16.mxu0 %v7887_v40  ;;  %v7920_v40 = vld [vmem:[%s11560_s1 + $0x494] ss:$52 sps:$4 sm:$0xff]  }
  0x5f   :  { %1444 = vmatpush1.bf16.msra.mxu1 %v7798_v25  ;;  %v7951_v25 = vld [vmem:[%s11560_s1 + $0x98] ss:$52 sps:$4 sm:$0xff]  }
  0x60   :  { %1445 = vmatprep.subr.bf16.mxu1 %v7806_v26  ;;  %1565 = vmatpush1.bf16.msra.mxu0 %v7885_v43  ;;  %v7955_v26 = vld [vmem:[%s11560_s1 + $0x440] ss:$52 sps:$4 sm:$0xff]   ;;  %v7918_v43 = vld [vmem:[%s11560_s1 + $0x490] ss:$52 sps:$4 sm:$0xff]  }
  0x61   :  { %1566 = vmatprep.subr.bf16.mxu0 %v7893_v44  ;;  %v7926_v44 = vld [vmem:[%s11560_s1 + $0x4fc] ss:$52 sps:$4 sm:$0xff]  }
  0x63   :  { %1446 = vmatpush1.bf16.msra.mxu1 %v7804_v29  ;;  %v7956_v29 = vld [vmem:[%s11560_s1 + $0x100] ss:$52 sps:$4 sm:$0xff]  }
  0x64   :  { %1447 = vmatprep.subr.bf16.mxu1 %v7812_v30  ;;  %1567 = vmatpush1.bf16.msra.mxu0 %v7891_v47  ;;  %v7960_v30 = vld [vmem:[%s11560_s1 + $0x4a8] ss:$52 sps:$4 sm:$0xff]   ;;  %v7924_v47 = vld [vmem:[%s11560_s1 + $0x4f8] ss:$52 sps:$4 sm:$0xff]  }
  0x65   :  { %1568 = vmatprep.subr.bf16.mxu0 %v7899_v48  ;;  %v7932_v48 = vld [vmem:[%s11560_s1 + $0x564] ss:$52 sps:$4 sm:$0xff]  }
  0x67   :  { %1448 = vmatpush1.bf16.msra.mxu1 %v7810_v33  ;;  %v7961_v33 = vld [vmem:[%s11560_s1 + $0x168] ss:$52 sps:$4 sm:$0xff]  }
  0x68   :  { %1449 = vmatprep.subr.bf16.mxu1 %v7818_v34  ;;  %1569 = vmatpush1.bf16.msra.mxu0 %v7897_v51  ;;  %v7965_v34 = vld [vmem:[%s11560_s1 + $0x510] ss:$52 sps:$4 sm:$0xff]   ;;  %v7930_v51 = vld [vmem:[%s11560_s1 + $0x560] ss:$52 sps:$4 sm:$0xff]  }
  0x69   :  { %1570 = vmatprep.subr.bf16.mxu0 %v7905_v52  ;;  %v7938_v52 = vld [vmem:[%s11560_s1 + $0x5cc] ss:$52 sps:$4 sm:$0xff]  }
  0x6b   :  { %1450 = vmatpush1.bf16.msra.mxu1 %v7816_v37  ;;  %v7966_v37 = vld [vmem:[%s11560_s1 + $0x1d0] ss:$52 sps:$4 sm:$0xff]  }
  0x6c   :  { %1451 = vmatprep.subr.bf16.mxu1 %v7824_v38  ;;  %1571 = vmatpush1.bf16.msra.mxu0 %v7903_v55  ;;  %v7970_v38 = vld [vmem:[%s11560_s1 + $0x578] ss:$52 sps:$4 sm:$0xff]   ;;  %v7936_v55 = vld [vmem:[%s11560_s1 + $0x5c8] ss:$52 sps:$4 sm:$0xff]  }
  0x6d   :  { %1572 = vmatprep.subr.bf16.mxu0 %v7911_v56  ;;  %v7944_v56 = vld [vmem:[%s11560_s1 + $0x634] ss:$52 sps:$4 sm:$0xff]  }
  0x6f   :  { %1452 = vmatpush1.bf16.msra.mxu1 %v7822_v41  ;;  %v7971_v41 = vld [vmem:[%s11560_s1 + $0x238] ss:$52 sps:$4 sm:$0xff]  }
  0x70   :  { %1453 = vmatprep.subr.bf16.mxu1 %v7830_v42  ;;  %1573 = vmatpush1.bf16.msra.mxu0 %v7909_v60  ;;  %v7975_v42 = vld [vmem:[%s11560_s1 + $0x5e0] ss:$52 sps:$4 sm:$0xff]   ;;  %v7942_v60 = vld [vmem:[%s11560_s1 + $0x630] ss:$52 sps:$4 sm:$0xff]  }
  0x71   :  { %1574 = vmatprep.subr.bf16.mxu0 %v7917_v61  ;;  %v7949_v61 = vld [vmem:[%s11560_s1 + $0x2c] ss:$52 sps:$4 sm:$0xff]  }
  0x73   :  { %1454 = vmatpush1.bf16.msra.mxu1 %v7828_v45  ;;  %v7976_v45 = vld [vmem:[%s11560_s1 + $0x2a0] ss:$52 sps:$4 sm:$0xff]  }
  0x74   :  { %1455 = vmatprep.subr.bf16.mxu1 %v7836_v46  ;;  %1575 = vmatpush1.bf16.msra.mxu0 %v7915_v0  ;;  %v7980_v46 = vld [vmem:[%s11560_s1 + $0x648] ss:$52 sps:$4 sm:$0xff]  }
  0x75   :  { %1576 = vmatprep.subr.bf16.mxu0 %v7923_v1  ;;  %v7947_v0 = vld [vmem:[%s11560_s1 + $0x28] ss:$52 sps:$4 sm:$0xff]  }
  0x76   :  { %v7954_v1 = vld [vmem:[%s11560_s1 + $0x94] ss:$52 sps:$4 sm:$0xff]  }
  0x77   :  { %1456 = vmatpush1.bf16.msra.mxu1 %v7834_v49  ;;  %v7981_v49 = vld [vmem:[%s11560_s1 + $0x308] ss:$52 sps:$4 sm:$0xff]  }
  0x78   :  { %1457 = vmatprep.subr.bf16.mxu1 %v7842_v50  ;;  %1577 = vmatpush1.bf16.msra.mxu0 %v7921_v4  ;;  %v7987_v50 = vld [vmem:[%s11562_s3 + $0xc] ss:$20 sps:$4 sm:$0xff]   ;;  %v7952_v4 = vld [vmem:[%s11560_s1 + $0x90] ss:$52 sps:$4 sm:$0xff]  }
  0x79   :  { %1578 = vmatprep.subr.bf16.mxu0 %v7929_v5  ;;  %v7959_v5 = vld [vmem:[%s11560_s1 + $0xfc] ss:$52 sps:$4 sm:$0xff]  }
  0x7b   :  { %1458 = vmatpush1.bf16.msra.mxu1 %v7840_v53  ;;  %v7985_v53 = vld [vmem:[%s11562_s3 + $0x8] ss:$20 sps:$4 sm:$0xff]  }
  0x7c   :  { %1459 = vmatprep.subr.bf16.mxu1 %v7848_v54  ;;  %1579 = vmatpush1.bf16.msra.mxu0 %v7927_v8  ;;  %v7993_v54 = vld [vmem:[%s11562_s3 + $0x34] ss:$20 sps:$4 sm:$0xff]   ;;  %v7964_v8 = vld [vmem:[%s11560_s1 + $0x164] ss:$52 sps:$4 sm:$0xff]  }
  0x7d   :  { %1580 = vmatprep.subr.bf16.mxu0 %v7935_v9  ;;  %v8015_v9 = vld [vmem:[%s11562_s3 + $0xd0] ss:$20 sps:$4 sm:$0xff]  }
  0x7f   :  { %1460 = vmatpush1.bf16.msra.mxu1 %v7846_v57  ;;  %v7991_v57 = vld [vmem:[%s11562_s3 + $0x30] ss:$20 sps:$4 sm:$0xff]  }
  0x80   :  { %1511 = vmatprep.subr.bf16.mxu1 %v7854_v59  ;;  %1581 = vmatpush1.bf16.msra.mxu0 %v7933_v12  ;;  %v7999_v59 = vld [vmem:[%s11562_s3 + $0x5c] ss:$20 sps:$4 sm:$0xff]   ;;  %v7969_v12 = vld [vmem:[%s11560_s1 + $0x1cc] ss:$52 sps:$4 sm:$0xff]  }
  0x81   :  { %1582 = vmatprep.subr.bf16.mxu0 %v7941_v13  ;;  %v8021_v13 = vld [vmem:[%s11562_s3 + $0xf8] ss:$20 sps:$4 sm:$0xff]  }
  0x82   :  { %1462 = vmatmul.mubr.bf16.vlgmr.msra.gmra.mrb[4].mxu1 %v9091_v58 }
  0x83   :  { %1512 = vmatpush1.bf16.msra.mxu1 %v7852_v62  ;;  %1543 = vmatprep.mubr.bf16.mxu1 %v8967_v17  ;;  %v7997_v62 = vld [vmem:[%s11562_s3 + $0x58] ss:$20 sps:$4 sm:$0xff]  }
  0x84   :  { %1513 = vmatprep.subr.bf16.mxu1 %v7860_v63  ;;  %1583 = vmatpush1.bf16.msra.mxu0 %v7939_v16  ;;  %v8005_v63 = vld [vmem:[%s11562_s3 + $0x84] ss:$20 sps:$4 sm:$0xff]   ;;  %v7974_v16 = vld [vmem:[%s11560_s1 + $0x234] ss:$52 sps:$4 sm:$0xff]  }
  0x85   :  { %7455 = vmatprep.subr.bf16.mxu0 %v7945_v18  ;;  %v8027_v18 = vld [vmem:[%s11562_s3 + $0x120] ss:$20 sps:$4 sm:$0xff]  }
  0x87   :  { %1514 = vmatpush1.bf16.msra.mxu1 %v7858_v2  ;;  %1585 = vmatmul.mubr.bf16.vlgmr.msra.gmra.mrb[4].mxu0 %v9091_v58  ;;  %v8003_v2 = vld [vmem:[%s11562_s3 + $0x80] ss:$20 sps:$4 sm:$0xff]  }
  0x88   :  { %1515 = vmatprep.subr.bf16.mxu1 %v7866_v3  ;;  %7456 = vmatpush3.bf16.msra.mxu0 %v7946_v21  ;;  %v8011_v3 = vld [vmem:[%s11562_s3 + $0xac] ss:$20 sps:$4 sm:$0xff]   ;;  %v7979_v21 = vld [vmem:[%s11560_s1 + $0x29c] ss:$52 sps:$4 sm:$0xff]  }
  0x89   :  { %1666 = vmatprep.mubr.bf16.mxu0 %v8967_v17  ;;  %7457 = vmatprep.subr.bf16.mxu0 %v7950_v22  ;;  %v8033_v22 = vld [vmem:[%s11562_s3 + $0x148] ss:$20 sps:$4 sm:$0xff]  }
  0x8b   :  { %1516 = vmatpush1.bf16.msra.mxu1 %v7864_v6  ;;  %v8009_v6 = vld [vmem:[%s11562_s3 + $0xa8] ss:$20 sps:$4 sm:$0xff]  }
  0x8c   :  { %1517 = vmatprep.subr.bf16.mxu1 %v7872_v7  ;;  %7458 = vmatpush3.bf16.msra.mxu0 %v7951_v25  ;;  %v8017_v7 = vld [vmem:[%s11562_s3 + $0xd4] ss:$20 sps:$4 sm:$0xff]   ;;  %v7984_v25 = vld [vmem:[%s11560_s1 + $0x304] ss:$52 sps:$4 sm:$0xff]  }
  0x8d   :  { %7459 = vmatprep.subr.bf16.mxu0 %v7955_v26  ;;  %v8039_v26 = vld [vmem:[%s11562_s3 + $0x170] ss:$20 sps:$4 sm:$0xff]  }
  0x8f   :  { %1518 = vmatpush1.bf16.msra.mxu1 %v7870_v10  ;;  %v8023_v10 = vld [vmem:[%s11562_s3 + $0xfc] ss:$20 sps:$4 sm:$0xff]  }
  0x90   :  { %1519 = vmatprep.subr.bf16.mxu1 %v7878_v11  ;;  %7460 = vmatpush3.bf16.msra.mxu0 %v7956_v29  ;;  %v7962_v11 = vld [vmem:[%s11560_s1 + $0x160] ss:$52 sps:$4 sm:$0xff]  }
  0x91   :  { %7461 = vmatprep.subr.bf16.mxu0 %v7960_v30  ;;  %v7990_v29 = vld [vmem:[%s11560_s1 + $0x36c] ss:$52 sps:$4 sm:$0xff]  }
  0x92   :  { %v8045_v30 = vld [vmem:[%s11562_s3 + $0x198] ss:$20 sps:$4 sm:$0xff]  }
  0x93   :  { %1520 = vmatpush1.bf16.msra.mxu1 %v7876_v14  ;;  %v8029_v14 = vld [vmem:[%s11562_s3 + $0x124] ss:$20 sps:$4 sm:$0xff]  }
  0x94   :  { %1521 = vmatprep.subr.bf16.mxu1 %v7884_v15  ;;  %7462 = vmatpush3.bf16.msra.mxu0 %v7961_v33  ;;  %v7967_v15 = vld [vmem:[%s11560_s1 + $0x1c8] ss:$52 sps:$4 sm:$0xff]  }
  0x95   :  { %7463 = vmatprep.subr.bf16.mxu0 %v7965_v34  ;;  %v7996_v33 = vld [vmem:[%s11560_s1 + $0x3d4] ss:$52 sps:$4 sm:$0xff]  }
  0x96   :  { %v8051_v34 = vld [vmem:[%s11562_s3 + $0x1c0] ss:$20 sps:$4 sm:$0xff]  }
  0x97   :  { %1522 = vmatpush1.bf16.msra.mxu1 %v7882_v19  ;;  %v8035_v19 = vld [vmem:[%s11562_s3 + $0x14c] ss:$20 sps:$4 sm:$0xff]  }
  0x98   :  { %1523 = vmatprep.subr.bf16.mxu1 %v7890_v20  ;;  %7464 = vmatpush3.bf16.msra.mxu0 %v7966_v37  ;;  %v7972_v20 = vld [vmem:[%s11560_s1 + $0x230] ss:$52 sps:$4 sm:$0xff]  }
  0x99   :  { %7465 = vmatprep.subr.bf16.mxu0 %v7970_v38  ;;  %v8002_v37 = vld [vmem:[%s11560_s1 + $0x43c] ss:$52 sps:$4 sm:$0xff]  }
  0x9a   :  { %v8057_v38 = vld [vmem:[%s11562_s3 + $0x1e8] ss:$20 sps:$4 sm:$0xff]  }
  0x9b   :  { %1524 = vmatpush1.bf16.msra.mxu1 %v7888_v23  ;;  %v8041_v23 = vld [vmem:[%s11562_s3 + $0x174] ss:$20 sps:$4 sm:$0xff]  }
  0x9c   :  { %1525 = vmatprep.subr.bf16.mxu1 %v7896_v24  ;;  %7466 = vmatpush3.bf16.msra.mxu0 %v7971_v41  ;;  %v7977_v24 = vld [vmem:[%s11560_s1 + $0x298] ss:$52 sps:$4 sm:$0xff]  }
  0x9d   :  { %7467 = vmatprep.subr.bf16.mxu0 %v7975_v42  ;;  %v8008_v41 = vld [vmem:[%s11560_s1 + $0x4a4] ss:$52 sps:$4 sm:$0xff]  }
  0x9e   :  { %v8063_v42 = vld [vmem:[%s11562_s3 + $0x210] ss:$20 sps:$4 sm:$0xff]  }
  0x9f   :  { %1526 = vmatpush1.bf16.msra.mxu1 %v7894_v27  ;;  %v8047_v27 = vld [vmem:[%s11562_s3 + $0x19c] ss:$20 sps:$4 sm:$0xff]  }
  0xa0   :  { %1527 = vmatprep.subr.bf16.mxu1 %v7902_v28  ;;  %7468 = vmatpush3.bf16.msra.mxu0 %v7976_v45  ;;  %v7982_v28 = vld [vmem:[%s11560_s1 + $0x300] ss:$52 sps:$4 sm:$0xff]  }
  0xa1   :  { %7469 = vmatprep.subr.bf16.mxu0 %v7980_v46  ;;  %v8014_v45 = vld [vmem:[%s11560_s1 + $0x50c] ss:$52 sps:$4 sm:$0xff]  }
  0xa2   :  { %v8069_v46 = vld [vmem:[%s11562_s3 + $0x238] ss:$20 sps:$4 sm:$0xff]  }
  0xa3   :  { %1528 = vmatpush1.bf16.msra.mxu1 %v7900_v31  ;;  %v7988_v31 = vld [vmem:[%s11560_s1 + $0x368] ss:$52 sps:$4 sm:$0xff]  }
  0xa4   :  { %1529 = vmatprep.subr.bf16.mxu1 %v7908_v32  ;;  %7470 = vmatpush3.bf16.msra.mxu0 %v7981_v49  ;;  %v8053_v32 = vld [vmem:[%s11562_s3 + $0x1c4] ss:$20 sps:$4 sm:$0xff]   ;;  %v8020_v49 = vld [vmem:[%s11560_s1 + $0x574] ss:$52 sps:$4 sm:$0xff]  }
  0xa5   :  { %5355 = vmatprep.subr.bf16.mxu0 %v7987_v50  ;;  %v8075_v50 = vld [vmem:[%s11562_s3 + $0x260] ss:$20 sps:$4 sm:$0xff]  }
  0xa7   :  { %1530 = vmatpush1.bf16.msra.mxu1 %v7906_v35  ;;  %1667 = vmatmul.mubr.bf16.vlgmr.msra.gmra.mrb[8].mxu0 %v9091_v58  ;;  %v7994_v35 = vld [vmem:[%s11560_s1 + $0x3d0] ss:$52 sps:$4 sm:$0xff]  }
  0xa8   :  { %1531 = vmatprep.subr.bf16.mxu1 %v7914_v36  ;;  %5356 = vmatpush1.bf16.msra.mxu0 %v7985_v53  ;;  %v8059_v36 = vld [vmem:[%s11562_s3 + $0x1ec] ss:$20 sps:$4 sm:$0xff]   ;;  %v8026_v53 = vld [vmem:[%s11560_s1 + $0x5dc] ss:$52 sps:$4 sm:$0xff]  }
  0xa9   :  { %5357 = vmatprep.subr.bf16.mxu0 %v7993_v54  ;;  %v8024_v54 = vld [vmem:[%s11560_s1 + $0x5d8] ss:$52 sps:$4 sm:$0xff]  }
  0xab   :  { %1532 = vmatpush1.bf16.msra.mxu1 %v7912_v39  ;;  %v8000_v39 = vld [vmem:[%s11560_s1 + $0x438] ss:$52 sps:$4 sm:$0xff]  }
  0xac   :  { %1533 = vmatprep.subr.bf16.mxu1 %v7920_v40  ;;  %5358 = vmatpush1.bf16.msra.mxu0 %v7991_v57  ;;  %v8065_v40 = vld [vmem:[%s11562_s3 + $0x214] ss:$20 sps:$4 sm:$0xff]   ;;  %v8038_v57 = vld [vmem:[%s11562_s3 + $0x4] ss:$20 sps:$4 sm:$0xff]  }
  0xad   :  { %5359 = vmatprep.subr.bf16.mxu0 %v7999_v59  ;;  %v8036_v59 = vld [vmem:[%s11562_s3] ss:$20 sps:$4 sm:$0xff]  }
  0xaf   :  { %1534 = vmatpush1.bf16.msra.mxu1 %v7918_v43  ;;  %v8006_v43 = vld [vmem:[%s11560_s1 + $0x4a0] ss:$52 sps:$4 sm:$0xff]  }
  0xb0   :  { %1535 = vmatprep.subr.bf16.mxu1 %v7926_v44  ;;  %5360 = vmatpush1.bf16.msra.mxu0 %v7997_v62  ;;  %v8071_v44 = vld [vmem:[%s11562_s3 + $0x23c] ss:$20 sps:$4 sm:$0xff]   ;;  %v8050_v62 = vld [vmem:[%s11562_s3 + $0x54] ss:$20 sps:$4 sm:$0xff]  }
  0xb1   :  { %5361 = vmatprep.subr.bf16.mxu0 %v8005_v63  ;;  %v267_v63 = vlaneseq }
  0xb3   :  { %1536 = vmatpush1.bf16.msra.mxu1 %v7924_v47  ;;  %v8012_v47 = vld [vmem:[%s11560_s1 + $0x508] ss:$52 sps:$4 sm:$0xff]  }
  0xb4   :  { %1537 = vmatprep.subr.bf16.mxu1 %v7932_v48  ;;  %5362 = vmatpush1.bf16.msra.mxu0 %v8003_v2  ;;  %v8077_v48 = vld [vmem:[%s11562_s3 + $0x264] ss:$20 sps:$4 sm:$0xff]  }
  0xb5   :  { %5363 = vmatprep.subr.bf16.mxu0 %v8011_v3  ;;  %v8054_v2 = vld [vmem:[%s11562_s3 + $0x78] ss:$20 sps:$4 sm:$0xff]  }
  0xb6   :  { %v8062_v3 = vld [vmem:[%s11562_s3 + $0xa4] ss:$20 sps:$4 sm:$0xff]  }
  0xb7   :  { %1538 = vmatpush1.bf16.msra.mxu1 %v7930_v51  ;;  %v8083_v51 = vld [vmem:[%s11562_s3 + $0x28c] ss:$20 sps:$4 sm:$0xff]  }
  0xb8   :  { %1539 = vmatprep.subr.bf16.mxu1 %v7938_v52  ;;  %5364 = vmatpush1.bf16.msra.mxu0 %v8009_v6  ;;  %v8018_v52 = vld [vmem:[%s11560_s1 + $0x570] ss:$52 sps:$4 sm:$0xff]  }
  0xb9   :  { %5365 = vmatprep.subr.bf16.mxu0 %v8017_v7  ;;  %v9701_v6 = vld [vmem:[%s11563_s2] sm:$0xff] }
  0xbb   :  { %1540 = vmatpush1.bf16.msra.mxu1 %v7936_v55  ;;  %v8032_v55 = vld [vmem:[%s11560_s1 + $0x644] ss:$52 sps:$4 sm:$0xff]  }
  0xbc   :  { %1541 = vmatprep.subr.bf16.mxu1 %v7944_v56  ;;  %5366 = vmatpush1.bf16.msra.mxu0 %v8015_v9  ;;  %v8030_v56 = vld [vmem:[%s11560_s1 + $0x640] ss:$52 sps:$4 sm:$0xff]  }
  0xbd   :  { %5367 = vmatprep.subr.bf16.mxu0 %v8023_v10  ;;  %v8066_v10 = vld [vmem:[%s11562_s3 + $0xc8] ss:$20 sps:$4 sm:$0xff]  }
  0xbf   :  { %1542 = vmatpush1.bf16.msra.mxu1 %v7942_v60  ;;  %v8044_v60 = vld [vmem:[%s11562_s3 + $0x2c] ss:$20 sps:$4 sm:$0xff]  }
  0xc0   :  { %1593 = vmatprep.subr.bf16.mxu1 %v7949_v61  ;;  %5368 = vmatpush1.bf16.msra.mxu0 %v8021_v13  ;;  %v8042_v61 = vld [vmem:[%s11562_s3 + $0x28] ss:$20 sps:$4 sm:$0xff]  }
  0xc1   :  { %5369 = vmatprep.subr.bf16.mxu0 %v8029_v14 }
  0xc2   :  { %1544 = vmatmul.mubr.bf16.vlgmr.msra.gmra.mrb[8].mxu1 %v9091_v58 }
  0xc3   :  { %1594 = vmatpush1.bf16.msra.mxu1 %v7947_v0  ;;  %1625 = vmatprep.mubr.bf16.mxu1 %v8967_v17  ;;  %v7957_v17 = vld [vmem:[%s11560_s1 + $0xf8] ss:$52 sps:$4 sm:$0xff]   ;;  %v8048_v0 = vld [vmem:[%s11562_s3 + $0x50] ss:$20 sps:$4 sm:$0xff]  }
  0xc4   :  { %1595 = vmatprep.subr.bf16.mxu1 %v7954_v1  ;;  %5370 = vmatpush1.bf16.msra.mxu0 %v8027_v18  ;;  %v9684_v1 = vshrl.u32 %v267_v63, 7  ;;  %v8072_v18 = vld [vmem:[%s11562_s3 + $0xf0] ss:$20 sps:$4 sm:$0xff]   ;;  %v8126_v63 = vld [vmem:[%s11562_s3 + $0x258] ss:$20 sps:$4 sm:$0xff]  }
  0xc5   :  { %5371 = vmatprep.subr.bf16.mxu0 %v8035_v19 }
  0xc6   :  { %v9704_v7 = vsub.s32 1, %v9684_v1 }
  0xc7   :  { %1596 = vmatpush1.bf16.msra.mxu1 %v7952_v4  ;;  %v8060_v4 = vld [vmem:[%s11562_s3 + $0xa0] ss:$20 sps:$4 sm:$0xff]  }
  0xc8   :  { %1597 = vmatprep.subr.bf16.mxu1 %v7959_v5  ;;  %5372 = vmatpush1.bf16.msra.mxu0 %v8033_v22  ;;  %v9696_v5 = vsub.s32 0, %v9684_v1  ;;  %v274_v9 = vrot.slane %v9701_v6, %v9704_v7 }
  0xc9   :  { %5373 = vmatprep.subr.bf16.mxu0 %v8041_v23 }
  0xcb   :  { %1598 = vmatpush1.bf16.msra.mxu1 %v7957_v17  ;;  %v8068_v17 = vld [vmem:[%s11562_s3 + $0xcc] ss:$20 sps:$4 sm:$0xff]  }
  0xcc   :  { %1599 = vmatprep.subr.bf16.mxu1 %v7964_v8  ;;  %5374 = vmatpush1.bf16.msra.mxu0 %v8039_v26  ;;  %v270_v8 = vrot.slane %v9701_v6, %v9696_v5  ;;  %v8086_v26 = vld [vmem:[%s11562_s3 + $0x144] ss:$20 sps:$4 sm:$0xff]  }
  0xcd   :  { %5375 = vmatprep.subr.bf16.mxu0 %v8047_v27 }
  0xcf   :  { %1600 = vmatpush1.bf16.msra.mxu1 %v7962_v11  ;;  %v8074_v11 = vld [vmem:[%s11562_s3 + $0xf4] ss:$20 sps:$4 sm:$0xff]  }
  0xd0   :  { %1601 = vmatprep.subr.bf16.mxu1 %v7969_v12  ;;  %5376 = vmatpush1.bf16.msra.mxu0 %v8045_v30 }
  0xd1   :  { %5377 = vmatprep.subr.bf16.mxu0 %v8053_v32  ;;  %v8092_v32 = vld [vmem:[%s11562_s3 + $0x16c] ss:$20 sps:$4 sm:$0xff]  }
  0xd3   :  { %1602 = vmatpush1.bf16.msra.mxu1 %v7967_v15 }
  0xd4   :  { %1603 = vmatprep.subr.bf16.mxu1 %v7974_v16  ;;  %5378 = vmatpush1.bf16.msra.mxu0 %v8051_v34  ;;  %v8090_v34 = vld [vmem:[%s11562_s3 + $0x168] ss:$20 sps:$4 sm:$0xff]  }
  0xd5   :  { %5379 = vmatprep.subr.bf16.mxu0 %v8059_v36  ;;  %v8098_v36 = vld [vmem:[%s11562_s3 + $0x194] ss:$20 sps:$4 sm:$0xff]  }
  0xd7   :  { %1604 = vmatpush1.bf16.msra.mxu1 %v7972_v20 }
  0xd8   :  { %1605 = vmatprep.subr.bf16.mxu1 %v7979_v21  ;;  %5380 = vmatpush1.bf16.msra.mxu0 %v8057_v38  ;;  %v8080_v21 = vld [vmem:[%s11562_s3 + $0x11c] ss:$20 sps:$4 sm:$0xff]  }
  0xd9   :  { %5381 = vmatprep.subr.bf16.mxu0 %v8065_v40  ;;  %v8096_v38 = vld [vmem:[%s11562_s3 + $0x190] ss:$20 sps:$4 sm:$0xff]  }
  0xda   :  { %v8104_v40 = vld [vmem:[%s11562_s3 + $0x1bc] ss:$20 sps:$4 sm:$0xff]  }
  0xdb   :  { %1606 = vmatpush1.bf16.msra.mxu1 %v7977_v24 }
  0xdc   :  { %1607 = vmatprep.subr.bf16.mxu1 %v7984_v25  ;;  %5382 = vmatpush1.bf16.msra.mxu0 %v8063_v42  ;;  %v8078_v25 = vld [vmem:[%s11562_s3 + $0x118] ss:$20 sps:$4 sm:$0xff]  }
  0xdd   :  { %5383 = vmatprep.subr.bf16.mxu0 %v8071_v44  ;;  %v8102_v42 = vld [vmem:[%s11562_s3 + $0x1b8] ss:$20 sps:$4 sm:$0xff]  }
  0xde   :  { %v8110_v44 = vld [vmem:[%s11562_s3 + $0x1e4] ss:$20 sps:$4 sm:$0xff]  }
  0xdf   :  { %1608 = vmatpush1.bf16.msra.mxu1 %v7982_v28  ;;  %v8081_v28 = vld [vmem:[%s11562_s3 + $0x288] ss:$20 sps:$4 sm:$0xff]  }
  0xe0   :  { %1609 = vmatprep.subr.bf16.mxu1 %v7990_v29  ;;  %5384 = vmatpush1.bf16.msra.mxu0 %v8069_v46  ;;  %v8084_v29 = vld [vmem:[%s11562_s3 + $0x140] ss:$20 sps:$4 sm:$0xff]  }
  0xe1   :  { %5385 = vmatprep.subr.bf16.mxu0 %v8077_v48  ;;  %v8105_v48 = vld [vmem:[%s11562_s3 + $0x328] ss:$20 sps:$4 sm:$0xff]  }
  0xe3   :  { %1610 = vmatpush1.bf16.msra.mxu1 %v7988_v31  ;;  %v8089_v31 = vld [vmem:[%s11562_s3 + $0x2b4] ss:$20 sps:$4 sm:$0xff]  }
  0xe4   :  { %1611 = vmatprep.subr.bf16.mxu1 %v7996_v33  ;;  %5386 = vmatpush1.bf16.msra.mxu0 %v8075_v50  ;;  %v8087_v33 = vld [vmem:[%s11562_s3 + $0x2b0] ss:$20 sps:$4 sm:$0xff]   ;;  %v8108_v50 = vld [vmem:[%s11562_s3 + $0x1e0] ss:$20 sps:$4 sm:$0xff]  }
  0xe5   :  { %5396 = vmatprep.subr.bf16.mxu0 %v8083_v51  ;;  %v8113_v51 = vld [vmem:[%s11562_s3 + $0x354] ss:$20 sps:$4 sm:$0xff]  }
  0xe7   :  { %1612 = vmatpush1.bf16.msra.mxu1 %v7994_v35  ;;  %v8095_v35 = vld [vmem:[%s11562_s3 + $0x2dc] ss:$20 sps:$4 sm:$0xff]  }
  0xe8   :  { %1613 = vmatprep.subr.bf16.mxu1 %v8002_v37  ;;  %v8093_v37 = vld [vmem:[%s11562_s3 + $0x2d8] ss:$20 sps:$4 sm:$0xff]  }
  0xeb   :  { %1614 = vmatpush1.bf16.msra.mxu1 %v8000_v39  ;;  %v8101_v39 = vld [vmem:[%s11562_s3 + $0x304] ss:$20 sps:$4 sm:$0xff]  }
  0xec   :  { %1615 = vmatprep.subr.bf16.mxu1 %v8008_v41  ;;  %v8099_v41 = vld [vmem:[%s11562_s3 + $0x300] ss:$20 sps:$4 sm:$0xff]  }
  0xef   :  { %1616 = vmatpush1.bf16.msra.mxu1 %v8006_v43  ;;  %v8107_v43 = vld [vmem:[%s11562_s3 + $0x32c] ss:$20 sps:$4 sm:$0xff]  }
  0xf0   :  { %1617 = vmatprep.subr.bf16.mxu1 %v8014_v45 }
  0xf3   :  { %1618 = vmatpush1.bf16.msra.mxu1 %v8012_v47 }
  0xf4   :  { %1619 = vmatprep.subr.bf16.mxu1 %v8020_v49 }
  0xf7   :  { %1620 = vmatpush1.bf16.msra.mxu1 %v8018_v52  ;;  %v8116_v52 = vld [vmem:[%s11562_s3 + $0x20c] ss:$20 sps:$4 sm:$0xff]  }
  0xf8   :  { %1621 = vmatprep.subr.bf16.mxu1 %v8026_v53  ;;  %v8111_v53 = vld [vmem:[%s11562_s3 + $0x350] ss:$20 sps:$4 sm:$0xff]  }
  0xfb   :  { %1622 = vmatpush1.bf16.msra.mxu1 %v8024_v54  ;;  %v8114_v54 = vld [vmem:[%s11562_s3 + $0x208] ss:$20 sps:$4 sm:$0xff]  }
  0xfc   :  { %1623 = vmatprep.subr.bf16.mxu1 %v8032_v55  ;;  %v8119_v55 = vld [vmem:[%s11562_s3 + $0x37c] ss:$20 sps:$4 sm:$0xff]  }
  0xff   :  { %1624 = vmatpush1.bf16.msra.mxu1 %v8030_v56  ;;  %v8122_v56 = vld [vmem:[%s11562_s3 + $0x234] ss:$20 sps:$4 sm:$0xff]  }
 0x100   :  { %5068 = vmatprep.subr.bf16.mxu1 %v8038_v57  ;;  %v8117_v57 = vld [vmem:[%s11562_s3 + $0x378] ss:$20 sps:$4 sm:$0xff]  }
 0x102   :  { %1626 = vmatmul.mubr.bf16.vlgmr.msra.gmra.mrb[12].mxu1 %v9091_v58  ;;  %v8056_v58 = vld [vmem:[%s11562_s3 + $0x7c] ss:$20 sps:$4 sm:$0xff]  }
 0x103   :  { %5069 = vmatpush1.bf16.msra.mxu1 %v8036_v59  ;;  %v8120_v59 = vld [vmem:[%s11562_s3 + $0x230] ss:$20 sps:$4 sm:$0xff]  }
 0x104   :  { %5070 = vmatprep.subr.bf16.mxu1 %v8044_v60  ;;  %v8125_v60 = vld [vmem:[%s11562_s3 + $0x3a4] ss:$20 sps:$4 sm:$0xff]  }
 0x107   :  { %5071 = vmatpush1.bf16.msra.mxu1 %v8042_v61  ;;  %v8128_v61 = vld [vmem:[%s11562_s3 + $0x25c] ss:$20 sps:$4 sm:$0xff]  }
 0x108   :  { %5072 = vmatprep.subr.bf16.mxu1 %v8050_v62  ;;  %v8123_v62 = vld [vmem:[%s11562_s3 + $0x3a0] ss:$20 sps:$4 sm:$0xff]  }
 0x10b   :  { %5073 = vmatpush1.bf16.msra.mxu1 %v8048_v0  ;;  %v8131_v0 = vld [vmem:[%s11562_s3 + $0x3cc] ss:$20 sps:$4 sm:$0xff]  }
 0x10c   :  { %5074 = vmatprep.subr.bf16.mxu1 %v8056_v58  ;;  %v8134_v58 = vld [vmem:[%s11562_s3 + $0x284] ss:$20 sps:$4 sm:$0xff]  }
 0x10f   :  { %5075 = vmatpush1.bf16.msra.mxu1 %v8054_v2  ;;  %v8129_v2 = vld [vmem:[%s11562_s3 + $0x3c8] ss:$20 sps:$4 sm:$0xff]  }
 0x110   :  { %5076 = vmatprep.subr.bf16.mxu1 %v8062_v3  ;;  %v8132_v3 = vld [vmem:[%s11562_s3 + $0x280] ss:$20 sps:$4 sm:$0xff]  }
 0x113   :  { %5077 = vmatpush1.bf16.msra.mxu1 %v8060_v4  ;;  %v8137_v4 = vld [vmem:[%s11562_s3 + $0x3f4] ss:$20 sps:$4 sm:$0xff]  }
 0x114   :  { %5078 = vmatprep.subr.bf16.mxu1 %v8068_v17  ;;  %v8140_v17 = vld [vmem:[%s11562_s3 + $0x2ac] ss:$20 sps:$4 sm:$0xff]  }
 0x115   :  { %v1422_v12 = vpop.f32.mrb[0].mxu1 }
 0x116   :  { %v1423_v13 = vadd.f32 %v1422_v12, %v270_v8  ;;  %v1424_v14 = vpop.f32.mrb[1].mxu1  ;;  %v8135_v8 = vld [vmem:[%s11562_s3 + $0x3f0] ss:$20 sps:$4 sm:$0xff]   ;;  %v8141_v12 = vld [vmem:[%s11562_s3 + $0x418] ss:$20 sps:$4 sm:$0xff]  }
 0x117   :  { %v1425_v15 = vadd.f32 %v1424_v14, %v274_v9  ;;  %v1426_v16 = vpop.f32.mrb[2].mxu1  ;;  %5079 = vmatpush1.bf16.msra.mxu1 %v8066_v10  ;;  %v8138_v9 = vld [vmem:[%s11562_s3 + $0x2a8] ss:$20 sps:$4 sm:$0xff]   ;;  %v8149_v14 = vld [vmem:[%s11562_s3 + $0x444] ss:$20 sps:$4 sm:$0xff]  }
 0x118   :  { %v1674_v19 = vmul.f32 0.2, %v1423_v13  ;;  %v1427_v20 = vpop.f32.mrb[3].mxu1  ;;  %5080 = vmatprep.subr.bf16.mxu1 %v8074_v11  ;;  %v8143_v10 = vld [vmem:[%s11562_s3 + $0x41c] ss:$20 sps:$4 sm:$0xff]  }
 0x119   :  { %v1675_v22 = vmul.f32 0.2, %v1425_v15  ;;  %v8146_v11 = vld [vmem:[%s11562_s3 + $0x2d4] ss:$20 sps:$4 sm:$0xff]   ;;  %v8155_v20 = vld [vmem:[%s11562_s3 + $0x46c] ss:$20 sps:$4 sm:$0xff]  }
 0x11a   :  { %v1687_v23 = vmax.f32 %v1423_v13, %v1674_v19  ;;  %v9786_v45 = vpop.f32.mrb[0].mxu0  ;;  %v8144_v13 = vld [vmem:[%s11562_s3 + $0x2d0] ss:$20 sps:$4 sm:$0xff]   ;;  %v8147_v16 = vld [vmem:[%s11562_s3 + $0x440] ss:$20 sps:$4 sm:$0xff]   ;;  %v289_v19 = vsub.s32 5, %v9684_v1 }
 0x11b   :  { %v1688_v24 = vmax.f32 %v1425_v15, %v1675_v22  ;;  %5081 = vmatpush1.bf16.msra.mxu1 %v8072_v18  ;;  %v9788_v46 = vpop.f32.mrb[1].mxu0  ;;  %v8152_v15 = vld [vmem:[%s11562_s3 + $0x2fc] ss:$20 sps:$4 sm:$0xff]   ;;  %v8150_v18 = vld [vmem:[%s11562_s3 + $0x2f8] ss:$20 sps:$4 sm:$0xff]  }
 0x11c   :  { %5082 = vmatprep.subr.bf16.mxu1 %v8080_v21  ;;  %v9739_v30 = vpack.c.bf16 %v1687_v23, %v1687_v23  ;;  %v1508_v47 = vpop.f32.mrb[2].mxu0  ;;  %v8158_v21 = vld [vmem:[%s11562_s3 + $0x324] ss:$20 sps:$4 sm:$0xff]   ;;  %v8153_v22 = vld [vmem:[%s11562_s3 + $0x468] ss:$20 sps:$4 sm:$0xff]  }
 0x11d   :  { %v9731_v27 = vpack.c.bf16 %v1688_v24, %v1688_v24  ;;  %v1509_v49 = vpop.f32.mrb[3].mxu0  ;;  %v8156_v23 = vld [vmem:[%s11562_s3 + $0x320] ss:$20 sps:$4 sm:$0xff]   ;;  %v9895_v24 = vsub.s32 2, %v9684_v1 }
 0x11e   :  { %v8176_v49 = vld [vmem:[%s11562_s3 + $0x39c] ss:$20 sps:$4 sm:$0xff]  }
 0x11f   :  { %5083 = vmatpush1.bf16.msra.mxu1 %v8078_v25  ;;  %5100 = vmatprep.mubr.bf16.mxu1 %v9731_v27  ;;  %v290_v25 = vrot.slane %v9701_v6, %v289_v19 }
 0x120   :  { %5387 = vmatprep.mubr.bf16.mxu0 %v9731_v27  ;;  %5084 = vmatprep.subr.bf16.mxu1 %v8086_v26  ;;  %v8161_v26 = vld [vmem:[%s11562_s3 + $0x494] ss:$20 sps:$4 sm:$0xff]  }
 0x121   :  { %5388 = vmatmul.mubr.bf16.vlgmr.msra.gmra.mrb[12].mxu0 %v9739_v30 }
 0x122   :  { %5397 = vmatpush1.bf16.msra.mxu0 %v8081_v28  ;;  %v9902_v28 = vsub.s32 3, %v9684_v1 }
 0x123   :  { %5085 = vmatpush1.bf16.msra.mxu1 %v8084_v29  ;;  %5398 = vmatprep.subr.bf16.mxu0 %v8089_v31  ;;  %v8164_v29 = vld [vmem:[%s11562_s3 + $0x34c] ss:$20 sps:$4 sm:$0xff]   ;;  %v8159_v31 = vld [vmem:[%s11562_s3 + $0x490] ss:$20 sps:$4 sm:$0xff]  }
 0x124   :  { %5086 = vmatprep.subr.bf16.mxu1 %v8092_v32  ;;  %v278_v32 = vrot.slane %v9701_v6, %v9895_v24 }
 0x126   :  { %5399 = vmatpush1.bf16.msra.mxu0 %v8087_v33  ;;  %v8162_v33 = vld [vmem:[%s11562_s3 + $0x348] ss:$20 sps:$4 sm:$0xff]  }
 0x127   :  { %5087 = vmatpush1.bf16.msra.mxu1 %v8090_v34  ;;  %5400 = vmatprep.subr.bf16.mxu0 %v8095_v35  ;;  %v1507_v34 = vadd.f32 %v9788_v46, %v290_v25  ;;  %v282_v35 = vrot.slane %v9701_v6, %v9902_v28  ;;  %v8173_v46 = vld [vmem:[%s11562_s3 + $0x4e4] ss:$20 sps:$4 sm:$0xff]   ;;  %v8212_v25 = vld [vmem:[%s11562_s3 + $0x48c] ss:$20 sps:$4 sm:$0xff]  }
 0x128   :  { %5088 = vmatprep.subr.bf16.mxu1 %v8098_v36  ;;  %v8167_v36 = vld [vmem:[%s11562_s3 + $0x4bc] ss:$20 sps:$4 sm:$0xff]  }
 0x12a   :  { %5401 = vmatpush1.bf16.msra.mxu0 %v8093_v37  ;;  %v8170_v37 = vld [vmem:[%s11562_s3 + $0x374] ss:$20 sps:$4 sm:$0xff]  }
 0x12b   :  { %5089 = vmatpush1.bf16.msra.mxu1 %v8096_v38  ;;  %5402 = vmatprep.subr.bf16.mxu0 %v8101_v39  ;;  %v8165_v38 = vld [vmem:[%s11562_s3 + $0x4b8] ss:$20 sps:$4 sm:$0xff]  }
 0x12c   :  { %5090 = vmatprep.subr.bf16.mxu1 %v8104_v40 }
 0x12e   :  { %5403 = vmatpush1.bf16.msra.mxu0 %v8099_v41 }
 0x12f   :  { %5091 = vmatpush1.bf16.msra.mxu1 %v8102_v42  ;;  %5404 = vmatprep.subr.bf16.mxu0 %v8107_v43  ;;  %v1679_v42 = vmul.f32 0.2, %v1507_v34 }
 0x130   :  { %5092 = vmatprep.subr.bf16.mxu1 %v8110_v44  ;;  %v8168_v44 = vld [vmem:[%s11562_s3 + $0x370] ss:$20 sps:$4 sm:$0xff]  }
 0x132   :  { %5405 = vmatpush1.bf16.msra.mxu0 %v8105_v48 }
 0x133   :  { %5093 = vmatpush1.bf16.msra.mxu1 %v8108_v50  ;;  %5406 = vmatprep.subr.bf16.mxu0 %v8113_v51  ;;  %v8171_v51 = vld [vmem:[%s11562_s3 + $0x4e0] ss:$20 sps:$4 sm:$0xff]  }
 0x134   :  { %5094 = vmatprep.subr.bf16.mxu1 %v8116_v52  ;;  %v1692_v52 = vmax.f32 %v1507_v34, %v1679_v42  ;;  %v8216_v34 = vld [vmem:[%s11562_s3 + $0x4b0] ss:$20 sps:$4 sm:$0xff]   ;;  %v8228_v42 = vld [vmem:[%s11562_s3 + $0x500] ss:$20 sps:$4 sm:$0xff]  }
 0x136   :  { %5407 = vmatpush1.bf16.msra.mxu0 %v8111_v53 }
 0x137   :  { %5095 = vmatpush1.bf16.msra.mxu1 %v8114_v54  ;;  %5408 = vmatprep.subr.bf16.mxu0 %v8119_v55  ;;  %v8174_v55 = vld [vmem:[%s11562_s3 + $0x398] ss:$20 sps:$4 sm:$0xff]  }
 0x138   :  { %5096 = vmatprep.subr.bf16.mxu1 %v8122_v56  ;;  %v8179_v56 = vld [vmem:[%s11562_s3 + $0x50c] ss:$20 sps:$4 sm:$0xff]  }
 0x13a   :  { %5409 = vmatpush1.bf16.msra.mxu0 %v8117_v57  ;;  %v8182_v57 = vld [vmem:[%s11562_s3 + $0x3c4] ss:$20 sps:$4 sm:$0xff]  }
 0x13b   :  { %5097 = vmatpush1.bf16.msra.mxu1 %v8120_v59  ;;  %5410 = vmatprep.subr.bf16.mxu0 %v8125_v60  ;;  %v8177_v60 = vld [vmem:[%s11562_s3 + $0x508] ss:$20 sps:$4 sm:$0xff]  }
 0x13c   :  { %5098 = vmatprep.subr.bf16.mxu1 %v8128_v61  ;;  %v8180_v61 = vld [vmem:[%s11562_s3 + $0x3c0] ss:$20 sps:$4 sm:$0xff]  }
 0x13e   :  { %5411 = vmatpush1.bf16.msra.mxu0 %v8123_v62  ;;  %v9956_v62 = vpack.c.bf16 %v1692_v52, %v1692_v52  ;;  %v10094_v52 = vsub.s32 4, %v9684_v1 }
 0x13f   :  { %5099 = vmatpush1.bf16.msra.mxu1 %v8126_v63  ;;  %5412 = vmatprep.subr.bf16.mxu0 %v8131_v0  ;;  %v8185_v0 = vld [vmem:[%s11562_s3 + $0x534] ss:$20 sps:$4 sm:$0xff]  }
 0x140   :  { %5109 = vmatprep.subr.bf16.mxu1 %v8134_v58  ;;  %v8188_v58 = vld [vmem:[%s11562_s3 + $0x3ec] ss:$20 sps:$4 sm:$0xff]  }
 0x142   :  { %5413 = vmatpush1.bf16.msra.mxu0 %v8129_v2  ;;  %5101 = vmatmul.mubr.bf16.vlgmr.msra.gmra.mrb[16].mxu1 %v9739_v30  ;;  %v8183_v2 = vld [vmem:[%s11562_s3 + $0x530] ss:$20 sps:$4 sm:$0xff]  }
 0x143   :  { %5110 = vmatpush1.bf16.msra.mxu1 %v8132_v3  ;;  %5414 = vmatprep.subr.bf16.mxu0 %v8137_v4  ;;  %v8186_v3 = vld [vmem:[%s11562_s3 + $0x3e8] ss:$20 sps:$4 sm:$0xff]  }
 0x144   :  { %5111 = vmatprep.subr.bf16.mxu1 %v8140_v17  ;;  %v8191_v4 = vld [vmem:[%s11562_s3 + $0x55c] ss:$20 sps:$4 sm:$0xff]   ;;  %v8194_v17 = vld [vmem:[%s11562_s3 + $0x414] ss:$20 sps:$4 sm:$0xff]  }
 0x146   :  { %5415 = vmatpush1.bf16.msra.mxu0 %v8135_v8  ;;  %v8189_v8 = vld [vmem:[%s11562_s3 + $0x558] ss:$20 sps:$4 sm:$0xff]  }
 0x147   :  { %5112 = vmatpush1.bf16.msra.mxu1 %v8138_v9  ;;  %5416 = vmatprep.subr.bf16.mxu0 %v8143_v10  ;;  %v8192_v9 = vld [vmem:[%s11562_s3 + $0x410] ss:$20 sps:$4 sm:$0xff]  }
 0x148   :  { %5113 = vmatprep.subr.bf16.mxu1 %v8146_v11  ;;  %v8197_v10 = vld [vmem:[%s11562_s3 + $0x584] ss:$20 sps:$4 sm:$0xff]   ;;  %v8200_v11 = vld [vmem:[%s11562_s3 + $0x43c] ss:$20 sps:$4 sm:$0xff]  }
 0x14a   :  { %5417 = vmatpush1.bf16.msra.mxu0 %v8141_v12  ;;  %v8195_v12 = vld [vmem:[%s11562_s3 + $0x580] ss:$20 sps:$4 sm:$0xff]  }
 0x14b   :  { %5114 = vmatpush1.bf16.msra.mxu1 %v8144_v13  ;;  %5418 = vmatprep.subr.bf16.mxu0 %v8149_v14  ;;  %v8198_v13 = vld [vmem:[%s11562_s3 + $0x438] ss:$20 sps:$4 sm:$0xff]  }
 0x14c   :  { %5115 = vmatprep.subr.bf16.mxu1 %v8152_v15  ;;  %v8203_v14 = vld [vmem:[%s11562_s3 + $0x5ac] ss:$20 sps:$4 sm:$0xff]   ;;  %v8206_v15 = vld [vmem:[%s11562_s3 + $0x464] ss:$20 sps:$4 sm:$0xff]  }
 0x14e   :  { %5419 = vmatpush1.bf16.msra.mxu0 %v8147_v16 }
 0x14f   :  { %5116 = vmatpush1.bf16.msra.mxu1 %v8150_v18  ;;  %5420 = vmatprep.subr.bf16.mxu0 %v8155_v20  ;;  %v8201_v20 = vld [vmem:[%s11562_s3 + $0x5a8] ss:$20 sps:$4 sm:$0xff]  }
 0x150   :  { %5117 = vmatprep.subr.bf16.mxu1 %v8158_v21 }
 0x152   :  { %5421 = vmatpush1.bf16.msra.mxu0 %v8153_v22  ;;  %v8204_v22 = vld [vmem:[%s11562_s3 + $0x460] ss:$20 sps:$4 sm:$0xff]  }
 0x153   :  { %5118 = vmatpush1.bf16.msra.mxu1 %v8156_v23  ;;  %5422 = vmatprep.subr.bf16.mxu0 %v8161_v26  ;;  %v8209_v23 = vld [vmem:[%s11562_s3 + $0x5d4] ss:$20 sps:$4 sm:$0xff]   ;;  %v8207_v26 = vld [vmem:[%s11562_s3 + $0x5d0] ss:$20 sps:$4 sm:$0xff]  }
 0x154   :  { %5119 = vmatprep.subr.bf16.mxu1 %v8164_v29  ;;  %v8210_v29 = vld [vmem:[%s11562_s3 + $0x488] ss:$20 sps:$4 sm:$0xff]  }
 0x155   :  { %v1463_v39 = vpop.f32.mrb[4].mxu1 }
 0x156   :  { %5423 = vmatpush1.bf16.msra.mxu0 %v8159_v31  ;;  %v1464_v40 = vadd.f32 %v1463_v39, %v278_v32  ;;  %v1465_v41 = vpop.f32.mrb[5].mxu1  ;;  %v8215_v31 = vld [vmem:[%s11562_s3 + $0x5fc] ss:$20 sps:$4 sm:$0xff]   ;;  %v8218_v32 = vld [vmem:[%s11562_s3 + $0x4b4] ss:$20 sps:$4 sm:$0xff]  }
 0x157   :  { %v1466_v43 = vadd.f32 %v1465_v41, %v282_v35  ;;  %v1467_v6 = vpop.f32.mrb[6].mxu1  ;;  %5120 = vmatpush1.bf16.msra.mxu1 %v8162_v33  ;;  %5424 = vmatprep.subr.bf16.mxu0 %v8167_v36  ;;  %v8213_v33 = vld [vmem:[%s11562_s3 + $0x5f8] ss:$20 sps:$4 sm:$0xff]   ;;  %v8224_v36 = vld [vmem:[%s11562_s3 + $0x4dc] ss:$20 sps:$4 sm:$0xff]  }
 0x158   :  { %v1676_v47 = vmul.f32 0.2, %v1464_v40  ;;  %v1468_v48 = vpop.f32.mrb[7].mxu1  ;;  %5121 = vmatprep.subr.bf16.mxu1 %v8170_v37  ;;  %v8221_v35 = vld [vmem:[%s11562_s3 + $0x624] ss:$20 sps:$4 sm:$0xff]  }
 0x159   :  { %v1677_v50 = vmul.f32 0.2, %v1466_v43  ;;  %v8219_v37 = vld [vmem:[%s11562_s3 + $0x620] ss:$20 sps:$4 sm:$0xff]   ;;  %v8225_v41 = vld [vmem:[%s11562_s3 + $0x648] ss:$20 sps:$4 sm:$0xff]  }
 0x15a   :  { %5425 = vmatpush1.bf16.msra.mxu0 %v8165_v38  ;;  %v1689_v53 = vmax.f32 %v1464_v40, %v1676_v47  ;;  %v10006_v16 = vpop.f32.mrb[4].mxu0  ;;  %v8222_v38 = vld [vmem:[%s11562_s3 + $0x4d8] ss:$20 sps:$4 sm:$0xff]   ;;  %v8239_v47 = vld [vmem:[%s11562_s3 + $0x69c] ss:$20 sps:$4 sm:$0xff]  }
 0x15b   :  { %v1690_v54 = vmax.f32 %v1466_v43, %v1677_v50  ;;  %5122 = vmatpush1.bf16.msra.mxu1 %v8168_v44  ;;  %5426 = vmatprep.subr.bf16.mxu0 %v8173_v46  ;;  %v10008_v18 = vpop.f32.mrb[5].mxu0  ;;  %v8227_v39 = vld [vmem:[%s11562_s3 + $0x64c] ss:$20 sps:$4 sm:$0xff]   ;;  %v8230_v40 = vld [vmem:[%s11562_s3 + $0x504] ss:$20 sps:$4 sm:$0xff]  }
 0x15c   :  { %5123 = vmatprep.subr.bf16.mxu1 %v8176_v49  ;;  %v9958_v63 = vpack.c.bf16 %v1689_v53, %v1689_v53  ;;  %v1590_v19 = vpop.f32.mrb[6].mxu0  ;;  %v8233_v43 = vld [vmem:[%s11562_s3 + $0x674] ss:$20 sps:$4 sm:$0xff]   ;;  %v8236_v6 = vld [vmem:[%s11562_s3 + $0x52c] ss:$20 sps:$4 sm:$0xff]  }
 0x15d   :  { %v9948_v59 = vpack.c.bf16 %v1690_v54, %v1690_v54  ;;  %v1591_v21 = vpop.f32.mrb[7].mxu0  ;;  %v8231_v44 = vld [vmem:[%s11562_s3 + $0x670] ss:$20 sps:$4 sm:$0xff]   ;;  %v8234_v46 = vld [vmem:[%s11562_s3 + $0x528] ss:$20 sps:$4 sm:$0xff]  }
 0x15e   :  { %5427 = vmatpush1.bf16.msra.mxu0 %v8171_v51  ;;  %v8242_v48 = vld [vmem:[%s11562_s3 + $0x554] ss:$20 sps:$4 sm:$0xff]   ;;  %v8237_v49 = vld [vmem:[%s11562_s3 + $0x698] ss:$20 sps:$4 sm:$0xff]   ;;  %v8240_v50 = vld [vmem:[%s11562_s3 + $0x550] ss:$20 sps:$4 sm:$0xff]  }
 0x15f   :  { %5124 = vmatpush1.bf16.msra.mxu1 %v8174_v55  ;;  %5141 = vmatprep.mubr.bf16.mxu1 %v9948_v59  ;;  %v8245_v51 = vld [vmem:[%s11562_s3 + $0x6c4] ss:$20 sps:$4 sm:$0xff]   ;;  %v8248_v53 = vld [vmem:[%s11562_s3 + $0x57c] ss:$20 sps:$4 sm:$0xff]   ;;  %v8243_v54 = vld [vmem:[%s11562_s3 + $0x6c0] ss:$20 sps:$4 sm:$0xff]  }
 0x160   :  { %5428 = vmatprep.mubr.bf16.mxu0 %v9948_v59  ;;  %5437 = vmatprep.subr.bf16.mxu0 %v8179_v56  ;;  %v8246_v55 = vld [vmem:[%s11562_s3 + $0x578] ss:$20 sps:$4 sm:$0xff]   ;;  %v8258_v19 = vld [vmem:[%s11562_s3 + $0x5c8] ss:$20 sps:$4 sm:$0xff]  }
 0x161   :  { %5429 = vmatmul.mubr.bf16.vlgmr.msra.gmra.mrb[12].mxu0 %v9958_v63  ;;  %5125 = vmatprep.subr.bf16.mxu1 %v8182_v57  ;;  %v10108_v56 = vld [vmem:[%s11563_s2 + $0x8] sm:$0x1f] }
 0x162   :  { %5438 = vmatpush1.bf16.msra.mxu0 %v8177_v60  ;;  %5469 = vmatprep.mubr.bf16.mxu0 %v9956_v62  ;;  %v8251_v57 = vld [vmem:[%s11562_s3 + $0x6ec] ss:$20 sps:$4 sm:$0xff]   ;;  %v8254_v60 = vld [vmem:[%s11562_s3 + $0x5a4] ss:$20 sps:$4 sm:$0xff]  }
 0x163   :  { %5126 = vmatpush1.bf16.msra.mxu1 %v8180_v61  ;;  %5439 = vmatprep.subr.bf16.mxu0 %v8185_v0  ;;  %v318_v0 = vrot.slane %v10108_v56, %v10094_v52 }
 0x164   :  { %5127 = vmatprep.subr.bf16.mxu1 %v8188_v58  ;;  %v8249_v58 = vld [vmem:[%s11562_s3 + $0x6e8] ss:$20 sps:$4 sm:$0xff]  }
 0x166   :  { %5440 = vmatpush1.bf16.msra.mxu0 %v8183_v2 }
 0x167   :  { %5128 = vmatpush1.bf16.msra.mxu1 %v8186_v3  ;;  %5441 = vmatprep.subr.bf16.mxu0 %v8191_v4 }
 0x168   :  { %5129 = vmatprep.subr.bf16.mxu1 %v8194_v17  ;;  %v8252_v17 = vld [vmem:[%s11562_s3 + $0x5a0] ss:$20 sps:$4 sm:$0xff]  }
 0x16a   :  { %5442 = vmatpush1.bf16.msra.mxu0 %v8189_v8  ;;  %v8257_v8 = vld [vmem:[%s11562_s3 + $0x714] ss:$20 sps:$4 sm:$0xff]  }
 0x16b   :  { %5130 = vmatpush1.bf16.msra.mxu1 %v8192_v9  ;;  %5443 = vmatprep.subr.bf16.mxu0 %v8197_v10  ;;  %v10130_v10 = vld [vmem:[%s11563_s2] sm:$0xff] }
 0x16c   :  { %5131 = vmatprep.subr.bf16.mxu1 %v8200_v11  ;;  %v286_v11 = vrot.slane %v10130_v10, %v10094_v52 }
 0x16e   :  { %5444 = vmatpush1.bf16.msra.mxu0 %v8195_v12  ;;  %v297_v12 = vsub.s32 7, %v9684_v1 }
 0x16f   :  { %5132 = vmatpush1.bf16.msra.mxu1 %v8198_v13  ;;  %5445 = vmatprep.subr.bf16.mxu0 %v8203_v14  ;;  %v8260_v13 = vld [vmem:[%s11562_s3 + $0x5cc] ss:$20 sps:$4 sm:$0xff]  }
 0x170   :  { %5133 = vmatprep.subr.bf16.mxu1 %v8206_v15  ;;  %v8255_v15 = vld [vmem:[%s11562_s3 + $0x710] ss:$20 sps:$4 sm:$0xff]   ;;  %v298_v21 = vrot.slane %v10130_v10, %v297_v12 }
 0x171   :  { %v8303_v12 = vld [vmem:[%s11562_s3 + $0x850] ss:$20 sps:$4 sm:$0xff]  }
 0x172   :  { %5446 = vmatpush1.bf16.msra.mxu0 %v8201_v20  ;;  %v1505_v20 = vadd.f32 %v9786_v45, %v286_v11  ;;  %v8261_v45 = vld [vmem:[%s11562_s3 + $0x738] ss:$20 sps:$4 sm:$0xff]  }
 0x173   :  { %5134 = vmatpush1.bf16.msra.mxu1 %v8204_v22  ;;  %5447 = vmatprep.subr.bf16.mxu0 %v8209_v23  ;;  %v8263_v22 = vld [vmem:[%s11562_s3 + $0x73c] ss:$20 sps:$4 sm:$0xff]   ;;  %v8266_v23 = vld [vmem:[%s11562_s3 + $0x5f4] ss:$20 sps:$4 sm:$0xff]   ;;  %v8308_v11 = vld [vmem:[%s11562_s3 + $0x70c] ss:$20 sps:$4 sm:$0xff]  }
 0x174   :  { %5135 = vmatprep.subr.bf16.mxu1 %v8212_v25 }
 0x176   :  { %5448 = vmatpush1.bf16.msra.mxu0 %v8207_v26 }
 0x177   :  { %5136 = vmatpush1.bf16.msra.mxu1 %v8210_v29  ;;  %5449 = vmatprep.subr.bf16.mxu0 %v8215_v31  ;;  %v8264_v29 = vld [vmem:[%s11562_s3 + $0x5f0] ss:$20 sps:$4 sm:$0xff]   ;;  %v1678_v31 = vmul.f32 0.2, %v1505_v20 }
 0x178   :  { %5137 = vmatprep.subr.bf16.mxu1 %v8218_v32 }
 0x17a   :  { %5450 = vmatpush1.bf16.msra.mxu0 %v8213_v33  ;;  %v7471_v61 = vpop.f32.mrb[8].mxu0 }
 0x17b   :  { %5138 = vmatpush1.bf16.msra.mxu1 %v8216_v34  ;;  %5451 = vmatprep.subr.bf16.mxu0 %v8221_v35  ;;  %v7472_v2 = vpop.f32.mrb[9].mxu0  ;;  %v8269_v34 = vld [vmem:[%s11562_s3 + $0x764] ss:$20 sps:$4 sm:$0xff]   ;;  %v293_v35 = vsub.s32 6, %v9684_v1 }
 0x17c   :  { %5139 = vmatprep.subr.bf16.mxu1 %v8224_v36  ;;  %v7473_v3 = vadd.f32 %v7472_v2, %v7471_v61  ;;  %v7474_v4 = vpop.f32.mrb[10].mxu0  ;;  %v8293_v61 = vld [vmem:[%s11562_s3 + $0x804] ss:$20 sps:$4 sm:$0xff]  }
 0x17d   :  { %v7475_v9 = vpop.f32.mrb[11].mxu0  ;;  %v8294_v2 = vld [vmem:[%s11562_s3 + $0x6b8] ss:$20 sps:$4 sm:$0xff]  }
 0x17e   :  { %5452 = vmatpush1.bf16.msra.mxu0 %v8219_v37  ;;  %v10138_v14 = vadd.f32 %v7473_v3, %v318_v0  ;;  %v8272_v37 = vld [vmem:[%s11562_s3 + $0x61c] ss:$20 sps:$4 sm:$0xff]   ;;  %v8299_v3 = vld [vmem:[%s11562_s3 + $0x82c] ss:$20 sps:$4 sm:$0xff]   ;;  %v8302_v4 = vld [vmem:[%s11562_s3 + $0x6e4] ss:$20 sps:$4 sm:$0xff]  }
 0x17f   :  { %5140 = vmatpush1.bf16.msra.mxu1 %v8222_v38  ;;  %5453 = vmatprep.subr.bf16.mxu0 %v8227_v39  ;;  %v8267_v39 = vld [vmem:[%s11562_s3 + $0x760] ss:$20 sps:$4 sm:$0xff]   ;;  %v8296_v0 = vld [vmem:[%s11562_s3 + $0x6bc] ss:$20 sps:$4 sm:$0xff]  }
 0x180   :  { %5150 = vmatprep.subr.bf16.mxu1 %v8230_v40  ;;  %v8270_v40 = vld [vmem:[%s11562_s3 + $0x618] ss:$20 sps:$4 sm:$0xff]   ;;  %v8305_v9 = vld [vmem:[%s11562_s3 + $0x854] ss:$20 sps:$4 sm:$0xff]  }
 0x182   :  { %5454 = vmatpush1.bf16.msra.mxu0 %v8225_v41  ;;  %5142 = vmatmul.mubr.bf16.vlgmr.msra.gmra.mrb[16].mxu1 %v9958_v63  ;;  %v1691_v41 = vmax.f32 %v1505_v20, %v1678_v31  ;;  %v8309_v20 = vld [vmem:[%s11562_s3 + $0x878] ss:$20 sps:$4 sm:$0xff]  }
 0x183   :  { %5151 = vmatpush1.bf16.msra.mxu1 %v8228_v42  ;;  %5455 = vmatprep.subr.bf16.mxu0 %v8233_v43  ;;  %v8275_v43 = vld [vmem:[%s11562_s3 + $0x78c] ss:$20 sps:$4 sm:$0xff]   ;;  %v8326_v31 = vld [vmem:[%s11562_s3 + $0x784] ss:$20 sps:$4 sm:$0xff]  }
 0x184   :  { %5152 = vmatprep.subr.bf16.mxu1 %v8236_v6  ;;  %5182 = vmatprep.mubr.bf16.mxu1 %v9956_v62  ;;  %v8278_v6 = vld [vmem:[%s11562_s3 + $0x644] ss:$20 sps:$4 sm:$0xff]  }
 0x186   :  { %5456 = vmatpush1.bf16.msra.mxu0 %v8231_v44 }
 0x187   :  { %5153 = vmatpush1.bf16.msra.mxu1 %v8234_v46  ;;  %5457 = vmatprep.subr.bf16.mxu0 %v8239_v47  ;;  %v8273_v46 = vld [vmem:[%s11562_s3 + $0x788] ss:$20 sps:$4 sm:$0xff]   ;;  %v8276_v47 = vld [vmem:[%s11562_s3 + $0x640] ss:$20 sps:$4 sm:$0xff]  }
 0x188   :  { %5154 = vmatprep.subr.bf16.mxu1 %v8242_v48  ;;  %v10189_v48 = vpack.c.bf16 %v1691_v41, %v1691_v41  ;;  %v8333_v41 = vld [vmem:[%s11562_s3 + $0x918] ss:$20 sps:$4 sm:$0xff]  }
 0x18a   :  { %5458 = vmatpush1.bf16.msra.mxu0 %v8237_v49  ;;  %v8281_v49 = vld [vmem:[%s11562_s3 + $0x7b4] ss:$20 sps:$4 sm:$0xff]  }
 0x18b   :  { %5155 = vmatpush1.bf16.msra.mxu1 %v8240_v50  ;;  %5459 = vmatprep.subr.bf16.mxu0 %v8245_v51  ;;  %v8284_v50 = vld [vmem:[%s11562_s3 + $0x66c] ss:$20 sps:$4 sm:$0xff]   ;;  %v8279_v51 = vld [vmem:[%s11562_s3 + $0x7b0] ss:$20 sps:$4 sm:$0xff]  }
 0x18c   :  { %5156 = vmatprep.subr.bf16.mxu1 %v8248_v53  ;;  %v8282_v53 = vld [vmem:[%s11562_s3 + $0x668] ss:$20 sps:$4 sm:$0xff]  }
 0x18e   :  { %5460 = vmatpush1.bf16.msra.mxu0 %v8243_v54  ;;  %v8287_v54 = vld [vmem:[%s11562_s3 + $0x7dc] ss:$20 sps:$4 sm:$0xff]  }
 0x18f   :  { %5157 = vmatpush1.bf16.msra.mxu1 %v8246_v55  ;;  %5461 = vmatprep.subr.bf16.mxu0 %v8251_v57  ;;  %v8290_v55 = vld [vmem:[%s11562_s3 + $0x694] ss:$20 sps:$4 sm:$0xff]   ;;  %v8285_v57 = vld [vmem:[%s11562_s3 + $0x7d8] ss:$20 sps:$4 sm:$0xff]  }
 0x190   :  { %5158 = vmatprep.subr.bf16.mxu1 %v8254_v60  ;;  %v8288_v60 = vld [vmem:[%s11562_s3 + $0x690] ss:$20 sps:$4 sm:$0xff]  }
 0x192   :  { %5462 = vmatpush1.bf16.msra.mxu0 %v8249_v58  ;;  %v8291_v58 = vld [vmem:[%s11562_s3 + $0x800] ss:$20 sps:$4 sm:$0xff]  }
 0x193   :  { %5159 = vmatpush1.bf16.msra.mxu1 %v8252_v17  ;;  %5463 = vmatprep.subr.bf16.mxu0 %v8257_v8  ;;  %v8297_v17 = vld [vmem:[%s11562_s3 + $0x828] ss:$20 sps:$4 sm:$0xff]   ;;  %v8300_v8 = vld [vmem:[%s11562_s3 + $0x6e0] ss:$20 sps:$4 sm:$0xff]  }
 0x194   :  { %5160 = vmatprep.subr.bf16.mxu1 %v8260_v13  ;;  %v8306_v13 = vld [vmem:[%s11562_s3 + $0x708] ss:$20 sps:$4 sm:$0xff]  }
 0x195   :  { %v10154_v25 = vpop.f32.mrb[8].mxu1 }
 0x196   :  { %5464 = vmatpush1.bf16.msra.mxu0 %v8255_v15  ;;  %v1547_v26 = vpop.f32.mrb[9].mxu1  ;;  %v8311_v15 = vld [vmem:[%s11562_s3 + $0x87c] ss:$20 sps:$4 sm:$0xff]  }
 0x197   :  { %v1548_v32 = vadd.f32 %v1547_v26, %v298_v21  ;;  %v1549_v33 = vpop.f32.mrb[10].mxu1  ;;  %5161 = vmatpush1.bf16.msra.mxu1 %v8258_v19  ;;  %5465 = vmatprep.subr.bf16.mxu0 %v8263_v22  ;;  %v8314_v19 = vld [vmem:[%s11562_s3 + $0x734] ss:$20 sps:$4 sm:$0xff]   ;;  %v8312_v21 = vld [vmem:[%s11562_s3 + $0x730] ss:$20 sps:$4 sm:$0xff]  }
 0x198   :  { %v1550_v36 = vpop.f32.mrb[11].mxu1  ;;  %5162 = vmatprep.subr.bf16.mxu1 %v8266_v23  ;;  %v8317_v22 = vld [vmem:[%s11562_s3 + $0x8a4] ss:$20 sps:$4 sm:$0xff]   ;;  %v8320_v23 = vld [vmem:[%s11562_s3 + $0x75c] ss:$20 sps:$4 sm:$0xff]  }
 0x199   :  { %v1681_v38 = vmul.f32 0.2, %v1548_v32  ;;  %v8315_v26 = vld [vmem:[%s11562_s3 + $0x8a0] ss:$20 sps:$4 sm:$0xff]  }
 0x19a   :  { %5466 = vmatpush1.bf16.msra.mxu0 %v8261_v45  ;;  %v8318_v45 = vld [vmem:[%s11562_s3 + $0x758] ss:$20 sps:$4 sm:$0xff]   ;;  %v8324_v33 = vld [vmem:[%s11562_s3 + $0x780] ss:$20 sps:$4 sm:$0xff]  }
 0x19b   :  { %v1694_v42 = vmax.f32 %v1548_v32, %v1681_v38  ;;  %5163 = vmatpush1.bf16.msra.mxu1 %v8264_v29  ;;  %5467 = vmatprep.subr.bf16.mxu0 %v8269_v34  ;;  %v8323_v29 = vld [vmem:[%s11562_s3 + $0x8cc] ss:$20 sps:$4 sm:$0xff]   ;;  %v8321_v32 = vld [vmem:[%s11562_s3 + $0x8c8] ss:$20 sps:$4 sm:$0xff]  }
 0x19c   :  { %5164 = vmatprep.subr.bf16.mxu1 %v8272_v37  ;;  %v8329_v34 = vld [vmem:[%s11562_s3 + $0x8f4] ss:$20 sps:$4 sm:$0xff]   ;;  %v8332_v36 = vld [vmem:[%s11562_s3 + $0x7ac] ss:$20 sps:$4 sm:$0xff]   ;;  %v8327_v37 = vld [vmem:[%s11562_s3 + $0x8f0] ss:$20 sps:$4 sm:$0xff]  }
 0x19d   :  { %v10181_v44 = vpack.c.bf16 %v1694_v42, %v1694_v42  ;;  %v8330_v38 = vld [vmem:[%s11562_s3 + $0x7a8] ss:$20 sps:$4 sm:$0xff]   ;;  %v8336_v42 = vld [vmem:[%s11562_s3 + $0x7d0] ss:$20 sps:$4 sm:$0xff]  }
 0x19e   :  { %5468 = vmatpush1.bf16.msra.mxu0 %v8267_v39  ;;  %v8335_v39 = vld [vmem:[%s11562_s3 + $0x91c] ss:$20 sps:$4 sm:$0xff]  }
 0x19f   :  { %5165 = vmatpush1.bf16.msra.mxu1 %v8270_v40  ;;  %5478 = vmatprep.subr.bf16.mxu0 %v8275_v43  ;;  %v8338_v40 = vld [vmem:[%s11562_s3 + $0x7d4] ss:$20 sps:$4 sm:$0xff]   ;;  %v8341_v43 = vld [vmem:[%s11562_s3 + $0x944] ss:$20 sps:$4 sm:$0xff]  }
 0x1a0   :  { %5166 = vmatprep.subr.bf16.mxu1 %v8278_v6  ;;  %v8344_v6 = vld [vmem:[%s11562_s3 + $0x7fc] ss:$20 sps:$4 sm:$0xff]  }
 0x1a1   :  { %5470 = vmatmul.mubr.bf16.vlgmr.msra.gmra.mrb[12].mxu0 %v10189_v48 }
 0x1a2   :  { %5479 = vmatpush1.bf16.msra.mxu0 %v8273_v46  ;;  %5510 = vmatprep.mubr.bf16.mxu0 %v10181_v44  ;;  %v8339_v46 = vld [vmem:[%s11562_s3 + $0x940] ss:$20 sps:$4 sm:$0xff]  }
 0x1a3   :  { %5167 = vmatpush1.bf16.msra.mxu1 %v8276_v47  ;;  %5480 = vmatprep.subr.bf16.mxu0 %v8281_v49  ;;  %v8342_v47 = vld [vmem:[%s11562_s3 + $0x7f8] ss:$20 sps:$4 sm:$0xff]  }
 0x1a4   :  { %5168 = vmatprep.subr.bf16.mxu1 %v8284_v50  ;;  %v8347_v49 = vld [vmem:[%s11562_s3 + $0x96c] ss:$20 sps:$4 sm:$0xff]   ;;  %v8350_v50 = vld [vmem:[%s11562_s3 + $0x824] ss:$20 sps:$4 sm:$0xff]  }
 0x1a6   :  { %5481 = vmatpush1.bf16.msra.mxu0 %v8279_v51  ;;  %v8345_v51 = vld [vmem:[%s11562_s3 + $0x968] ss:$20 sps:$4 sm:$0xff]  }
 0x1a7   :  { %5169 = vmatpush1.bf16.msra.mxu1 %v8282_v53  ;;  %5482 = vmatprep.subr.bf16.mxu0 %v8287_v54  ;;  %v8348_v53 = vld [vmem:[%s11562_s3 + $0x820] ss:$20 sps:$4 sm:$0xff]   ;;  %v294_v54 = vrot.slane %v10130_v10, %v293_v35  ;;  %v310_v10 = vrot.slane %v10108_v56, %v9895_v24  ;;  %v8354_v35 = vld [vmem:[%s11562_s3 + $0x848] ss:$20 sps:$4 sm:$0xff]  }
 0x1a8   :  { %5170 = vmatprep.subr.bf16.mxu1 %v8290_v55  ;;  %v8353_v55 = vld [vmem:[%s11562_s3 + $0x994] ss:$20 sps:$4 sm:$0xff]  }
 0x1aa   :  { %5483 = vmatpush1.bf16.msra.mxu0 %v8285_v57  ;;  %v8356_v57 = vld [vmem:[%s11562_s3 + $0x84c] ss:$20 sps:$4 sm:$0xff]  }
 0x1ab   :  { %5171 = vmatpush1.bf16.msra.mxu1 %v8288_v60  ;;  %5484 = vmatprep.subr.bf16.mxu0 %v8293_v61  ;;  %v306_v60 = vrot.slane %v10108_v56, %v9704_v7  ;;  %v8351_v61 = vld [vmem:[%s11562_s3 + $0x990] ss:$20 sps:$4 sm:$0xff]  }
 0x1ac   :  { %5172 = vmatprep.subr.bf16.mxu1 %v8296_v0  ;;  %v1546_v0 = vadd.f32 %v10154_v25, %v294_v54  ;;  %v8357_v25 = vld [vmem:[%s11562_s3 + $0x9b8] ss:$20 sps:$4 sm:$0xff]   ;;  %v8393_v54 = vld [vmem:[%s11562_s3 + $0xaa8] ss:$20 sps:$4 sm:$0xff]  }
 0x1ae   :  { %5485 = vmatpush1.bf16.msra.mxu0 %v8291_v58  ;;  %v314_v58 = vrot.slane %v10108_v56, %v9902_v28 }
 0x1af   :  { %5173 = vmatpush1.bf16.msra.mxu1 %v8294_v2  ;;  %5486 = vmatprep.subr.bf16.mxu0 %v8299_v3  ;;  %v8359_v2 = vld [vmem:[%s11562_s3 + $0x9bc] ss:$20 sps:$4 sm:$0xff]   ;;  %v8362_v3 = vld [vmem:[%s11562_s3 + $0x874] ss:$20 sps:$4 sm:$0xff]  }
 0x1b0   :  { %5174 = vmatprep.subr.bf16.mxu1 %v8302_v4  ;;  %v1589_v4 = vadd.f32 %v10008_v18, %v306_v60  ;;  %v8404_v60 = vld [vmem:[%s11562_s3 + $0x98c] ss:$20 sps:$4 sm:$0xff]  }
 0x1b2   :  { %5487 = vmatpush1.bf16.msra.mxu0 %v8297_v17 }
 0x1b3   :  { %5175 = vmatpush1.bf16.msra.mxu1 %v8300_v8  ;;  %5488 = vmatprep.subr.bf16.mxu0 %v8305_v9 }
 0x1b4   :  { %5176 = vmatprep.subr.bf16.mxu1 %v8308_v11  ;;  %v8360_v11 = vld [vmem:[%s11562_s3 + $0x870] ss:$20 sps:$4 sm:$0xff]  }
 0x1b6   :  { %5489 = vmatpush1.bf16.msra.mxu0 %v8303_v12  ;;  %v8365_v12 = vld [vmem:[%s11562_s3 + $0x9e4] ss:$20 sps:$4 sm:$0xff]  }
 0x1b7   :  { %5177 = vmatpush1.bf16.msra.mxu1 %v8306_v13  ;;  %5490 = vmatprep.subr.bf16.mxu0 %v8311_v15  ;;  %v1680_v13 = vmul.f32 0.2, %v1546_v0 }
 0x1b8   :  { %5178 = vmatprep.subr.bf16.mxu1 %v8314_v19  ;;  %v8368_v19 = vld [vmem:[%s11562_s3 + $0x89c] ss:$20 sps:$4 sm:$0xff]  }
 0x1ba   :  { %5491 = vmatpush1.bf16.msra.mxu0 %v8309_v20  ;;  %v1683_v20 = vmul.f32 0.2, %v1589_v4 }
 0x1bb   :  { %5179 = vmatpush1.bf16.msra.mxu1 %v8312_v21  ;;  %5492 = vmatprep.subr.bf16.mxu0 %v8317_v22  ;;  %v8363_v22 = vld [vmem:[%s11562_s3 + $0x9e0] ss:$20 sps:$4 sm:$0xff]  }
 0x1bc   :  { %5180 = vmatprep.subr.bf16.mxu1 %v8320_v23  ;;  %v8366_v23 = vld [vmem:[%s11562_s3 + $0x898] ss:$20 sps:$4 sm:$0xff]  }
 0x1be   :  { %5493 = vmatpush1.bf16.msra.mxu0 %v8315_v26  ;;  %v1693_v26 = vmax.f32 %v1546_v0, %v1680_v13  ;;  %v8410_v0 = vld [vmem:[%s11562_s3 + $0x9b4] ss:$20 sps:$4 sm:$0xff]  }
 0x1bf   :  { %5181 = vmatpush1.bf16.msra.mxu1 %v8318_v45  ;;  %5494 = vmatprep.subr.bf16.mxu0 %v8323_v29  ;;  %v8371_v45 = vld [vmem:[%s11562_s3 + $0xa0c] ss:$20 sps:$4 sm:$0xff]   ;;  %v8374_v29 = vld [vmem:[%s11562_s3 + $0x8c4] ss:$20 sps:$4 sm:$0xff]  }
 0x1c0   :  { %5191 = vmatprep.subr.bf16.mxu1 %v8326_v31  ;;  %v1696_v31 = vmax.f32 %v1589_v4, %v1683_v20  ;;  %v8416_v4 = vld [vmem:[%s11562_s3 + $0x9dc] ss:$20 sps:$4 sm:$0xff]   ;;  %v8420_v13 = vld [vmem:[%s11562_s3 + $0xa00] ss:$20 sps:$4 sm:$0xff]   ;;  %v8862_v20 = vmov 0  }
 0x1c1   :  { %7704 = vset.pattern.permute.xlu0 %v8862_v20 }
 0x1c2   :  { %5495 = vmatpush1.bf16.msra.mxu0 %v8321_v32  ;;  %5183 = vmatmul.mubr.bf16.vlgmr.msra.gmra.mrb[16].mxu1 %v10189_v48  ;;  %v8369_v32 = vld [vmem:[%s11562_s3 + $0xa08] ss:$20 sps:$4 sm:$0xff]  }
 0x1c3   :  { %5192 = vmatpush1.bf16.msra.mxu1 %v8324_v33  ;;  %5223 = vmatprep.mubr.bf16.mxu1 %v10181_v44  ;;  %v8372_v33 = vld [vmem:[%s11562_s3 + $0x8c0] ss:$20 sps:$4 sm:$0xff]  }
 0x1c4   :  { %5496 = vmatprep.subr.bf16.mxu0 %v8329_v34  ;;  %5193 = vmatprep.subr.bf16.mxu1 %v8332_v36  ;;  %v10402_v34 = vpack.c.bf16 %v1693_v26, %v1693_v26  ;;  %v8377_v36 = vld [vmem:[%s11562_s3 + $0xa34] ss:$20 sps:$4 sm:$0xff]  }
 0x1c5   :  { %v8434_v26 = vld [vmem:[%s11562_s3 + $0xa54] ss:$20 sps:$4 sm:$0xff]  }
 0x1c6   :  { %5497 = vmatpush1.bf16.msra.mxu0 %v8327_v37  ;;  %v10407_v37 = vpack.c.bf16 %v1696_v31, %v1696_v31  ;;  %v8437_v31 = vld [vmem:[%s11562_s3 + $0xbc4] ss:$20 sps:$4 sm:$0xff]  }
 0x1c7   :  { %5194 = vmatpush1.bf16.msra.mxu1 %v8330_v38  ;;  %5498 = vmatprep.subr.bf16.mxu0 %v8335_v39  ;;  %v8380_v38 = vld [vmem:[%s11562_s3 + $0x8ec] ss:$20 sps:$4 sm:$0xff]   ;;  %v8375_v39 = vld [vmem:[%s11562_s3 + $0xa30] ss:$20 sps:$4 sm:$0xff]  }
 0x1c8   :  { %5195 = vmatprep.subr.bf16.mxu1 %v8338_v40  ;;  %v8378_v40 = vld [vmem:[%s11562_s3 + $0x8e8] ss:$20 sps:$4 sm:$0xff]  }
 0x1ca   :  { %5499 = vmatpush1.bf16.msra.mxu0 %v8333_v41  ;;  %v8383_v41 = vld [vmem:[%s11562_s3 + $0xa5c] ss:$20 sps:$4 sm:$0xff]  }
 0x1cb   :  { %5196 = vmatpush1.bf16.msra.mxu1 %v8336_v42  ;;  %5500 = vmatprep.subr.bf16.mxu0 %v8341_v43  ;;  %v8386_v42 = vld [vmem:[%s11562_s3 + $0x914] ss:$20 sps:$4 sm:$0xff]   ;;  %v8381_v43 = vld [vmem:[%s11562_s3 + $0xa58] ss:$20 sps:$4 sm:$0xff]  }
 0x1cc   :  { %5197 = vmatprep.subr.bf16.mxu1 %v8344_v6  ;;  %v8384_v6 = vld [vmem:[%s11562_s3 + $0x910] ss:$20 sps:$4 sm:$0xff]  }
 0x1ce   :  { %5501 = vmatpush1.bf16.msra.mxu0 %v8339_v46  ;;  %v8389_v46 = vld [vmem:[%s11562_s3 + $0xa84] ss:$20 sps:$4 sm:$0xff]  }
 0x1cf   :  { %5198 = vmatpush1.bf16.msra.mxu1 %v8342_v47  ;;  %5502 = vmatprep.subr.bf16.mxu0 %v8347_v49  ;;  %v8392_v47 = vld [vmem:[%s11562_s3 + $0x93c] ss:$20 sps:$4 sm:$0xff]   ;;  %v8387_v49 = vld [vmem:[%s11562_s3 + $0xa80] ss:$20 sps:$4 sm:$0xff]  }
 0x1d0   :  { %5199 = vmatprep.subr.bf16.mxu1 %v8350_v50  ;;  %v8390_v50 = vld [vmem:[%s11562_s3 + $0x938] ss:$20 sps:$4 sm:$0xff]  }
 0x1d2   :  { %5503 = vmatpush1.bf16.msra.mxu0 %v8345_v51  ;;  %v8395_v51 = vld [vmem:[%s11562_s3 + $0xaac] ss:$20 sps:$4 sm:$0xff]  }
 0x1d3   :  { %5200 = vmatpush1.bf16.msra.mxu1 %v8348_v53  ;;  %5504 = vmatprep.subr.bf16.mxu0 %v8353_v55  ;;  %v8398_v53 = vld [vmem:[%s11562_s3 + $0x964] ss:$20 sps:$4 sm:$0xff]   ;;  %v8396_v55 = vld [vmem:[%s11562_s3 + $0x960] ss:$20 sps:$4 sm:$0xff]  }
 0x1d4   :  { %5201 = vmatprep.subr.bf16.mxu1 %v8356_v57  ;;  %v8401_v57 = vld [vmem:[%s11562_s3 + $0xad4] ss:$20 sps:$4 sm:$0xff]  }
 0x1d5   :  { %v1627_v17 = vpop.f32.mrb[12].mxu1 }
 0x1d6   :  { %5505 = vmatpush1.bf16.msra.mxu0 %v8351_v61  ;;  %v10371_v8 = vadd.f32 %v1627_v17, %v310_v10  ;;  %v1629_v9 = vpop.f32.mrb[13].mxu1  ;;  %v8399_v61 = vld [vmem:[%s11562_s3 + $0xad0] ss:$20 sps:$4 sm:$0xff]   ;;  %v8402_v10 = vld [vmem:[%s11562_s3 + $0x988] ss:$20 sps:$4 sm:$0xff]  }
 0x1d7   :  { %v10379_v18 = vadd.f32 %v1629_v9, %v314_v58  ;;  %v1631_v15 = vpop.f32.mrb[14].mxu1  ;;  %5202 = vmatpush1.bf16.msra.mxu1 %v8354_v35  ;;  %5506 = vmatprep.subr.bf16.mxu0 %v8359_v2  ;;  %v8407_v35 = vld [vmem:[%s11562_s3 + $0xafc] ss:$20 sps:$4 sm:$0xff]   ;;  %v8405_v58 = vld [vmem:[%s11562_s3 + $0xaf8] ss:$20 sps:$4 sm:$0xff]  }
 0x1d8   :  { %v1632_v21 = vpop.f32.mrb[15].mxu1  ;;  %5203 = vmatprep.subr.bf16.mxu1 %v8362_v3  ;;  %v8408_v2 = vld [vmem:[%s11562_s3 + $0x9b0] ss:$20 sps:$4 sm:$0xff]   ;;  %v8414_v17 = vld [vmem:[%s11562_s3 + $0x9d8] ss:$20 sps:$4 sm:$0xff]  }
 0x1d9   :  { %v8413_v3 = vld [vmem:[%s11562_s3 + $0xb24] ss:$20 sps:$4 sm:$0xff]   ;;  %v8419_v9 = vld [vmem:[%s11562_s3 + $0xb4c] ss:$20 sps:$4 sm:$0xff]   ;;  %v8425_v15 = vld [vmem:[%s11562_s3 + $0xb74] ss:$20 sps:$4 sm:$0xff]  }
 0x1da   :  { %5507 = vmatpush1.bf16.msra.mxu0 %v8357_v25  ;;  %v8411_v25 = vld [vmem:[%s11562_s3 + $0xb20] ss:$20 sps:$4 sm:$0xff]   ;;  %v8423_v21 = vld [vmem:[%s11562_s3 + $0xb70] ss:$20 sps:$4 sm:$0xff]  }
 0x1db   :  { %5204 = vmatpush1.bf16.msra.mxu1 %v8360_v11  ;;  %5508 = vmatprep.subr.bf16.mxu0 %v8365_v12  ;;  %v8422_v11 = vld [vmem:[%s11562_s3 + $0xa04] ss:$20 sps:$4 sm:$0xff]   ;;  %v8417_v12 = vld [vmem:[%s11562_s3 + $0xb48] ss:$20 sps:$4 sm:$0xff]  }
 0x1dc   :  { %5205 = vmatprep.subr.bf16.mxu1 %v8368_v19  ;;  %v8428_v19 = vld [vmem:[%s11562_s3 + $0xa2c] ss:$20 sps:$4 sm:$0xff]  }
 0x1de   :  { %5509 = vmatpush1.bf16.msra.mxu0 %v8363_v22  ;;  %v8426_v22 = vld [vmem:[%s11562_s3 + $0xa28] ss:$20 sps:$4 sm:$0xff]  }
 0x1df   :  { %5206 = vmatpush1.bf16.msra.mxu1 %v8366_v23  ;;  %5519 = vmatprep.subr.bf16.mxu0 %v8371_v45  ;;  %v8431_v23 = vld [vmem:[%s11562_s3 + $0xb9c] ss:$20 sps:$4 sm:$0xff]   ;;  %v8429_v45 = vld [vmem:[%s11562_s3 + $0xb98] ss:$20 sps:$4 sm:$0xff]  }
 0x1e0   :  { %5207 = vmatprep.subr.bf16.mxu1 %v8374_v29  ;;  %v8432_v29 = vld [vmem:[%s11562_s3 + $0xa50] ss:$20 sps:$4 sm:$0xff]  }
 0x1e1   :  { %5511 = vmatmul.mubr.bf16.vlgmr.msra.gmra.mrb[12].mxu0 %v10402_v34 }
 0x1e2   :  { %5520 = vmatpush1.bf16.msra.mxu0 %v8369_v32  ;;  %5551 = vmatprep.mubr.bf16.mxu0 %v10407_v37  ;;  %v8440_v32 = vld [vmem:[%s11562_s3 + $0xa7c] ss:$20 sps:$4 sm:$0xff]  }
 0x1e3   :  { %5208 = vmatpush1.bf16.msra.mxu1 %v8372_v33  ;;  %5521 = vmatprep.subr.bf16.mxu0 %v8377_v36  ;;  %v8435_v33 = vld [vmem:[%s11562_s3 + $0xbc0] ss:$20 sps:$4 sm:$0xff]   ;;  %v8438_v36 = vld [vmem:[%s11562_s3 + $0xa78] ss:$20 sps:$4 sm:$0xff]  }
 0x1e4   :  { %5209 = vmatprep.subr.bf16.mxu1 %v8380_v38  ;;  %v8443_v38 = vld [vmem:[%s11562_s3 + $0xbec] ss:$20 sps:$4 sm:$0xff]  }
 0x1e6   :  { %5522 = vmatpush1.bf16.msra.mxu0 %v8375_v39  ;;  %v8446_v39 = vld [vmem:[%s11562_s3 + $0xaa4] ss:$20 sps:$4 sm:$0xff]  }
 0x1e7   :  { %5210 = vmatpush1.bf16.msra.mxu1 %v8378_v40  ;;  %5523 = vmatprep.subr.bf16.mxu0 %v8383_v41  ;;  %v8441_v40 = vld [vmem:[%s11562_s3 + $0xbe8] ss:$20 sps:$4 sm:$0xff]   ;;  %v302_v41 = vrot.slane %v10108_v56, %v9696_v5  ;;  %v8447_v56 = vld [vmem:[%s11562_s3 + $0xc10] ss:$20 sps:$4 sm:$0xff]  }
 0x1e8   :  { %5211 = vmatprep.subr.bf16.mxu1 %v8386_v42  ;;  %v8444_v42 = vld [vmem:[%s11562_s3 + $0xaa0] ss:$20 sps:$4 sm:$0xff]  }
 0x1ea   :  { %5524 = vmatpush1.bf16.msra.mxu0 %v8381_v43  ;;  %v8449_v43 = vld [vmem:[%s11562_s3 + $0xc14] ss:$20 sps:$4 sm:$0xff]  }
 0x1eb   :  { %5212 = vmatpush1.bf16.msra.mxu1 %v8384_v6  ;;  %5525 = vmatprep.subr.bf16.mxu0 %v8389_v46  ;;  %v8452_v6 = vld [vmem:[%s11562_s3 + $0xacc] ss:$20 sps:$4 sm:$0xff]   ;;  %v1587_v46 = vadd.f32 %v10006_v16, %v302_v41  ;;  %v8506_v41 = vld [vmem:[%s11562_s3 + $0xc34] ss:$20 sps:$4 sm:$0xff]  }
 0x1ec   :  { %5213 = vmatprep.subr.bf16.mxu1 %v8392_v47  ;;  %v8450_v47 = vld [vmem:[%s11562_s3 + $0xac8] ss:$20 sps:$4 sm:$0xff]   ;;  %v8453_v16 = vld [vmem:[%s11562_s3 + $0xc38] ss:$20 sps:$4 sm:$0xff]  }
 0x1ee   :  { %5526 = vmatpush1.bf16.msra.mxu0 %v8387_v49  ;;  %v8455_v49 = vld [vmem:[%s11562_s3 + $0xc3c] ss:$20 sps:$4 sm:$0xff]  }
 0x1ef   :  { %5214 = vmatpush1.bf16.msra.mxu1 %v8390_v50  ;;  %5527 = vmatprep.subr.bf16.mxu0 %v8395_v51  ;;  %v8458_v50 = vld [vmem:[%s11562_s3 + $0xaf4] ss:$20 sps:$4 sm:$0xff]   ;;  %v1682_v51 = vmul.f32 0.2, %v1587_v46 }
 0x1f0   :  { %5215 = vmatprep.subr.bf16.mxu1 %v8398_v53  ;;  %v8456_v53 = vld [vmem:[%s11562_s3 + $0xaf0] ss:$20 sps:$4 sm:$0xff]  }
 0x1f2   :  { %5528 = vmatpush1.bf16.msra.mxu0 %v8393_v54  ;;  %v8461_v54 = vld [vmem:[%s11562_s3 + $0xc64] ss:$20 sps:$4 sm:$0xff]  }
 0x1f3   :  { %5216 = vmatpush1.bf16.msra.mxu1 %v8396_v55  ;;  %5529 = vmatprep.subr.bf16.mxu0 %v8401_v57  ;;  %v1685_v55 = vmul.f32 0.2, %v10379_v18  ;;  %v8464_v57 = vld [vmem:[%s11562_s3 + $0xb1c] ss:$20 sps:$4 sm:$0xff]  }
 0x1f4   :  { %5217 = vmatprep.subr.bf16.mxu1 %v8404_v60  ;;  %v8459_v60 = vld [vmem:[%s11562_s3 + $0xc60] ss:$20 sps:$4 sm:$0xff]  }
 0x1f6   :  { %5530 = vmatpush1.bf16.msra.mxu0 %v8399_v61  ;;  %v1695_v61 = vmax.f32 %v1587_v46, %v1682_v51  ;;  %v8507_v46 = vld [vmem:[%s11562_s3 + $0xda0] ss:$20 sps:$4 sm:$0xff]  }
 0x1f7   :  { %5218 = vmatpush1.bf16.msra.mxu1 %v8402_v10  ;;  %5531 = vmatprep.subr.bf16.mxu0 %v8407_v35  ;;  %v8462_v10 = vld [vmem:[%s11562_s3 + $0xb18] ss:$20 sps:$4 sm:$0xff]   ;;  %v8516_v51 = vld [vmem:[%s11562_s3 + $0xc80] ss:$20 sps:$4 sm:$0xff]  }
 0x1f8   :  { %5219 = vmatprep.subr.bf16.mxu1 %v8410_v0  ;;  %v8467_v35 = vld [vmem:[%s11562_s3 + $0xc8c] ss:$20 sps:$4 sm:$0xff]   ;;  %v1698_v0 = vmax.f32 %v10379_v18, %v1685_v55  ;;  %v8473_v18 = vld [vmem:[%s11562_s3 + $0xcb4] ss:$20 sps:$4 sm:$0xff]   ;;  %v8519_v55 = vld [vmem:[%s11562_s3 + $0xdf0] ss:$20 sps:$4 sm:$0xff]  }
 0x1fa   :  { %5532 = vmatpush1.bf16.msra.mxu0 %v8405_v58  ;;  %v8470_v58 = vld [vmem:[%s11562_s3 + $0xb44] ss:$20 sps:$4 sm:$0xff]  }
 0x1fb   :  { %5220 = vmatpush1.bf16.msra.mxu1 %v8408_v2  ;;  %5533 = vmatprep.subr.bf16.mxu0 %v8413_v3  ;;  %v8465_v2 = vld [vmem:[%s11562_s3 + $0xc88] ss:$20 sps:$4 sm:$0xff]   ;;  %v10605_v3 = vpack.c.bf16 %v1695_v61, %v1695_v61 }
 0x1fc   :  { %5221 = vmatprep.subr.bf16.mxu1 %v8416_v4  ;;  %v8468_v4 = vld [vmem:[%s11562_s3 + $0xb40] ss:$20 sps:$4 sm:$0xff]  }
 0x1fd   :  { %v8530_v61 = vld [vmem:[%s11562_s3 + $0xcd4] ss:$20 sps:$4 sm:$0xff]  }
 0x1fe   :  { %5534 = vmatpush1.bf16.msra.mxu0 %v8411_v25  ;;  %v10613_v25 = vpack.c.bf16 %v1698_v0, %v1698_v0  ;;  %v8533_v0 = vld [vmem:[%s11562_s3 + $0xe44] ss:$20 sps:$4 sm:$0xff]  }
 0x1ff   :  { %5222 = vmatpush1.bf16.msra.mxu1 %v8414_v17  ;;  %5535 = vmatprep.subr.bf16.mxu0 %v8419_v9  ;;  %v8476_v17 = vld [vmem:[%s11562_s3 + $0xb6c] ss:$20 sps:$4 sm:$0xff]   ;;  %v8471_v9 = vld [vmem:[%s11562_s3 + $0xcb0] ss:$20 sps:$4 sm:$0xff]  }
 0x200   :  { %5232 = vmatprep.subr.bf16.mxu1 %v8422_v11  ;;  %v8474_v11 = vld [vmem:[%s11562_s3 + $0xb68] ss:$20 sps:$4 sm:$0xff]  }
 0x202   :  { %5536 = vmatpush1.bf16.msra.mxu0 %v8417_v12  ;;  %5224 = vmatmul.mubr.bf16.vlgmr.msra.gmra.mrb[16].mxu1 %v10402_v34  ;;  %v8479_v12 = vld [vmem:[%s11562_s3 + $0xcdc] ss:$20 sps:$4 sm:$0xff]  }
 0x203   :  { %5233 = vmatpush1.bf16.msra.mxu1 %v8420_v13  ;;  %5264 = vmatprep.mubr.bf16.mxu1 %v10407_v37  ;;  %v8482_v13 = vld [vmem:[%s11562_s3 + $0xb94] ss:$20 sps:$4 sm:$0xff]  }
 0x204   :  { %5537 = vmatprep.subr.bf16.mxu0 %v8425_v15  ;;  %5234 = vmatprep.subr.bf16.mxu1 %v8428_v19  ;;  %v8477_v15 = vld [vmem:[%s11562_s3 + $0xcd8] ss:$20 sps:$4 sm:$0xff]   ;;  %v8480_v19 = vld [vmem:[%s11562_s3 + $0xb90] ss:$20 sps:$4 sm:$0xff]  }
 0x206   :  { %5538 = vmatpush1.bf16.msra.mxu0 %v8423_v21  ;;  %v8485_v21 = vld [vmem:[%s11562_s3 + $0xd04] ss:$20 sps:$4 sm:$0xff]  }
 0x207   :  { %5235 = vmatpush1.bf16.msra.mxu1 %v8426_v22  ;;  %5539 = vmatprep.subr.bf16.mxu0 %v8431_v23  ;;  %v8488_v22 = vld [vmem:[%s11562_s3 + $0xbbc] ss:$20 sps:$4 sm:$0xff]   ;;  %v8483_v23 = vld [vmem:[%s11562_s3 + $0xd00] ss:$20 sps:$4 sm:$0xff]  }
 0x208   :  { %5236 = vmatprep.subr.bf16.mxu1 %v8434_v26  ;;  %v8486_v26 = vld [vmem:[%s11562_s3 + $0xbb8] ss:$20 sps:$4 sm:$0xff]  }
 0x20a   :  { %5540 = vmatpush1.bf16.msra.mxu0 %v8429_v45  ;;  %v8491_v45 = vld [vmem:[%s11562_s3 + $0xd2c] ss:$20 sps:$4 sm:$0xff]  }
 0x20b   :  { %5237 = vmatpush1.bf16.msra.mxu1 %v8432_v29  ;;  %5541 = vmatprep.subr.bf16.mxu0 %v8437_v31  ;;  %v8494_v29 = vld [vmem:[%s11562_s3 + $0xbe4] ss:$20 sps:$4 sm:$0xff]   ;;  %v8489_v31 = vld [vmem:[%s11562_s3 + $0xd28] ss:$20 sps:$4 sm:$0xff]  }
 0x20c   :  { %5238 = vmatprep.subr.bf16.mxu1 %v8440_v32  ;;  %v8492_v32 = vld [vmem:[%s11562_s3 + $0xbe0] ss:$20 sps:$4 sm:$0xff]  }
 0x20e   :  { %5542 = vmatpush1.bf16.msra.mxu0 %v8435_v33  ;;  %v8497_v33 = vld [vmem:[%s11562_s3 + $0xd54] ss:$20 sps:$4 sm:$0xff]  }
 0x20f   :  { %5239 = vmatpush1.bf16.msra.mxu1 %v8438_v36  ;;  %5543 = vmatprep.subr.bf16.mxu0 %v8443_v38  ;;  %v8500_v36 = vld [vmem:[%s11562_s3 + $0xc0c] ss:$20 sps:$4 sm:$0xff]   ;;  %v8495_v38 = vld [vmem:[%s11562_s3 + $0xd50] ss:$20 sps:$4 sm:$0xff]  }
 0x210   :  { %5240 = vmatprep.subr.bf16.mxu1 %v8446_v39  ;;  %v8498_v39 = vld [vmem:[%s11562_s3 + $0xc08] ss:$20 sps:$4 sm:$0xff]  }
 0x212   :  { %5544 = vmatpush1.bf16.msra.mxu0 %v8441_v40  ;;  %v8503_v40 = vld [vmem:[%s11562_s3 + $0xd7c] ss:$20 sps:$4 sm:$0xff]  }
 0x213   :  { %5241 = vmatpush1.bf16.msra.mxu1 %v8444_v42  ;;  %5545 = vmatprep.subr.bf16.mxu0 %v8449_v43  ;;  %v8501_v42 = vld [vmem:[%s11562_s3 + $0xd78] ss:$20 sps:$4 sm:$0xff]   ;;  %v8504_v43 = vld [vmem:[%s11562_s3 + $0xc30] ss:$20 sps:$4 sm:$0xff]  }
 0x214   :  { %5242 = vmatprep.subr.bf16.mxu1 %v8452_v6  ;;  %v8509_v6 = vld [vmem:[%s11562_s3 + $0xda4] ss:$20 sps:$4 sm:$0xff]  }
 0x216   :  { %5546 = vmatpush1.bf16.msra.mxu0 %v8447_v56  ;;  %v8512_v56 = vld [vmem:[%s11562_s3 + $0xc5c] ss:$20 sps:$4 sm:$0xff]  }
 0x217   :  { %5243 = vmatpush1.bf16.msra.mxu1 %v8450_v47  ;;  %5547 = vmatprep.subr.bf16.mxu0 %v8455_v49  ;;  %v8510_v47 = vld [vmem:[%s11562_s3 + $0xc58] ss:$20 sps:$4 sm:$0xff]  }
 0x218   :  { %5244 = vmatprep.subr.bf16.mxu1 %v8458_v50  ;;  %v8515_v49 = vld [vmem:[%s11562_s3 + $0xdcc] ss:$20 sps:$4 sm:$0xff]   ;;  %v8518_v50 = vld [vmem:[%s11562_s3 + $0xc84] ss:$20 sps:$4 sm:$0xff]  }
 0x21a   :  { %5548 = vmatpush1.bf16.msra.mxu0 %v8453_v16  ;;  %v8513_v16 = vld [vmem:[%s11562_s3 + $0xdc8] ss:$20 sps:$4 sm:$0xff]  }
 0x21b   :  { %5245 = vmatpush1.bf16.msra.mxu1 %v8456_v53  ;;  %5549 = vmatprep.subr.bf16.mxu0 %v8461_v54  ;;  %v8521_v53 = vld [vmem:[%s11562_s3 + $0xdf4] ss:$20 sps:$4 sm:$0xff]   ;;  %v8524_v54 = vld [vmem:[%s11562_s3 + $0xcac] ss:$20 sps:$4 sm:$0xff]  }
 0x21c   :  { %5246 = vmatprep.subr.bf16.mxu1 %v8464_v57  ;;  %v8522_v57 = vld [vmem:[%s11562_s3 + $0xca8] ss:$20 sps:$4 sm:$0xff]  }
 0x21e   :  { %5550 = vmatpush1.bf16.msra.mxu0 %v8459_v60  ;;  %v8527_v60 = vld [vmem:[%s11562_s3 + $0xe1c] ss:$20 sps:$4 sm:$0xff]  }
 0x21f   :  { %5247 = vmatpush1.bf16.msra.mxu1 %v8462_v10  ;;  %5560 = vmatprep.subr.bf16.mxu0 %v8467_v35  ;;  %v8525_v10 = vld [vmem:[%s11562_s3 + $0xe18] ss:$20 sps:$4 sm:$0xff]   ;;  %v8528_v35 = vld [vmem:[%s11562_s3 + $0xcd0] ss:$20 sps:$4 sm:$0xff]  }
 0x220   :  { %5248 = vmatprep.subr.bf16.mxu1 %v8470_v58  ;;  %v8536_v58 = vld [vmem:[%s11562_s3 + $0xcfc] ss:$20 sps:$4 sm:$0xff]  }
 0x221   :  { %5552 = vmatmul.mubr.bf16.vlgmr.msra.gmra.mrb[12].mxu0 %v10605_v3 }
 0x222   :  { %5561 = vmatpush1.bf16.msra.mxu0 %v8465_v2  ;;  %5592 = vmatprep.mubr.bf16.mxu0 %v10613_v25  ;;  %v8531_v2 = vld [vmem:[%s11562_s3 + $0xe40] ss:$20 sps:$4 sm:$0xff]  }
 0x223   :  { %5249 = vmatpush1.bf16.msra.mxu1 %v8468_v4  ;;  %5562 = vmatprep.subr.bf16.mxu0 %v8473_v18  ;;  %v8534_v4 = vld [vmem:[%s11562_s3 + $0xcf8] ss:$20 sps:$4 sm:$0xff]  }
 0x224   :  { %5250 = vmatprep.subr.bf16.mxu1 %v8476_v17  ;;  %v8539_v18 = vld [vmem:[%s11562_s3 + $0xe6c] ss:$20 sps:$4 sm:$0xff]   ;;  %v8542_v17 = vld [vmem:[%s11562_s3 + $0xd24] ss:$20 sps:$4 sm:$0xff]  }
 0x226   :  { %5563 = vmatpush1.bf16.msra.mxu0 %v8471_v9  ;;  %v8537_v9 = vld [vmem:[%s11562_s3 + $0xe68] ss:$20 sps:$4 sm:$0xff]  }
 0x227   :  { %5251 = vmatpush1.bf16.msra.mxu1 %v8474_v11  ;;  %5564 = vmatprep.subr.bf16.mxu0 %v8479_v12  ;;  %v8540_v11 = vld [vmem:[%s11562_s3 + $0xd20] ss:$20 sps:$4 sm:$0xff]  }
 0x228   :  { %5252 = vmatprep.subr.bf16.mxu1 %v8482_v13  ;;  %v8545_v12 = vld [vmem:[%s11562_s3 + $0xe94] ss:$20 sps:$4 sm:$0xff]   ;;  %v8548_v13 = vld [vmem:[%s11562_s3 + $0xd4c] ss:$20 sps:$4 sm:$0xff]  }
 0x22a   :  { %5565 = vmatpush1.bf16.msra.mxu0 %v8477_v15  ;;  %v8543_v15 = vld [vmem:[%s11562_s3 + $0xe90] ss:$20 sps:$4 sm:$0xff]  }
 0x22b   :  { %5253 = vmatpush1.bf16.msra.mxu1 %v8480_v19  ;;  %5566 = vmatprep.subr.bf16.mxu0 %v8485_v21  ;;  %v8546_v19 = vld [vmem:[%s11562_s3 + $0xd48] ss:$20 sps:$4 sm:$0xff]  }
 0x22c   :  { %5254 = vmatprep.subr.bf16.mxu1 %v8488_v22  ;;  %v8551_v21 = vld [vmem:[%s11562_s3 + $0xebc] ss:$20 sps:$4 sm:$0xff]   ;;  %v8554_v22 = vld [vmem:[%s11562_s3 + $0xd74] ss:$20 sps:$4 sm:$0xff]  }
 0x22e   :  { %5567 = vmatpush1.bf16.msra.mxu0 %v8483_v23  ;;  %v8549_v23 = vld [vmem:[%s11562_s3 + $0xeb8] ss:$20 sps:$4 sm:$0xff]  }
 0x22f   :  { %5255 = vmatpush1.bf16.msra.mxu1 %v8486_v26  ;;  %5568 = vmatprep.subr.bf16.mxu0 %v8491_v45  ;;  %v1684_v26 = vmul.f32 0.2, %v10371_v8  ;;  %v8552_v45 = vld [vmem:[%s11562_s3 + $0xd70] ss:$20 sps:$4 sm:$0xff]  }
 0x230   :  { %5256 = vmatprep.subr.bf16.mxu1 %v8494_v29  ;;  %v8557_v29 = vld [vmem:[%s11562_s3 + $0xee4] ss:$20 sps:$4 sm:$0xff]  }
 0x232   :  { %5569 = vmatpush1.bf16.msra.mxu0 %v8489_v31  ;;  %v8560_v31 = vld [vmem:[%s11562_s3 + $0xd9c] ss:$20 sps:$4 sm:$0xff]  }
 0x233   :  { %5257 = vmatpush1.bf16.msra.mxu1 %v8492_v32  ;;  %5570 = vmatprep.subr.bf16.mxu0 %v8497_v33  ;;  %v8555_v32 = vld [vmem:[%s11562_s3 + $0xee0] ss:$20 sps:$4 sm:$0xff]   ;;  %v1697_v33 = vmax.f32 %v10371_v8, %v1684_v26  ;;  %v8561_v8 = vld [vmem:[%s11562_s3 + $0xf08] ss:$20 sps:$4 sm:$0xff]   ;;  %v8614_v26 = vld [vmem:[%s11562_s3 + $0x3f8] ss:$20 sps:$4 sm:$0xff]  }
 0x234   :  { %5258 = vmatprep.subr.bf16.mxu1 %v8500_v36  ;;  %v8558_v36 = vld [vmem:[%s11562_s3 + $0xd98] ss:$20 sps:$4 sm:$0xff]  }
 0x236   :  { %5571 = vmatpush1.bf16.msra.mxu0 %v8495_v38  ;;  %v8563_v38 = vld [vmem:[%s11562_s3 + $0xf0c] ss:$20 sps:$4 sm:$0xff]  }
 0x237   :  { %5259 = vmatpush1.bf16.msra.mxu1 %v8498_v39  ;;  %5572 = vmatprep.subr.bf16.mxu0 %v8503_v40  ;;  %v8566_v39 = vld [vmem:[%s11562_s3 + $0xdc4] ss:$20 sps:$4 sm:$0xff]   ;;  %v10807_v40 = vpack.c.bf16 %v1697_v33, %v1697_v33  ;;  %v8616_v33 = vld [vmem:[%s11562_s3 + $0xf28] ss:$20 sps:$4 sm:$0xff]  }
 0x238   :  { %5260 = vmatprep.subr.bf16.mxu1 %v8506_v41  ;;  %v8564_v41 = vld [vmem:[%s11562_s3 + $0xdc0] ss:$20 sps:$4 sm:$0xff]  }
 0x23a   :  { %5573 = vmatpush1.bf16.msra.mxu0 %v8501_v42  ;;  %v8569_v42 = vld [vmem:[%s11562_s3 + $0xf34] ss:$20 sps:$4 sm:$0xff]  }
 0x23b   :  { %5261 = vmatpush1.bf16.msra.mxu1 %v8504_v43  ;;  %5574 = vmatprep.subr.bf16.mxu0 %v8509_v6  ;;  %v8572_v43 = vld [vmem:[%s11562_s3 + $0xdec] ss:$20 sps:$4 sm:$0xff]   ;;  %v8567_v6 = vld [vmem:[%s11562_s3 + $0xf30] ss:$20 sps:$4 sm:$0xff]  }
 0x23c   :  { %5262 = vmatprep.subr.bf16.mxu1 %v8512_v56  ;;  %v8570_v56 = vld [vmem:[%s11562_s3 + $0xde8] ss:$20 sps:$4 sm:$0xff]  }
 0x23e   :  { %5575 = vmatpush1.bf16.msra.mxu0 %v8507_v46  ;;  %v8575_v46 = vld [vmem:[%s11562_s3 + $0xf5c] ss:$20 sps:$4 sm:$0xff]  }
 0x23f   :  { %5263 = vmatpush1.bf16.msra.mxu1 %v8510_v47  ;;  %5576 = vmatprep.subr.bf16.mxu0 %v8515_v49  ;;  %v8578_v47 = vld [vmem:[%s11562_s3 + $0xe14] ss:$20 sps:$4 sm:$0xff]   ;;  %v8573_v49 = vld [vmem:[%s11562_s3 + $0xf58] ss:$20 sps:$4 sm:$0xff]  }
 0x240   :  { %5273 = vmatprep.subr.bf16.mxu1 %v8518_v50  ;;  %v8576_v50 = vld [vmem:[%s11562_s3 + $0xe10] ss:$20 sps:$4 sm:$0xff]  }
 0x242   :  { %5577 = vmatpush1.bf16.msra.mxu0 %v8513_v16  ;;  %5265 = vmatmul.mubr.bf16.vlgmr.msra.gmra.mrb[16].mxu1 %v10605_v3  ;;  %v8581_v16 = vld [vmem:[%s11562_s3 + $0xf84] ss:$20 sps:$4 sm:$0xff]  }
 0x243   :  { %5274 = vmatpush1.bf16.msra.mxu1 %v8516_v51  ;;  %5305 = vmatprep.mubr.bf16.mxu1 %v10613_v25  ;;  %v8584_v51 = vld [vmem:[%s11562_s3 + $0xe3c] ss:$20 sps:$4 sm:$0xff]  }
 0x244   :  { %5578 = vmatprep.subr.bf16.mxu0 %v8521_v53  ;;  %5275 = vmatprep.subr.bf16.mxu1 %v8524_v54  ;;  %v8579_v53 = vld [vmem:[%s11562_s3 + $0xf80] ss:$20 sps:$4 sm:$0xff]   ;;  %v8582_v54 = vld [vmem:[%s11562_s3 + $0xe38] ss:$20 sps:$4 sm:$0xff]  }
 0x246   :  { %5579 = vmatpush1.bf16.msra.mxu0 %v8519_v55  ;;  %v8587_v55 = vld [vmem:[%s11562_s3 + $0xfac] ss:$20 sps:$4 sm:$0xff]  }
 0x247   :  { %5276 = vmatpush1.bf16.msra.mxu1 %v8522_v57  ;;  %5580 = vmatprep.subr.bf16.mxu0 %v8527_v60  ;;  %v8590_v57 = vld [vmem:[%s11562_s3 + $0xe64] ss:$20 sps:$4 sm:$0xff]   ;;  %v8585_v60 = vld [vmem:[%s11562_s3 + $0xfa8] ss:$20 sps:$4 sm:$0xff]  }
 0x248   :  { %5277 = vmatprep.subr.bf16.mxu1 %v8530_v61  ;;  %v8588_v61 = vld [vmem:[%s11562_s3 + $0xe60] ss:$20 sps:$4 sm:$0xff]  }
 0x24a   :  { %5581 = vmatpush1.bf16.msra.mxu0 %v8525_v10  ;;  %v8593_v10 = vld [vmem:[%s11562_s3 + $0xfd4] ss:$20 sps:$4 sm:$0xff]  }
 0x24b   :  { %5278 = vmatpush1.bf16.msra.mxu1 %v8528_v35  ;;  %5582 = vmatprep.subr.bf16.mxu0 %v8533_v0  ;;  %v8596_v35 = vld [vmem:[%s11562_s3 + $0xe8c] ss:$20 sps:$4 sm:$0xff]   ;;  %v8591_v0 = vld [vmem:[%s11562_s3 + $0xfd0] ss:$20 sps:$4 sm:$0xff]  }
 0x24c   :  { %5279 = vmatprep.subr.bf16.mxu1 %v8536_v58  ;;  %v8594_v58 = vld [vmem:[%s11562_s3 + $0xe88] ss:$20 sps:$4 sm:$0xff]  }
 0x24e   :  { %5583 = vmatpush1.bf16.msra.mxu0 %v8531_v2  ;;  %v8599_v2 = vld [vmem:[%s11562_s3 + $0xffc] ss:$20 sps:$4 sm:$0xff]  }
 0x24f   :  { %5280 = vmatpush1.bf16.msra.mxu1 %v8534_v4  ;;  %5584 = vmatprep.subr.bf16.mxu0 %v8539_v18  ;;  %v8602_v4 = vld [vmem:[%s11562_s3 + $0xeb4] ss:$20 sps:$4 sm:$0xff]   ;;  %v8597_v18 = vld [vmem:[%s11562_s3 + $0xff8] ss:$20 sps:$4 sm:$0xff]  }
 0x250   :  { %5281 = vmatprep.subr.bf16.mxu1 %v8542_v17  ;;  %v1686_v17 = vmul.f32 0.2, %v10138_v14 }
 0x252   :  { %5585 = vmatpush1.bf16.msra.mxu0 %v8537_v9  ;;  %v8600_v9 = vld [vmem:[%s11562_s3 + $0xeb0] ss:$20 sps:$4 sm:$0xff]  }
 0x253   :  { %5282 = vmatpush1.bf16.msra.mxu1 %v8540_v11  ;;  %5586 = vmatprep.subr.bf16.mxu0 %v8545_v12  ;;  %v8605_v11 = vld [vmem:[%s11562_s3 + $0x1024] ss:$20 sps:$4 sm:$0xff]   ;;  %v8608_v12 = vld [vmem:[%s11562_s3 + $0xedc] ss:$20 sps:$4 sm:$0xff]  }
 0x254   :  { %5283 = vmatprep.subr.bf16.mxu1 %v8548_v13  ;;  %v8603_v13 = vld [vmem:[%s11562_s3 + $0x1020] ss:$20 sps:$4 sm:$0xff]  }
 0x256   :  { %5587 = vmatpush1.bf16.msra.mxu0 %v8543_v15  ;;  %v1699_v15 = vmax.f32 %v10138_v14, %v1686_v17  ;;  %v8610_v14 = vld [vmem:[%s11562_s3 + $0x290] ss:$20 sps:$4 sm:$0xff]   ;;  %v8654_v17 = vld [vmem:[%s11562_s3 + $0x7b8] ss:$20 sps:$4 sm:$0xff]  }
 0x257   :  { %5284 = vmatpush1.bf16.msra.mxu1 %v8546_v19  ;;  %5588 = vmatprep.subr.bf16.mxu0 %v8551_v21  ;;  %v8606_v19 = vld [vmem:[%s11562_s3 + $0xed8] ss:$20 sps:$4 sm:$0xff]   ;;  %v8609_v21 = vld [vmem:[%s11562_s3 + $0x3d0] ss:$20 sps:$4 sm:$0xff]  }
 0x258   :  { %5285 = vmatprep.subr.bf16.mxu1 %v8554_v22  ;;  %v8613_v22 = vld [vmem:[%s11562_s3 + $0xf04] ss:$20 sps:$4 sm:$0xff]  }
 0x25a   :  { %5589 = vmatpush1.bf16.msra.mxu0 %v8549_v23  ;;  %v10909_v23 = vpack.c.bf16 %v1699_v15, %v1699_v15  ;;  %v8662_v15 = vld [vmem:[%s11562_s3 + $0x808] ss:$20 sps:$4 sm:$0xff]  }
 0x25b   :  { %5286 = vmatpush1.bf16.msra.mxu1 %v8552_v45  ;;  %5590 = vmatprep.subr.bf16.mxu0 %v8557_v29  ;;  %v8611_v45 = vld [vmem:[%s11562_s3 + $0xf00] ss:$20 sps:$4 sm:$0xff]  }
 0x25c   :  { %5287 = vmatprep.subr.bf16.mxu1 %v8560_v31  ;;  %v8618_v29 = vld [vmem:[%s11562_s3 + $0xf2c] ss:$20 sps:$4 sm:$0xff]  }
 0x25d   :  { %v8615_v31 = vld [vmem:[%s11562_s3 + $0x2b8] ss:$20 sps:$4 sm:$0xff]  }
 0x25e   :  { %5591 = vmatpush1.bf16.msra.mxu0 %v8555_v32  ;;  %v8619_v32 = vld [vmem:[%s11562_s3 + $0x420] ss:$20 sps:$4 sm:$0xff]  }
 0x25f   :  { %5288 = vmatpush1.bf16.msra.mxu1 %v8558_v36  ;;  %5601 = vmatprep.subr.bf16.mxu0 %v8563_v38  ;;  %v8620_v36 = vld [vmem:[%s11562_s3 + $0x2e0] ss:$20 sps:$4 sm:$0xff]   ;;  %v8624_v38 = vld [vmem:[%s11562_s3 + $0x448] ss:$20 sps:$4 sm:$0xff]  }
 0x260   :  { %5289 = vmatprep.subr.bf16.mxu1 %v8566_v39  ;;  %v8621_v39 = vld [vmem:[%s11562_s3 + $0xf50] ss:$20 sps:$4 sm:$0xff]  }
 0x261   :  { %5593 = vmatmul.mubr.bf16.vlgmr.msra.gmra.mrb[12].mxu0 %v10807_v40 }
 0x262   :  { %5602 = vmatpush1.bf16.msra.mxu0 %v8561_v8  ;;  %5633 = vmatprep.mubr.bf16.mxu0 %v8862_v20  ;;  %v8628_v8 = vld [vmem:[%s11562_s3 + $0xf7c] ss:$20 sps:$4 sm:$0xff]  }
 0x263   :  { %5290 = vmatpush1.bf16.msra.mxu1 %v8564_v41  ;;  %5603 = vmatprep.subr.bf16.mxu0 %v8569_v42  ;;  %v8625_v41 = vld [vmem:[%s11562_s3 + $0x308] ss:$20 sps:$4 sm:$0xff]   ;;  %v8629_v42 = vld [vmem:[%s11562_s3 + $0x470] ss:$20 sps:$4 sm:$0xff]  }
 0x264   :  { %5291 = vmatprep.subr.bf16.mxu1 %v8572_v43  ;;  %v8626_v43 = vld [vmem:[%s11562_s3 + $0xf78] ss:$20 sps:$4 sm:$0xff]  }
 0x266   :  { %5604 = vmatpush1.bf16.msra.mxu0 %v8567_v6  ;;  %v8633_v6 = vld [vmem:[%s11562_s3 + $0xfa4] ss:$20 sps:$4 sm:$0xff]  }
 0x267   :  { %5292 = vmatpush1.bf16.msra.mxu1 %v8570_v56  ;;  %5605 = vmatprep.subr.bf16.mxu0 %v8575_v46  ;;  %v8630_v56 = vld [vmem:[%s11562_s3 + $0x330] ss:$20 sps:$4 sm:$0xff]   ;;  %v8634_v46 = vld [vmem:[%s11562_s3 + $0x498] ss:$20 sps:$4 sm:$0xff]  }
 0x268   :  { %5293 = vmatprep.subr.bf16.mxu1 %v8578_v47  ;;  %v8631_v47 = vld [vmem:[%s11562_s3 + $0xfa0] ss:$20 sps:$4 sm:$0xff]  }
 0x26a   :  { %5606 = vmatpush1.bf16.msra.mxu0 %v8573_v49  ;;  %v8638_v49 = vld [vmem:[%s11562_s3 + $0xfcc] ss:$20 sps:$4 sm:$0xff]  }
 0x26b   :  { %5294 = vmatpush1.bf16.msra.mxu1 %v8576_v50  ;;  %5607 = vmatprep.subr.bf16.mxu0 %v8581_v16  ;;  %v8635_v50 = vld [vmem:[%s11562_s3 + $0x358] ss:$20 sps:$4 sm:$0xff]   ;;  %v8639_v16 = vld [vmem:[%s11562_s3 + $0x4c0] ss:$20 sps:$4 sm:$0xff]  }
 0x26c   :  { %5295 = vmatprep.subr.bf16.mxu1 %v8584_v51  ;;  %v8636_v51 = vld [vmem:[%s11562_s3 + $0xfc8] ss:$20 sps:$4 sm:$0xff]  }
 0x26e   :  { %5608 = vmatpush1.bf16.msra.mxu0 %v8579_v53  ;;  %v8643_v53 = vld [vmem:[%s11562_s3 + $0xff4] ss:$20 sps:$4 sm:$0xff]  }
 0x26f   :  { %5296 = vmatpush1.bf16.msra.mxu1 %v8582_v54  ;;  %5609 = vmatprep.subr.bf16.mxu0 %v8587_v55  ;;  %v8640_v54 = vld [vmem:[%s11562_s3 + $0x380] ss:$20 sps:$4 sm:$0xff]   ;;  %v8644_v55 = vld [vmem:[%s11562_s3 + $0x4e8] ss:$20 sps:$4 sm:$0xff]  }
 0x270   :  { %5297 = vmatprep.subr.bf16.mxu1 %v8590_v57  ;;  %v8641_v57 = vld [vmem:[%s11562_s3 + $0xff0] ss:$20 sps:$4 sm:$0xff]  }
 0x272   :  { %5610 = vmatpush1.bf16.msra.mxu0 %v8585_v60  ;;  %v8648_v60 = vld [vmem:[%s11562_s3 + $0x101c] ss:$20 sps:$4 sm:$0xff]  }
 0x273   :  { %5298 = vmatpush1.bf16.msra.mxu1 %v8588_v61  ;;  %5611 = vmatprep.subr.bf16.mxu0 %v8593_v10  ;;  %v8645_v61 = vld [vmem:[%s11562_s3 + $0x3a8] ss:$20 sps:$4 sm:$0xff]   ;;  %v8649_v10 = vld [vmem:[%s11562_s3 + $0x8d0] ss:$20 sps:$4 sm:$0xff]  }
 0x274   :  { %5299 = vmatprep.subr.bf16.mxu1 %v8596_v35  ;;  %v8646_v35 = vld [vmem:[%s11562_s3 + $0x1018] ss:$20 sps:$4 sm:$0xff]  }
 0x276   :  { %5612 = vmatpush1.bf16.msra.mxu0 %v8591_v0  ;;  %v8651_v0 = vld [vmem:[%s11562_s3 + $0x150] ss:$20 sps:$4 sm:$0xff]  }
 0x277   :  { %5300 = vmatpush1.bf16.msra.mxu1 %v8594_v58  ;;  %5613 = vmatprep.subr.bf16.mxu0 %v8599_v2  ;;  %v8650_v58 = vld [vmem:[%s11562_s3 + $0x790] ss:$20 sps:$4 sm:$0xff]   ;;  %v8653_v2 = vld [vmem:[%s11562_s3 + $0x8f8] ss:$20 sps:$4 sm:$0xff]  }
 0x278   :  { %5301 = vmatprep.subr.bf16.mxu1 %v8602_v4  ;;  %v8652_v4 = vld [vmem:[%s11562_s3 + $0x10] ss:$20 sps:$4 sm:$0xff]  }
 0x27a   :  { %5614 = vmatpush1.bf16.msra.mxu0 %v8597_v18  ;;  %v8655_v18 = vld [vmem:[%s11562_s3 + $0x178] ss:$20 sps:$4 sm:$0xff]  }
 0x27b   :  { %5302 = vmatpush1.bf16.msra.mxu1 %v8600_v9  ;;  %5615 = vmatprep.subr.bf16.mxu0 %v8605_v11  ;;  %v8657_v9 = vld [vmem:[%s11562_s3 + $0x920] ss:$20 sps:$4 sm:$0xff]  }
 0x27c   :  { %5303 = vmatprep.subr.bf16.mxu1 %v8608_v12  ;;  %v8658_v11 = vld [vmem:[%s11562_s3 + $0x7e0] ss:$20 sps:$4 sm:$0xff]   ;;  %v8661_v12 = vld [vmem:[%s11562_s3 + $0x948] ss:$20 sps:$4 sm:$0xff]  }
 0x27e   :  { %5616 = vmatpush1.bf16.msra.mxu0 %v8603_v13  ;;  %v8663_v13 = vld [vmem:[%s11562_s3 + $0x1c8] ss:$20 sps:$4 sm:$0xff]  }
 0x27f   :  { %5304 = vmatpush1.bf16.msra.mxu1 %v8606_v19  ;;  %7499 = vmatprep.subr.bf16.mxu0 %v8609_v21  ;;  %v8664_v19 = vld [vmem:[%s11562_s3 + $0x88] ss:$20 sps:$4 sm:$0xff]   ;;  %v8665_v21 = vld [vmem:[%s11562_s3 + $0x970] ss:$20 sps:$4 sm:$0xff]  }
 0x280   :  { %5314 = vmatprep.subr.bf16.mxu1 %v8613_v22  ;;  %v8667_v22 = vld [vmem:[%s11562_s3 + $0x1f0] ss:$20 sps:$4 sm:$0xff]  }
 0x281   :  { %5634 = vmatmul.mubr.bf16.vlgmr.msra.gmra.mrb[12].mxu0 %v10909_v23 }
 0x282   :  { %7500 = vmatpush3.bf16.msra.mxu0 %v8610_v14  ;;  %5714 = vmatprep.mubr.bf16.mxu0 %v9948_v59  ;;  %v8623_v59 = vld [vmem:[%s11562_s3 + $0xf54] ss:$20 sps:$4 sm:$0xff]   ;;  %v8666_v14 = vld [vmem:[%s11562_s3 + $0x830] ss:$20 sps:$4 sm:$0xff]  }
 0x283   :  { %5306 = vmatmul.mubr.bf16.vlgmr.msra.gmra.mrb[16].mxu1 %v10807_v40  ;;  %7501 = vmatprep.subr.bf16.mxu0 %v8614_v26  ;;  %v8669_v26 = vld [vmem:[%s11562_s3 + $0x998] ss:$20 sps:$4 sm:$0xff]  }
 0x284   :  { %5315 = vmatpush1.bf16.msra.mxu1 %v8611_v45  ;;  %5346 = vmatprep.mubr.bf16.mxu1 %v8862_v20  ;;  %v8668_v45 = vld [vmem:[%s11562_s3 + $0xb0] ss:$20 sps:$4 sm:$0xff]  }
 0x285   :  { %5316 = vmatprep.subr.bf16.mxu1 %v8618_v29  ;;  %v8671_v29 = vld [vmem:[%s11562_s3 + $0x218] ss:$20 sps:$4 sm:$0xff]  }
 0x286   :  { %7502 = vmatpush3.bf16.msra.mxu0 %v8615_v31  ;;  %v8670_v31 = vld [vmem:[%s11562_s3 + $0x858] ss:$20 sps:$4 sm:$0xff]  }
 0x287   :  { %7503 = vmatprep.subr.bf16.mxu0 %v8619_v32  ;;  %v8673_v32 = vld [vmem:[%s11562_s3 + $0x9c0] ss:$20 sps:$4 sm:$0xff]  }
 0x288   :  { %5317 = vmatpush1.bf16.msra.mxu1 %v8616_v33  ;;  %v8672_v33 = vld [vmem:[%s11562_s3 + $0xd8] ss:$20 sps:$4 sm:$0xff]  }
 0x289   :  { %5318 = vmatprep.subr.bf16.mxu1 %v8623_v59  ;;  %v8675_v59 = vld [vmem:[%s11562_s3 + $0x240] ss:$20 sps:$4 sm:$0xff]  }
 0x28a   :  { %7504 = vmatpush3.bf16.msra.mxu0 %v8620_v36  ;;  %v8674_v36 = vld [vmem:[%s11562_s3 + $0x880] ss:$20 sps:$4 sm:$0xff]  }
 0x28b   :  { %7505 = vmatprep.subr.bf16.mxu0 %v8624_v38  ;;  %v8677_v38 = vld [vmem:[%s11562_s3 + $0x9e8] ss:$20 sps:$4 sm:$0xff]  }
 0x28c   :  { %5319 = vmatpush1.bf16.msra.mxu1 %v8621_v39  ;;  %v8676_v39 = vld [vmem:[%s11562_s3 + $0x100] ss:$20 sps:$4 sm:$0xff]  }
 0x28d   :  { %5320 = vmatprep.subr.bf16.mxu1 %v8628_v8  ;;  %v8679_v8 = vld [vmem:[%s11562_s3 + $0x268] ss:$20 sps:$4 sm:$0xff]  }
 0x28e   :  { %7506 = vmatpush3.bf16.msra.mxu0 %v8625_v41  ;;  %v8678_v41 = vld [vmem:[%s11562_s3 + $0x8a8] ss:$20 sps:$4 sm:$0xff]  }
 0x28f   :  { %7507 = vmatprep.subr.bf16.mxu0 %v8629_v42  ;;  %v8681_v42 = vld [vmem:[%s11562_s3 + $0xdd0] ss:$20 sps:$4 sm:$0xff]  }
 0x290   :  { %5321 = vmatpush1.bf16.msra.mxu1 %v8626_v43  ;;  %v8680_v43 = vld [vmem:[%s11562_s3 + $0x128] ss:$20 sps:$4 sm:$0xff]  }
 0x291   :  { %5322 = vmatprep.subr.bf16.mxu1 %v8633_v6  ;;  %v8683_v6 = vld [vmem:[%s11562_s3 + $0x650] ss:$20 sps:$4 sm:$0xff]  }
 0x292   :  { %7508 = vmatpush3.bf16.msra.mxu0 %v8630_v56  ;;  %v8682_v56 = vld [vmem:[%s11562_s3 + $0xc90] ss:$20 sps:$4 sm:$0xff]  }
 0x293   :  { %7509 = vmatprep.subr.bf16.mxu0 %v8634_v46  ;;  %v8685_v46 = vld [vmem:[%s11562_s3 + $0xdf8] ss:$20 sps:$4 sm:$0xff]  }
 0x294   :  { %5323 = vmatpush1.bf16.msra.mxu1 %v8631_v47  ;;  %v8684_v47 = vld [vmem:[%s11562_s3 + $0x510] ss:$20 sps:$4 sm:$0xff]  }
 0x295   :  { %5324 = vmatprep.subr.bf16.mxu1 %v8638_v49  ;;  %v8687_v49 = vld [vmem:[%s11562_s3 + $0x678] ss:$20 sps:$4 sm:$0xff]  }
 0x296   :  { %7510 = vmatpush3.bf16.msra.mxu0 %v8635_v50  ;;  %v8686_v50 = vld [vmem:[%s11562_s3 + $0xcb8] ss:$20 sps:$4 sm:$0xff]  }
 0x297   :  { %7511 = vmatprep.subr.bf16.mxu0 %v8639_v16  ;;  %v8689_v16 = vld [vmem:[%s11562_s3 + $0xe20] ss:$20 sps:$4 sm:$0xff]  }
 0x298   :  { %5325 = vmatpush1.bf16.msra.mxu1 %v8636_v51  ;;  %v8693_v51 = vld [vmem:[%s11562_s3 + $0xe48] ss:$20 sps:$4 sm:$0xff]  }
 0x299   :  { %5326 = vmatprep.subr.bf16.mxu1 %v8643_v53  ;;  %v8695_v53 = vld [vmem:[%s11562_s3 + $0x6c8] ss:$20 sps:$4 sm:$0xff]  }
 0x29a   :  { %7512 = vmatpush3.bf16.msra.mxu0 %v8640_v54  ;;  %v8694_v54 = vld [vmem:[%s11562_s3 + $0xd08] ss:$20 sps:$4 sm:$0xff]  }
 0x29b   :  { %7513 = vmatprep.subr.bf16.mxu0 %v8644_v55  ;;  %v8697_v55 = vld [vmem:[%s11562_s3 + $0xe70] ss:$20 sps:$4 sm:$0xff]  }
 0x29c   :  { %5327 = vmatpush1.bf16.msra.mxu1 %v8641_v57  ;;  %v8696_v57 = vld [vmem:[%s11562_s3 + $0x588] ss:$20 sps:$4 sm:$0xff]  }
 0x29d   :  { %5328 = vmatprep.subr.bf16.mxu1 %v8648_v60  ;;  %v8699_v60 = vld [vmem:[%s11562_s3 + $0x6f0] ss:$20 sps:$4 sm:$0xff]  }
 0x29e   :  { %7514 = vmatpush3.bf16.msra.mxu0 %v8645_v61  ;;  %v8698_v61 = vld [vmem:[%s11562_s3 + $0xd30] ss:$20 sps:$4 sm:$0xff]  }
 0x29f   :  { %7543 = vmatprep.subr.bf16.mxu0 %v8649_v10  ;;  %v8701_v10 = vld [vmem:[%s11562_s3 + $0xe98] ss:$20 sps:$4 sm:$0xff]  }
 0x2a0   :  { %5329 = vmatpush1.bf16.msra.mxu1 %v8646_v35  ;;  %v8700_v35 = vld [vmem:[%s11562_s3 + $0x5b0] ss:$20 sps:$4 sm:$0xff]  }
 0x2a1   :  { %5715 = vmatmul.mubr.bf16.vlgmr.msra.gmra.mrb[16].mxu0 %v9958_v63  ;;  %7477 = vmatprep.subr.bf16.mxu1 %v8651_v0  ;;  %v8656_v63 = vld [vmem:[%s11562_s3 + $0x38] ss:$20 sps:$4 sm:$0xff]  }
 0x2a2   :  { %7544 = vmatpush3.bf16.msra.mxu0 %v8650_v58  ;;  %5794 = vmatprep.mubr.bf16.mxu0 %v10181_v44  ;;  %v8659_v44 = vld [vmem:[%s11562_s3 + $0x1a0] ss:$20 sps:$4 sm:$0xff]   ;;  %v8703_v0 = vld [vmem:[%s11562_s3 + $0x718] ss:$20 sps:$4 sm:$0xff]  }
 0x2a3   :  { %5347 = vmatmul.mubr.bf16.vlgmr.msra.gmra.mrb[16].mxu1 %v10909_v23  ;;  %7545 = vmatprep.subr.bf16.mxu0 %v8653_v2  ;;  %v8702_v58 = vld [vmem:[%s11562_s3 + $0xd58] ss:$20 sps:$4 sm:$0xff]   ;;  %v8705_v2 = vld [vmem:[%s11562_s3 + $0xec0] ss:$20 sps:$4 sm:$0xff]  }
 0x2a4   :  { %7478 = vmatpush3.bf16.msra.mxu1 %v8652_v4  ;;  %5674 = vmatprep.mubr.bf16.mxu1 %v9731_v27  ;;  %v8660_v27 = vld [vmem:[%s11562_s3 + $0x60] ss:$20 sps:$4 sm:$0xff]   ;;  %v8704_v4 = vld [vmem:[%s11562_s3 + $0x5d8] ss:$20 sps:$4 sm:$0xff]  }
 0x2a5   :  { %7479 = vmatprep.subr.bf16.mxu1 %v8655_v18  ;;  %v8707_v18 = vld [vmem:[%s11562_s3 + $0x740] ss:$20 sps:$4 sm:$0xff]  }
 0x2a6   :  { %7546 = vmatpush3.bf16.msra.mxu0 %v8654_v17  ;;  %v8706_v17 = vld [vmem:[%s11562_s3 + $0xd80] ss:$20 sps:$4 sm:$0xff]  }
 0x2a7   :  { %7547 = vmatprep.subr.bf16.mxu0 %v8657_v9  ;;  %v8709_v9 = vld [vmem:[%s11562_s3 + $0xee8] ss:$20 sps:$4 sm:$0xff]  }
 0x2a8   :  { %7480 = vmatpush3.bf16.msra.mxu1 %v8656_v63  ;;  %v8708_v63 = vld [vmem:[%s11562_s3 + $0x600] ss:$20 sps:$4 sm:$0xff]  }
 0x2a9   :  { %7481 = vmatprep.subr.bf16.mxu1 %v8659_v44  ;;  %v8711_v44 = vld [vmem:[%s11562_s3 + $0x768] ss:$20 sps:$4 sm:$0xff]  }
 0x2aa   :  { %7548 = vmatpush3.bf16.msra.mxu0 %v8658_v11  ;;  %v8710_v11 = vld [vmem:[%s11562_s3 + $0xda8] ss:$20 sps:$4 sm:$0xff]  }
 0x2ab   :  { %7549 = vmatprep.subr.bf16.mxu0 %v8661_v12  ;;  %v8739_v12 = vld [vmem:[%s11564_s5 + $0x4] ss:$8 sps:$4 sm:$0xff]  }
 0x2ac   :  { %7482 = vmatpush3.bf16.msra.mxu1 %v8660_v27  ;;  %v8712_v27 = vld [vmem:[%s11562_s3 + $0x628] ss:$20 sps:$4 sm:$0xff]  }
 0x2ad   :  { %7483 = vmatprep.subr.bf16.mxu1 %v8663_v13  ;;  %v8713_v13 = vld [vmem:[%s11562_s3 + $0xb50] ss:$20 sps:$4 sm:$0xff]  }
 0x2ae   :  { %7550 = vmatpush3.bf16.msra.mxu0 %v8662_v15  ;;  %v8737_v15 = vld [vmem:[%s11564_s5] ss:$8 sps:$4 sm:$0xff]  }
 0x2af   :  { %7551 = vmatprep.subr.bf16.mxu0 %v8665_v21  ;;  %v8714_v21 = vld [vmem:[%s11562_s3 + $0xa10] ss:$20 sps:$4 sm:$0xff]  }
 0x2b0   :  { %7484 = vmatpush3.bf16.msra.mxu1 %v8664_v19  ;;  %v8742_v19 = vld [vmem:[%s11564_s5 + $0x14] ss:$8 sps:$4 sm:$0xff]  }
 0x2b1   :  { %7485 = vmatprep.subr.bf16.mxu1 %v8667_v22  ;;  %v8715_v22 = vld [vmem:[%s11562_s3 + $0xb78] ss:$20 sps:$4 sm:$0xff]  }
 0x2b2   :  { %7552 = vmatpush3.bf16.msra.mxu0 %v8666_v14  ;;  %v8740_v14 = vld [vmem:[%s11564_s5 + $0x10] ss:$8 sps:$4 sm:$0xff]  }
 0x2b3   :  { %7553 = vmatprep.subr.bf16.mxu0 %v8669_v26  ;;  %v8745_v26 = vld [vmem:[%s11564_s5 + $0x24] ss:$8 sps:$4 sm:$0xff]  }
 0x2b4   :  { %7486 = vmatpush3.bf16.msra.mxu1 %v8668_v45  ;;  %v8717_v45 = vld [vmem:[%s11562_s3 + $0xba0] ss:$20 sps:$4 sm:$0xff]  }
 0x2b5   :  { %7487 = vmatprep.subr.bf16.mxu1 %v8671_v29  ;;  %v8748_v29 = vld [vmem:[%s11564_s5 + $0x34] ss:$8 sps:$4 sm:$0xff]  }
 0x2b6   :  { %7554 = vmatpush3.bf16.msra.mxu0 %v8670_v31  ;;  %v8719_v31 = vld [vmem:[%s11562_s3 + $0xbc8] ss:$20 sps:$4 sm:$0xff]  }
 0x2b7   :  { %7555 = vmatprep.subr.bf16.mxu0 %v8673_v32  ;;  %v8746_v32 = vld [vmem:[%s11564_s5 + $0x30] ss:$8 sps:$4 sm:$0xff]  }
 0x2b8   :  { %7488 = vmatpush3.bf16.msra.mxu1 %v8672_v33  ;;  %v8751_v33 = vld [vmem:[%s11564_s5 + $0x44] ss:$8 sps:$4 sm:$0xff]  }
 0x2b9   :  { %7489 = vmatprep.subr.bf16.mxu1 %v8675_v59  ;;  %v8720_v59 = vld [vmem:[%s11562_s3 + $0xa88] ss:$20 sps:$4 sm:$0xff]  }
 0x2ba   :  { %7556 = vmatpush3.bf16.msra.mxu0 %v8674_v36  ;;  %v8721_v36 = vld [vmem:[%s11562_s3 + $0xbf0] ss:$20 sps:$4 sm:$0xff]  }
 0x2bb   :  { %7557 = vmatprep.subr.bf16.mxu0 %v8677_v38  ;;  %v8749_v38 = vld [vmem:[%s11564_s5 + $0x40] ss:$8 sps:$4 sm:$0xff]  }
 0x2bc   :  { %7490 = vmatpush3.bf16.msra.mxu1 %v8676_v39  ;;  %v8754_v39 = vld [vmem:[%s11564_s5 + $0x54] ss:$8 sps:$4 sm:$0xff]  }
 0x2bd   :  { %7491 = vmatprep.subr.bf16.mxu1 %v8679_v8  ;;  %v8722_v8 = vld [vmem:[%s11562_s3 + $0xab0] ss:$20 sps:$4 sm:$0xff]  }
 0x2be   :  { %7558 = vmatpush3.bf16.msra.mxu0 %v8678_v41  ;;  %v8723_v41 = vld [vmem:[%s11562_s3 + $0xc18] ss:$20 sps:$4 sm:$0xff]  }
 0x2bf   :  { %7587 = vmatprep.subr.bf16.mxu0 %v8681_v42  ;;  %v8752_v42 = vld [vmem:[%s11564_s5 + $0x50] ss:$8 sps:$4 sm:$0xff]  }
 0x2c0   :  { %7492 = vmatpush3.bf16.msra.mxu1 %v8680_v43  ;;  %v8757_v43 = vld [vmem:[%s11564_s5 + $0x64] ss:$8 sps:$4 sm:$0xff]  }
 0x2c1   :  { %5795 = vmatmul.mubr.bf16.vlgmr.msra.gmra.mrb[20].mxu0 %v10402_v34  ;;  %7521 = vmatprep.subr.bf16.mxu1 %v8683_v6  ;;  %v8688_v34 = vld [vmem:[%s11562_s3 + $0x538] ss:$20 sps:$4 sm:$0xff]  }
 0x2c2   :  { %7588 = vmatpush3.bf16.msra.mxu0 %v8682_v56  ;;  %5874 = vmatprep.mubr.bf16.mxu0 %v10613_v25  ;;  %v8691_v25 = vld [vmem:[%s11562_s3 + $0x6a0] ss:$20 sps:$4 sm:$0xff]   ;;  %v8724_v6 = vld [vmem:[%s11562_s3 + $0xad8] ss:$20 sps:$4 sm:$0xff]  }
 0x2c3   :  { %5675 = vmatmul.mubr.bf16.vlgmr.msra.gmra.mrb[20].mxu1 %v9739_v30  ;;  %7589 = vmatprep.subr.bf16.mxu0 %v8685_v46  ;;  %v8690_v30 = vld [vmem:[%s11562_s3 + $0xce0] ss:$20 sps:$4 sm:$0xff]  }
 0x2c4   :  { %7522 = vmatpush3.bf16.msra.mxu1 %v8684_v47  ;;  %5754 = vmatprep.mubr.bf16.mxu1 %v9956_v62  ;;  %v8692_v62 = vld [vmem:[%s11562_s3 + $0x560] ss:$20 sps:$4 sm:$0xff]  }
 0x2c5   :  { %7523 = vmatprep.subr.bf16.mxu1 %v8687_v49  ;;  %v8725_v56 = vld [vmem:[%s11562_s3 + $0xc40] ss:$20 sps:$4 sm:$0xff]  }
 0x2c6   :  { %7590 = vmatpush3.bf16.msra.mxu0 %v8686_v50  ;;  %v8755_v46 = vld [vmem:[%s11564_s5 + $0x60] ss:$8 sps:$4 sm:$0xff]   ;;  %v8760_v47 = vld [vmem:[%s11564_s5 + $0x74] ss:$8 sps:$4 sm:$0xff]  }
 0x2c7   :  { %7591 = vmatprep.subr.bf16.mxu0 %v8689_v16  ;;  %v8726_v49 = vld [vmem:[%s11562_s3 + $0xb00] ss:$20 sps:$4 sm:$0xff]   ;;  %v8727_v50 = vld [vmem:[%s11562_s3 + $0xc68] ss:$20 sps:$4 sm:$0xff]   ;;  %v8758_v16 = vld [vmem:[%s11564_s5 + $0x70] ss:$8 sps:$4 sm:$0xff]  }
 0x2c8   :  { %7524 = vmatpush3.bf16.msra.mxu1 %v8688_v34  ;;  %v8763_v34 = vld [vmem:[%s11564_s5 + $0x84] ss:$8 sps:$4 sm:$0xff]  }
 0x2c9   :  { %7525 = vmatprep.subr.bf16.mxu1 %v8691_v25  ;;  %v8728_v25 = vld [vmem:[%s11562_s3 + $0xb28] ss:$20 sps:$4 sm:$0xff]  }
 0x2ca   :  { %7592 = vmatpush3.bf16.msra.mxu0 %v8690_v30  ;;  %v8761_v30 = vld [vmem:[%s11564_s5 + $0x80] ss:$8 sps:$4 sm:$0xff]  }
 0x2cb   :  { %7593 = vmatprep.subr.bf16.mxu0 %v8693_v51  ;;  %v8766_v51 = vld [vmem:[%s11564_s5 + $0x94] ss:$8 sps:$4 sm:$0xff]  }
 0x2cc   :  { %7526 = vmatpush3.bf16.msra.mxu1 %v8692_v62  ;;  %v8729_v62 = vld [vmem:[%s11562_s3 + $0xf10] ss:$20 sps:$4 sm:$0xff]  }
 0x2cd   :  { %7527 = vmatprep.subr.bf16.mxu1 %v8695_v53  ;;  %v8863_v53 = vmov 0.0  }
 0x2ce   :  { %7594 = vmatpush3.bf16.msra.mxu0 %v8694_v54  ;;  %v8764_v54 = vld [vmem:[%s11564_s5 + $0x90] ss:$8 sps:$4 sm:$0xff]  }
 0x2cf   :  { %7595 = vmatprep.subr.bf16.mxu0 %v8697_v55  ;;  %v8769_v55 = vld [vmem:[%s11564_s5 + $0xa4] ss:$8 sps:$4 sm:$0xff]  }
 0x2d0   :  { %7528 = vmatpush3.bf16.msra.mxu1 %v8696_v57  ;;  %v8730_v57 = vld [vmem:[%s11562_s3 + $0xf38] ss:$20 sps:$4 sm:$0xff]  }
 0x2d1   :  { %7529 = vmatprep.subr.bf16.mxu1 %v8699_v60  ;;  %v8767_v60 = vld [vmem:[%s11564_s5 + $0xa0] ss:$8 sps:$4 sm:$0xff]  }
 0x2d2   :  { %7596 = vmatpush3.bf16.msra.mxu0 %v8698_v61  ;;  %v8731_v61 = vld [vmem:[%s11562_s3 + $0xf60] ss:$20 sps:$4 sm:$0xff]  }
 0x2d3   :  { %7597 = vmatprep.subr.bf16.mxu0 %v8701_v10  ;;  %v8770_v10 = vld [vmem:[%s11564_s5 + $0xb0] ss:$8 sps:$4 sm:$0xff]  }
 0x2d4   :  { %7530 = vmatpush3.bf16.msra.mxu1 %v8700_v35  ;;  %v8775_v35 = vld [vmem:[%s11564_s5 + $0xc4] ss:$8 sps:$4 sm:$0xff]  }
 0x2d5   :  { %7531 = vmatprep.subr.bf16.mxu1 %v8703_v0  ;;  %v8732_v0 = vld [vmem:[%s11562_s3 + $0xf88] ss:$20 sps:$4 sm:$0xff]  }
 0x2d6   :  { %7598 = vmatpush3.bf16.msra.mxu0 %v8702_v58  ;;  %v8773_v58 = vld [vmem:[%s11564_s5 + $0xc0] ss:$8 sps:$4 sm:$0xff]  }
 0x2d7   :  { %7599 = vmatprep.subr.bf16.mxu0 %v8705_v2  ;;  %v8778_v2 = vld [vmem:[%s11564_s5 + $0xd4] ss:$8 sps:$4 sm:$0xff]  }
 0x2d8   :  { %7532 = vmatpush3.bf16.msra.mxu1 %v8704_v4  ;;  %v8733_v4 = vld [vmem:[%s11562_s3 + $0xfb0] ss:$20 sps:$4 sm:$0xff]  }
 0x2d9   :  { %7533 = vmatprep.subr.bf16.mxu1 %v8707_v18  ;;  %v8776_v18 = vld [vmem:[%s11564_s5 + $0xd0] ss:$8 sps:$4 sm:$0xff]  }
 0x2da   :  { %7600 = vmatpush3.bf16.msra.mxu0 %v8706_v17  ;;  %v8781_v17 = vld [vmem:[%s11564_s5 + $0xe4] ss:$8 sps:$4 sm:$0xff]  }
 0x2db   :  { %7601 = vmatprep.subr.bf16.mxu0 %v8709_v9  ;;  %v8734_v9 = vld [vmem:[%s11562_s3 + $0xfd8] ss:$20 sps:$4 sm:$0xff]  }
 0x2dc   :  { %7534 = vmatpush3.bf16.msra.mxu1 %v8708_v63  ;;  %v8779_v63 = vld [vmem:[%s11564_s5 + $0xe0] ss:$8 sps:$4 sm:$0xff]  }
 0x2dd   :  { %7535 = vmatprep.subr.bf16.mxu1 %v8711_v44  ;;  %v8784_v44 = vld [vmem:[%s11564_s5 + $0xf4] ss:$8 sps:$4 sm:$0xff]  }
 0x2de   :  { %7602 = vmatpush3.bf16.msra.mxu0 %v8710_v11  ;;  %v8735_v11 = vld [vmem:[%s11562_s3 + $0x1000] ss:$20 sps:$4 sm:$0xff]  }
 0x2df   :  { %6429 = vmatprep.subr.bf16.mxu0 %v8739_v12  ;;  %v8782_v12 = vld [vmem:[%s11564_s5 + $0xf0] ss:$8 sps:$4 sm:$0xff]  }
 0x2e0   :  { %7536 = vmatpush3.bf16.msra.mxu1 %v8712_v27  ;;  %v8787_v27 = vld [vmem:[%s11564_s5 + $0x104] ss:$8 sps:$4 sm:$0xff]  }
 0x2e1   :  { %5875 = vmatmul.mubr.bf16.vlgmr.msra.gmra.mrb[24].mxu0 %v10807_v40  ;;  %7565 = vmatprep.subr.bf16.mxu1 %v8713_v13  ;;  %v8716_v40 = vld [vmem:[%s11562_s3 + $0xa38] ss:$20 sps:$4 sm:$0xff]   ;;  %v8736_v13 = vld [vmem:[%s11562_s3 + $0x1028] ss:$20 sps:$4 sm:$0xff]  }
 0x2e2   :  { %6430 = vmatpush1.bf16.msra.mxu0 %v8737_v15 }
 0x2e3   :  { %5755 = vmatmul.mubr.bf16.vlgmr.msra.gmra.mrb[24].mxu1 %v10189_v48  ;;  %6431 = vmatprep.subr.bf16.mxu0 %v8742_v19  ;;  %v8743_v48 = vld [vmem:[%s11564_s5 + $0x20] ss:$8 sps:$4 sm:$0xff]  }
 0x2e4   :  { %7566 = vmatpush3.bf16.msra.mxu1 %v8714_v21  ;;  %5834 = vmatprep.mubr.bf16.mxu1 %v10407_v37  ;;  %v8718_v37 = vld [vmem:[%s11562_s3 + $0xa60] ss:$20 sps:$4 sm:$0xff]  }
 0x2e5   :  { %7567 = vmatprep.subr.bf16.mxu1 %v8715_v22 }
 0x2e6   :  { %6432 = vmatpush1.bf16.msra.mxu0 %v8740_v14  ;;  %v11383_v14 = vld [vmem:[%s11565_s4] sm:$0x1f] }
 0x2e7   :  { %6433 = vmatprep.subr.bf16.mxu0 %v8745_v26  ;;  %v2354_v26 = vrot.slane %v11383_v14, %v9902_v28 }
 0x2e8   :  { %7568 = vmatpush3.bf16.msra.mxu1 %v8716_v40  ;;  %v2342_v40 = vrot.slane %v11383_v14, %v9696_v5 }
 0x2e9   :  { %7569 = vmatprep.subr.bf16.mxu1 %v8717_v45 }
 0x2ea   :  { %6434 = vmatpush1.bf16.msra.mxu0 %v8743_v48 }
 0x2eb   :  { %6435 = vmatprep.subr.bf16.mxu0 %v8748_v29 }
 0x2ec   :  { %7570 = vmatpush3.bf16.msra.mxu1 %v8718_v37 }
 0x2ed   :  { %7571 = vmatprep.subr.bf16.mxu1 %v8719_v31 }
 0x2ee   :  { %6436 = vmatpush1.bf16.msra.mxu0 %v8746_v32 }
 0x2ef   :  { %6437 = vmatprep.subr.bf16.mxu0 %v8751_v33 }
 0x2f0   :  { %7572 = vmatpush3.bf16.msra.mxu1 %v8720_v59 }
 0x2f1   :  { %7573 = vmatprep.subr.bf16.mxu1 %v8721_v36 }
 0x2f2   :  { %6438 = vmatpush1.bf16.msra.mxu0 %v8749_v38 }
 0x2f3   :  { %6439 = vmatprep.subr.bf16.mxu0 %v8754_v39 }
 0x2f4   :  { %7574 = vmatpush3.bf16.msra.mxu1 %v8722_v8 }
 0x2f5   :  { %7575 = vmatprep.subr.bf16.mxu1 %v8723_v41 }
 0x2f6   :  { %6440 = vmatpush1.bf16.msra.mxu0 %v8752_v42 }
 0x2f7   :  { %6441 = vmatprep.subr.bf16.mxu0 %v8757_v43 }
 0x2f8   :  { %7576 = vmatpush3.bf16.msra.mxu1 %v8724_v6 }
 0x2f9   :  { %7577 = vmatprep.subr.bf16.mxu1 %v8725_v56 }
 0x2fa   :  { %6442 = vmatpush1.bf16.msra.mxu0 %v8755_v46 }
 0x2fb   :  { %6443 = vmatprep.subr.bf16.mxu0 %v8760_v47  ;;  %v8785_v47 = vld [vmem:[%s11564_s5 + $0x100] ss:$8 sps:$4 sm:$0xff]  }
 0x2fc   :  { %7578 = vmatpush3.bf16.msra.mxu1 %v8726_v49 }
 0x2fd   :  { %7579 = vmatprep.subr.bf16.mxu1 %v8727_v50  ;;  %v8790_v50 = vld [vmem:[%s11564_s5 + $0x114] ss:$8 sps:$4 sm:$0xff]  }
 0x2fe   :  { %6444 = vmatpush1.bf16.msra.mxu0 %v8758_v16 }
 0x2ff   :  { %6445 = vmatprep.subr.bf16.mxu0 %v8763_v34  ;;  %v8788_v34 = vld [vmem:[%s11564_s5 + $0x110] ss:$8 sps:$4 sm:$0xff]  }
 0x300   :  { %7580 = vmatpush3.bf16.msra.mxu1 %v8728_v25  ;;  %v8793_v25 = vld [vmem:[%s11564_s5 + $0x124] ss:$8 sps:$4 sm:$0xff]  }
 0x301   :  { %7618 = vmatprep.subr.bf16.mxu1 %v8863_v53 }
 0x302   :  { %6446 = vmatpush1.bf16.msra.mxu0 %v8761_v30  ;;  %v8791_v30 = vld [vmem:[%s11564_s5 + $0x120] ss:$8 sps:$4 sm:$0xff]  }
 0x303   :  { %5835 = vmatmul.mubr.bf16.vlgmr.msra.gmra.mrb[28].mxu1 %v10605_v3  ;;  %6447 = vmatprep.subr.bf16.mxu0 %v8766_v51  ;;  %v8772_v3 = vld [vmem:[%s11564_s5 + $0xb4] ss:$8 sps:$4 sm:$0xff]  }
 0x304   :  { %7619 = vmatpush3.bf16.msra.mxu1 %v8729_v62  ;;  %7634 = vmatprep.mubr.msk.bf16.mxu1 %vm8864_vm0, %v8863_v53  ;;  %v8796_v51 = vld [vmem:[%s11564_s5 + $0x134] ss:$8 sps:$4 sm:$0xff]   ;;  %v8794_v62 = vld [vmem:[%s11564_s5 + $0x130] ss:$8 sps:$4 sm:$0xff]  }
 0x305   :  { %7620 = vmatprep.subr.bf16.mxu1 %v8863_v53 }
 0x306   :  { %6448 = vmatpush1.bf16.msra.mxu0 %v8764_v54  ;;  %v8797_v54 = vld [vmem:[%s11564_s5 + $0x140] ss:$8 sps:$4 sm:$0xff]  }
 0x307   :  { %6449 = vmatprep.subr.bf16.mxu0 %v8769_v55  ;;  %v8802_v55 = vld [vmem:[%s11564_s5 + $0x154] ss:$8 sps:$4 sm:$0xff]  }
 0x308   :  { %7621 = vmatpush3.bf16.msra.mxu1 %v8730_v57  ;;  %v8800_v57 = vld [vmem:[%s11564_s5 + $0x150] ss:$8 sps:$4 sm:$0xff]  }
 0x309   :  { %7622 = vmatprep.subr.bf16.mxu1 %v8863_v53 }
 0x30a   :  { %6450 = vmatpush1.bf16.msra.mxu0 %v8767_v60  ;;  %v8805_v60 = vld [vmem:[%s11564_s5 + $0x164] ss:$8 sps:$4 sm:$0xff]  }
 0x30b   :  { %6451 = vmatprep.subr.bf16.mxu0 %v8772_v3 }
 0x30c   :  { %7623 = vmatpush3.bf16.msra.mxu1 %v8731_v61 }
 0x30d   :  { %7624 = vmatprep.subr.bf16.mxu1 %v8863_v53 }
 0x30e   :  { %6452 = vmatpush1.bf16.msra.mxu0 %v8770_v10 }
 0x30f   :  { %6453 = vmatprep.subr.bf16.mxu0 %v8775_v35 }
 0x310   :  { %7625 = vmatpush3.bf16.msra.mxu1 %v8732_v0 }
 0x311   :  { %7626 = vmatprep.subr.bf16.mxu1 %v8863_v53 }
 0x312   :  { %6454 = vmatpush1.bf16.msra.mxu0 %v8773_v58  ;;  %v2358_v58 = vrot.slane %v11383_v14, %v10094_v52  ;;  %v8806_v52 = vld [vmem:[%s11564_s5 + $0x170] ss:$8 sps:$4 sm:$0xff]  }
 0x313   :  { %6455 = vmatprep.subr.bf16.mxu0 %v8778_v2  ;;  %v8803_v2 = vld [vmem:[%s11564_s5 + $0x160] ss:$8 sps:$4 sm:$0xff]  }
 0x314   :  { %7627 = vmatpush3.bf16.msra.mxu1 %v8733_v4 }
 0x315   :  { %7628 = vmatprep.subr.bf16.mxu1 %v8863_v53 }
 0x316   :  { %6456 = vmatpush1.bf16.msra.mxu0 %v8776_v18 }
 0x317   :  { %6457 = vmatprep.subr.bf16.mxu0 %v8781_v17  ;;  %v8808_v17 = vld [vmem:[%s11564_s5 + $0x174] ss:$8 sps:$4 sm:$0xff]  }
 0x318   :  { %7629 = vmatpush3.bf16.msra.mxu1 %v8734_v9 }
 0x319   :  { %7630 = vmatprep.subr.bf16.mxu1 %v8863_v53 }
 0x31a   :  { %6458 = vmatpush1.bf16.msra.mxu0 %v8779_v63 }
 0x31b   :  { %6459 = vmatprep.subr.bf16.mxu0 %v8784_v44 }
 0x31c   :  { %7631 = vmatpush3.bf16.msra.mxu1 %v8735_v11 }
 0x31d   :  { %7632 = vmatprep.subr.bf16.mxu1 %v8863_v53  ;;  %v8799_v53 = vld [vmem:[%s11564_s5 + $0x144] ss:$8 sps:$4 sm:$0xff]  }
 0x31e   :  { %6460 = vmatpush1.bf16.msra.mxu0 %v8782_v12  ;;  %v8811_v12 = vld [vmem:[%s11564_s5 + $0x184] ss:$8 sps:$4 sm:$0xff]  }
 0x31f   :  { %6470 = vmatprep.subr.bf16.mxu0 %v8787_v27 }
 0x320   :  { %7633 = vmatpush3.bf16.msra.mxu1 %v8736_v13  ;;  %v8809_v13 = vld [vmem:[%s11564_s5 + $0x180] ss:$8 sps:$4 sm:$0xff]  }
 0x323   :  { %7635 = vmatmul.mubr.bf16.vlgmr.msra.gmra.mrb[32].mxu1 %v10909_v23  ;;  %v2346_v23 = vrot.slane %v11383_v14, %v9704_v7 }
 0x354   :  { %v11378_v15 = vpop.f32.mrb[12].mxu0 }
 0x355   :  { %v5637_v19 = vpop.f32.mrb[13].mxu0 }
 0x356   :  { %v5639_v21 = vpop.f32.mrb[14].mxu0  ;;  %v7641_v45 = vadd.f32 %v5637_v19, %v2354_v26  ;;  %v8814_v19 = vld [vmem:[%s11564_s5 + $0x194] ss:$8 sps:$4 sm:$0xff]   ;;  %v8815_v26 = vld [vmem:[%s11564_s5 + $0x1a0] ss:$8 sps:$4 sm:$0xff]  }
 0x357   :  { %v5640_v22 = vpop.f32.mrb[15].mxu0  ;;  %v8812_v21 = vld [vmem:[%s11564_s5 + $0x190] ss:$8 sps:$4 sm:$0xff]  }
 0x358   :  { %v5925_v38 = vmul.f32 0.2, %v7641_v45  ;;  %v8817_v22 = vld [vmem:[%s11564_s5 + $0x1a4] ss:$8 sps:$4 sm:$0xff]  }
 0x35a   :  { %v5930_v6 = vmax.f32 %v7641_v45, %v5925_v38  ;;  %v8818_v45 = vld [vmem:[%s11564_s5 + $0x1b0] ss:$8 sps:$4 sm:$0xff]  }
 0x35c   :  { %v5935_v16 = vpack.c.bf16 %v5930_v6, %v5930_v6 }
 0x374   :  { %v7515_v48 = vpop.f32.mrb[16].mxu0 }
 0x375   :  { %v7516_v29 = vpop.f32.mrb[17].mxu0 }
 0x376   :  { %v11391_v37 = vadd.f32 %v7516_v29, %v7515_v48  ;;  %v7518_v31 = vpop.f32.mrb[18].mxu0  ;;  %v5348_v32 = vpop.f32.mrb[16].mxu1  ;;  %v8823_v48 = vld [vmem:[%s11564_s5 + $0x1c4] ss:$8 sps:$4 sm:$0xff]   ;;  %v2350_v29 = vrot.slane %v11383_v14, %v9895_v24 }
 0x377   :  { %v7638_v33 = vadd.f32 %v5348_v32, %v2342_v40  ;;  %v7519_v59 = vpop.f32.mrb[19].mxu0  ;;  %v5350_v36 = vpop.f32.mrb[17].mxu1  ;;  %v8820_v40 = vld [vmem:[%s11564_s5 + $0x1b4] ss:$8 sps:$4 sm:$0xff]   ;;  %v8824_v31 = vld [vmem:[%s11564_s5 + $0x1d0] ss:$8 sps:$4 sm:$0xff]  }
 0x378   :  { %v7639_v39 = vadd.f32 %v5350_v36, %v2346_v23  ;;  %v5352_v8 = vpop.f32.mrb[18].mxu1  ;;  %v8821_v23 = vld [vmem:[%s11564_s5 + $0x1c0] ss:$8 sps:$4 sm:$0xff]   ;;  %v7640_v32 = vadd.f32 %v11378_v15, %v2350_v29  ;;  %v8832_v15 = vld [vmem:[%s11564_s5 + $0x1f4] ss:$8 sps:$4 sm:$0xff]  }
 0x379   :  { %v5922_v28 = vmul.f32 0.2, %v7638_v33  ;;  %v5353_v41 = vpop.f32.mrb[19].mxu1 }
 0x37a   :  { %v5923_v42 = vmul.f32 0.2, %v7639_v39  ;;  %v5924_v8 = vmul.f32 0.2, %v7640_v32 }
 0x37b   :  { %v5927_v43 = vmax.f32 %v7638_v33, %v5922_v28  ;;  %v8829_v33 = vld [vmem:[%s11564_s5 + $0x1e4] ss:$8 sps:$4 sm:$0xff]  }
 0x37c   :  { %v5928_v56 = vmax.f32 %v7639_v39, %v5923_v42  ;;  %v8827_v39 = vld [vmem:[%s11564_s5 + $0x1e0] ss:$8 sps:$4 sm:$0xff]  }
 0x37d   :  { %v5932_v49 = vpack.c.bf16 %v5927_v43, %v5927_v43 }
 0x37e   :  { %v5933_v46 = vpack.c.bf16 %v5928_v56, %v5928_v56 }
 0x380   :  { %6461 = vmatprep.mubr.bf16.mxu0 %v5933_v46  ;;  %v8830_v46 = vld [vmem:[%s11564_s5 + $0x1f0] ss:$8 sps:$4 sm:$0xff]  }
 0x381   :  { %6462 = vmatmul.mubr.bf16.vlgmr.msra.gmra.mrb[28].mxu0 %v5932_v49  ;;  %v8835_v49 = vld [vmem:[%s11564_s5 + $0x204] ss:$8 sps:$4 sm:$0xff]  }
 0x382   :  { %6471 = vmatpush1.bf16.msra.mxu0 %v8785_v47  ;;  %6502 = vmatprep.mubr.bf16.mxu0 %v5935_v16  ;;  %v5929_v47 = vmax.f32 %v7640_v32, %v5924_v8  ;;  %v8833_v16 = vld [vmem:[%s11564_s5 + $0x200] ss:$8 sps:$4 sm:$0xff]  }
 0x383   :  { %6472 = vmatprep.subr.bf16.mxu0 %v8790_v50  ;;  %v6017_v32 = vld [vmem:[%s11568_s6] sm:$0x3] }
 0x386   :  { %6473 = vmatpush1.bf16.msra.mxu0 %v8788_v34  ;;  %v5934_v34 = vpack.c.bf16 %v5929_v47, %v5929_v47 }
 0x387   :  { %6474 = vmatprep.subr.bf16.mxu0 %v8793_v25  ;;  %v8838_v25 = vld [vmem:[%s11564_s5 + $0x214] ss:$8 sps:$4 sm:$0xff]  }
 0x38a   :  { %6475 = vmatpush1.bf16.msra.mxu0 %v8791_v30  ;;  %v8836_v30 = vld [vmem:[%s11564_s5 + $0x210] ss:$8 sps:$4 sm:$0xff]  }
 0x38b   :  { %6476 = vmatprep.subr.bf16.mxu0 %v8796_v51  ;;  %v8841_v51 = vld [vmem:[%s11564_s5 + $0x224] ss:$8 sps:$4 sm:$0xff]  }
 0x38e   :  { %6477 = vmatpush1.bf16.msra.mxu0 %v8794_v62  ;;  %v8839_v62 = vld [vmem:[%s11564_s5 + $0x220] ss:$8 sps:$4 sm:$0xff]  }
 0x38f   :  { %6478 = vmatprep.subr.bf16.mxu0 %v8799_v53  ;;  %v8844_v53 = vld [vmem:[%s11564_s5 + $0x234] ss:$8 sps:$4 sm:$0xff]  }
 0x392   :  { %6479 = vmatpush1.bf16.msra.mxu0 %v8797_v54  ;;  %v8847_v54 = vld [vmem:[%s11564_s5 + $0x244] ss:$8 sps:$4 sm:$0xff]  }
 0x393   :  { %6480 = vmatprep.subr.bf16.mxu0 %v8802_v55  ;;  %v8845_v55 = vld [vmem:[%s11564_s5 + $0x240] ss:$8 sps:$4 sm:$0xff]  }
 0x394   :  { %v7559_v3 = vpop.f32.mrb[20].mxu0 }
 0x395   :  { %v7560_v61 = vpop.f32.mrb[21].mxu0 }
 0x396   :  { %v11429_v10 = vadd.f32 %v7560_v61, %v7559_v3  ;;  %v7562_v35 = vpop.f32.mrb[22].mxu0  ;;  %6481 = vmatpush1.bf16.msra.mxu0 %v8800_v57  ;;  %v7493_v0 = vpop.f32.mrb[20].mxu1  ;;  %v8850_v57 = vld [vmem:[%s11564_s5 + $0x254] ss:$8 sps:$4 sm:$0xff]   ;;  %v8853_v3 = vld [vmem:[%s11564_s5 + $0x264] ss:$8 sps:$4 sm:$0xff]  }
 0x397   :  { %v7563_v4 = vpop.f32.mrb[23].mxu0  ;;  %v7494_v18 = vpop.f32.mrb[21].mxu1  ;;  %6482 = vmatprep.subr.bf16.mxu0 %v8805_v60  ;;  %v8848_v60 = vld [vmem:[%s11564_s5 + $0x250] ss:$8 sps:$4 sm:$0xff]  }
 0x398   :  { %v7495_v9 = vadd.f32 %v7494_v18, %v7493_v0  ;;  %v7496_v63 = vpop.f32.mrb[22].mxu1  ;;  %v8856_v0 = vld [vmem:[%s11564_s5 + $0x274] ss:$8 sps:$4 sm:$0xff]  }
 0x399   :  { %v7497_v44 = vpop.f32.mrb[23].mxu1 }
 0x39a   :  { %v5677_v11 = vadd.f32 %v7495_v9, %v2358_v58  ;;  %6483 = vmatpush1.bf16.msra.mxu0 %v8803_v2 }
 0x39b   :  { %6484 = vmatprep.subr.bf16.mxu0 %v8808_v17  ;;  %v8854_v17 = vld [vmem:[%s11564_s5 + $0x270] ss:$8 sps:$4 sm:$0xff]  }
 0x39c   :  { %v5717_v27 = vadd.f32 %v11391_v37, %v5677_v11  ;;  %v8826_v37 = vld [vmem:[%s11564_s5 + $0x1d4] ss:$8 sps:$4 sm:$0xff]  }
 0x39e   :  { %6485 = vmatpush1.bf16.msra.mxu0 %v8806_v52 }
 0x39f   :  { %6486 = vmatprep.subr.bf16.mxu0 %v8811_v12 }
 0x3a2   :  { %6487 = vmatpush1.bf16.msra.mxu0 %v8809_v13 }
 0x3a3   :  { %6488 = vmatprep.subr.bf16.mxu0 %v8814_v19 }
 0x3a6   :  { %6489 = vmatpush1.bf16.msra.mxu0 %v8812_v21  ;;  %v8865_v21 = vmov 1966171168  }
 0x3a7   :  { %6490 = vmatprep.subr.bf16.mxu0 %v8817_v22  ;;  %v6579_v22 = vunpack.c.l.s4 %v8865_v21 }
 0x3aa   :  { %6491 = vmatpush1.bf16.msra.mxu0 %v8815_v26  ;;  %v7454_v26 = vld.sshfl [vmem:[%s11566_s7] sm:$0x11 pattern:$0x75316420] }
 0x3ab   :  { %6492 = vmatprep.subr.bf16.mxu0 %v8820_v40  ;;  %v6580_v40 = vunpack.c.0.s8 %v6579_v22 }
 0x3ae   :  { %6493 = vmatpush1.bf16.msra.mxu0 %v8818_v45  ;;  %v6577_v45 = vcombine.high %v7454_v26, %v7454_v26 }
 0x3af   :  { %6494 = vmatprep.subr.bf16.mxu0 %v8823_v48  ;;  %v6583_v48 = vsub.s32 %v6580_v40, %v9684_v1 }
 0x3b1   :  { %v6584_v29 = vrot.slane %v7454_v26, %v6583_v48 }
 0x3b2   :  { %6495 = vmatpush1.bf16.msra.mxu0 %v8821_v23  ;;  %v6591_v23 = vrot.slane %v6577_v45, %v6583_v48 }
 0x3b3   :  { %6496 = vmatprep.subr.bf16.mxu0 %v8826_v37  ;;  %v14_v37 = vstv %s11567_s8 }
 0x3b4   :  { %v7603_v59 = vpop.f32.mrb[24].mxu0  ;;  %6626 = vmatprep.mubr.bf16.mxu1 %v6591_v23  ;;  %15 = vst [vmem:[#allocation2] sm:$0x1] %v14_v37 }
 0x3b5   :  { %v7604_v36 = vpop.f32.mrb[25].mxu0 }
 0x3b6   :  { %v7605_v24 = vadd.f32 %v7604_v36, %v7603_v59  ;;  %v7606_v14 = vpop.f32.mrb[26].mxu0  ;;  %6497 = vmatpush1.bf16.msra.mxu0 %v8824_v31  ;;  %v7537_v38 = vpop.f32.mrb[24].mxu1  ;;  %v6026_v59 = vrot.slane %v6017_v32, %v9704_v7 }
 0x3b7   :  { %v7607_v28 = vpop.f32.mrb[27].mxu0  ;;  %v7538_v41 = vpop.f32.mrb[25].mxu1  ;;  %6498 = vmatprep.subr.bf16.mxu0 %v8829_v33  ;;  %v6022_v33 = vrot.slane %v6017_v32, %v9696_v5 }
 0x3b8   :  { %v7539_v42 = vadd.f32 %v7538_v41, %v7537_v38  ;;  %v7540_v43 = vpop.f32.mrb[26].mxu1 }
 0x3b9   :  { %v7541_v6 = vpop.f32.mrb[27].mxu1 }
 0x3ba   :  { %v5757_v56 = vadd.f32 %v7539_v42, %v5717_v27  ;;  %6499 = vmatpush1.bf16.msra.mxu0 %v8827_v39 }
 0x3bb   :  { %6500 = vmatprep.subr.bf16.mxu0 %v8832_v15  ;;  %v6559_v31 = vld [vmem:[#allocation2] sm:$0x1] }
 0x3bc   :  { %v5797_v50 = vadd.f32 %v11429_v10, %v5757_v56  ;;  %v8851_v10 = vld [vmem:[%s11564_s5 + $0x260] ss:$8 sps:$4 sm:$0xff]   ;;  %6562 = vperm.xlu0 %7704, %v6559_v31  }
 0x3be   :  { %6501 = vmatpush1.bf16.msra.mxu0 %v8830_v46 }
 0x3bf   :  { %6511 = vmatprep.subr.bf16.mxu0 %v8835_v49 }
 0x3c1   :  { %6503 = vmatmul.mubr.bf16.vlgmr.msra.gmra.mrb[28].mxu0 %v5934_v34 }
 0x3c2   :  { %6512 = vmatpush1.bf16.msra.mxu0 %v8833_v16  ;;  %6543 = vmatprep.mubr.bf16.mxu0 %v8862_v20  ;;  %v8842_v20 = vld [vmem:[%s11564_s5 + $0x230] ss:$8 sps:$4 sm:$0xff]  }
 0x3c3   :  { %6513 = vmatprep.subr.bf16.mxu0 %v8838_v25 }
 0x3c6   :  { %6514 = vmatpush1.bf16.msra.mxu0 %v8836_v30 }
 0x3c7   :  { %6515 = vmatprep.subr.bf16.mxu0 %v8841_v51 }
 0x3ca   :  { %6516 = vmatpush1.bf16.msra.mxu0 %v8839_v62 }
 0x3cb   :  { %6517 = vmatprep.subr.bf16.mxu0 %v8844_v53 }
 0x3ce   :  { %6518 = vmatpush1.bf16.msra.mxu0 %v8842_v20 }
 0x3cf   :  { %6519 = vmatprep.subr.bf16.mxu0 %v8847_v54 }
 0x3d2   :  { %6520 = vmatpush1.bf16.msra.mxu0 %v8845_v55 }
 0x3d3   :  { %6521 = vmatprep.subr.bf16.mxu0 %v8850_v57 }
 0x3d6   :  { %v7581_v61 = vpop.f32.mrb[28].mxu1  ;;  %6522 = vmatpush1.bf16.msra.mxu0 %v8848_v60 }
 0x3d7   :  { %v7582_v35 = vpop.f32.mrb[29].mxu1  ;;  %6523 = vmatprep.subr.bf16.mxu0 %v8853_v3 }
 0x3d8   :  { %v7583_v58 = vadd.f32 %v7582_v35, %v7581_v61  ;;  %v7584_v2 = vpop.f32.mrb[30].mxu1 }
 0x3d9   :  { %v7585_v4 = vpop.f32.mrb[31].mxu1 }
 0x3da   :  { %v5837_v18 = vadd.f32 %v7583_v58, %v5797_v50  ;;  %6524 = vmatpush1.bf16.msra.mxu0 %v8851_v10 }
 0x3db   :  { %6525 = vmatprep.subr.bf16.mxu0 %v8856_v0 }
 0x3dc   :  { %v5877_v9 = vadd.f32 %v7605_v24, %v5837_v18 }
 0x3de   :  { %6526 = vmatpush1.bf16.msra.mxu0 %v8854_v17 }
 0x3f6   :  { %v5916_v63 = vpop.f32.mrb[32].mxu1 }
 0x3f7   :  { %v5917_v44 = vadd.f32 %v5916_v63, %v5877_v9  ;;  %v7636_v11 = vpop.f32.mrb[33].mxu1 }
 0x3f8   :  { %v5919_v52 = vpop.f32.mrb[34].mxu1 }
 0x3f9   :  { %v5926_v12 = vmul.f32 0.2, %v5917_v44  ;;  %v7637_v27 = vpop.f32.mrb[35].mxu1 }
 0x3fb   :  { %v5931_v13 = vmax.f32 %v5917_v44, %v5926_v12 }
 0x3fd   :  { %v5936_v19 = vpack.c.bf16 %v5931_v13, %v5931_v13 }
 0x3ff   :  { %6544 = vmatmul.mubr.bf16.vlgmr.msra.gmra.mrb[28].mxu0 %v5936_v19 }
 0x43b   :  { %v6563_v6 = vpop.permute.xlu0 %6562 }
 0x43c   :  { %v6568_v56 = vrot.slane %v6563_v6, %v9696_v5 }
 0x4d2   :  { %v6545_v36 = vpop.f32.mrb[28].mxu0 }
 0x4d3   :  { %v7642_v1 = vadd.f32 %v6545_v36, %v6022_v33  ;;  %v6547_v24 = vpop.f32.mrb[29].mxu0 }
 0x4d4   :  { %v7643_v14 = vadd.f32 %v6547_v24, %v6026_v59  ;;  %v6549_v38 = vpop.f32.mrb[30].mxu0 }
 0x4d5   :  { %v6552_v39 = vmul.f32 0.2, %v7642_v1  ;;  %v6550_v8 = vpop.f32.mrb[31].mxu0 }
 0x4d6   :  { %v6553_v28 = vmul.f32 0.2, %v7643_v14 }
 0x4d7   :  { %v6554_v41 = vmax.f32 %v7642_v1, %v6552_v39 }
 0x4d8   :  { %v6555_v15 = vmax.f32 %v7643_v14, %v6553_v28 }
 0x4d9   :  { %v6557_v43 = vpack.c.bf16 %v6554_v41, %v6554_v41 }
 0x4da   :  { %v6558_v42 = vpack.c.bf16 %v6555_v15, %v6555_v15 }
 0x4dc   :  { %6594 = vmatprep.subr.bf16.mxu1 %v6558_v42 }
 0x4dd   :  { %6595 = vmatpush1.bf16.xpose.msra.mxu1 %v6557_v43 }
 0x4e4   :  { %6627 = vmatmul.mubr.bf16.vlgmr.msra.gmra.mrb[36].mxu1 %v6584_v29 }
 0x5b7   :  { %v6628_v46 = vpop.f32.mrb[36].mxu1 }
 0x5b8   :  { %v6629_v7 = vadd.f32 %v6628_v46, %v6568_v56  ;;  %v6630_v47 = vpop.f32.mrb[37].mxu1 }
 0x5b9   :  { %v6631_v49 = vpop.f32.mrb[38].mxu1 }
 0x5ba   :  { %v6634_v50 = vsub.f32 0.0, %v6629_v7  ;;  %v6632_v16 = vpop.f32.mrb[39].mxu1 }
 0x5bc   :  { %v6635_v34 = vmul.f32 1.442695, %v6634_v50 }
 0x5be   :  { %8857 = vpow2.f32 %v6635_v34 }
 0x5c8   :  { %v8858_v25 = vpop.eup %8857 }
 0x5c9   :  { %v6637_v30 = vadd.f32 1.0, %v8858_v25 }
 0x5cb   :  { %8859 = vrcp.f32 %v6637_v30 }
 0x5d5   :  { %v8860_v51 = vpop.eup %8859 }
 0x5d6   :  { %6641 = vst.msk [vmem:[%s11569_s9] sm:$0x1] %vm6640_vm1, %v8860_v51 }

</bundles_post_ra>
